<compile_context>
chip_gen: v7x
topology: tpu7x:2x2x1
jax: 0.10.0
libtpu: 0.0.40
codegen_flags: <defaults>
</compile_context>

<pallas_src>
import jax
import jax.numpy as jnp
import numpy as np
from jax.experimental import pallas as pl
from jax.experimental.pallas import tpu as pltpu

# ---------------- problem configuration (small, deterministic) ----------------
N      = 2            # batch
CIN    = 8            # in_channels
COUT   = 16           # out_channels (!= CIN -> exercises the rechannel 1x1 conv)
H = W  = 16           # spatial
TDIM   = 32           # time_embed_dim
GROUPS = 4            # groups (divides CIN and COUT)
EPS    = 1e-5
P      = H * W        # pixels per image (lane axis inside the kernel)
P4     = (H // 2) * (W // 2)   # pixels after the 2x2 avg-pool


# -------------------------- constant helper tensors ---------------------------
def _build_constants():
    # per-tap validity masks (9, 1, P): zero where the shifted source pixel falls
    # outside the image (implements the conv's zero padding after a lane roll).
    yy, xx = np.meshgrid(np.arange(H), np.arange(W), indexing="ij")
    masks = []
    for t in range(9):
        dy, dx = divmod(t, 3)
        valid = ((yy + dy - 1 >= 0) & (yy + dy - 1 < H) &
                 (xx + dx - 1 >= 0) & (xx + dx - 1 < W))
        masks.append(valid.reshape(-1).astype(np.float32))
    masks = np.stack(masks)[:, None, :]                      # (9, 1, P)

    # 2x2 average-pool as a (P, P4) matrix with 0.25 entries (one fused matmul).
    pool = np.zeros((P, P4), np.float32)
    for y in range(H):
        for x in range(W):
            pool[y * W + x, (y // 2) * (W // 2) + (x // 2)] = 0.25

    # GroupNorm group-membership matrices (block-diagonal ones), hoisted out of
    # the kernel so no iota/one-hot construction happens per grid step.
    def gmat(c):
        gid = np.arange(c) // (c // GROUPS)
        return (gid[:, None] == gid[None, :]).astype(np.float32)

    return (jnp.asarray(masks), jnp.asarray(pool),
            jnp.asarray(gmat(CIN)), jnp.asarray(gmat(COUT)))


MASKS, POOL, A_IN, A_OUT = _build_constants()


# --------------------------------- the kernel ---------------------------------
def unet_down_kernel(
    x_ref, masks_ref, pool_ref, a_in_ref, a_out_ref,
    # resnet block 1 (CIN -> COUT)
    g11_ref, bt11_ref, w11_ref, cb11_ref, g12_ref, bt12_ref, sc1_ref, sh1_ref,
    w12_ref, cb12_ref, rw_ref, rb_ref,
    # resnet block 2 (COUT -> COUT)
    g21_ref, bt21_ref, w21_ref, cb21_ref, g22_ref, bt22_ref, sc2_ref, sh2_ref,
    w22_ref, cb22_ref,
    o_ref):

    x = x_ref[0]                                   # (CIN, P) f32, channel-major

    def silu(v):
        # SiLU via tanh: x*sigmoid(x) = x*(0.5*tanh(0.5x)+0.5).  tanh runs on the
        # EUP slot, avoiding the VALU-divide of a hand-rolled 1/(1+exp(-x)).
        return v * (0.5 * jnp.tanh(0.5 * v) + 0.5)

    def group_norm(v, a_ref, gamma_ref, beta_ref):
        # v: (C, P); a_ref: (C, C) group membership; gamma/beta: (C, 1)
        c = v.shape[0]
        inv_cnt = 1.0 / float((c // GROUPS) * P)
        a = a_ref[...]
        mean = jnp.sum(jnp.dot(a, v, preferred_element_type=jnp.float32),
                       axis=1, keepdims=True) * inv_cnt            # (C, 1)
        d = v - mean
        var = jnp.sum(jnp.dot(a, d * d, preferred_element_type=jnp.float32),
                      axis=1, keepdims=True) * inv_cnt              # (C, 1)
        return d * jax.lax.rsqrt(var + EPS) * gamma_ref[...] + beta_ref[...]

    def conv3x3(v, w_ref, b_ref):
        # v: (C, P) channel-major; w_ref: (COUT, 9*C) tap-major / ci-minor.
        # im2col built from 9 lane-rolled + border-masked copies stacked on the
        # sublane axis -> a single lane-dense (COUT, P) MXU matmul.
        pieces = []
        for t in range(9):
            dy, dx = divmod(t, 3)
            s = (dy - 1) * W + (dx - 1)            # flat source offset for this tap
            if s == 0:
                pieces.append(v)
            else:
                shifted = pltpu.roll(v, (-s) % P, 1)       # shifted[p] = v[p + s]
                pieces.append(shifted * masks_ref[t])       # zero the padding taps
        im2col = jnp.concatenate(pieces, axis=0)            # (9*C, P)
        return jnp.dot(w_ref[...], im2col,
                       preferred_element_type=jnp.float32) + b_ref[...]

    def resnet_block(v, a1, g1, bt1, wa, ba, a2, g2, bt2, sc, sh, wb, bb, res):
        h = silu(group_norm(v, a1, g1, bt1))
        h = conv3x3(h, wa, ba)
        h = group_norm(h, a2, g2, bt2)
        h = h * (1.0 + sc[0]) + sh[0]              # time scale/shift (from wrapper)
        # dropout(p=0) -> identity
        h = silu(h)
        h = conv3x3(h, wb, bb)
        return h + res

    # block 1: rechannel (1x1 conv) residual since CIN != COUT
    res1 = jnp.dot(rw_ref[...], x, preferred_element_type=jnp.float32) + rb_ref[...]
    h1 = resnet_block(x, a_in_ref, g11_ref, bt11_ref, w11_ref, cb11_ref,
                      a_out_ref, g12_ref, bt12_ref, sc1_ref, sh1_ref,
                      w12_ref, cb12_ref, res1)
    # block 2: identity residual (in == out)
    h2 = resnet_block(h1, a_out_ref, g21_ref, bt21_ref, w21_ref, cb21_ref,
                      a_out_ref, g22_ref, bt22_ref, sc2_ref, sh2_ref,
                      w22_ref, cb22_ref, h1)
    # fused AvgPool2d(2,2): (COUT, P) x (P, P/4) matmul with a constant 0.25 matrix
    o_ref[0] = jnp.dot(h2, pool_ref[...],
                       preferred_element_type=jnp.float32).astype(o_ref.dtype)


# --------------------------------- the wrapper --------------------------------
def _full(shape):
    nd = len(shape)
    return pl.BlockSpec(shape, lambda b, nd=nd: (0,) * nd)


def _stack_conv_w(w):
    # OIHW (COUT, C, 3, 3) -> (COUT, 9*C), tap-major / input-channel-minor.
    co, ci = w.shape[0], w.shape[1]
    return jnp.transpose(w, (0, 2, 3, 1)).reshape(co, 9 * ci)


def _col(v):
    return v.reshape(-1, 1)


def _unet_down_pallas(x_nchw, time_embed, params):
    # NCHW -> (N, C, H*W): pure reshape, no transpose.
    x = x_nchw.reshape(N, CIN, P).astype(jnp.float32)

    # time scale/shift linears hoisted out of the kernel (tiny XLA matmuls).
    ss1 = time_embed @ params["b1_ts_w"] + params["b1_ts_b"]
    ss2 = time_embed @ params["b2_ts_w"] + params["b2_ts_b"]
    sc1 = ss1[:, :COUT].reshape(N, COUT, 1)
    sh1 = ss1[:, COUT:].reshape(N, COUT, 1)
    sc2 = ss2[:, :COUT].reshape(N, COUT, 1)
    sh2 = ss2[:, COUT:].reshape(N, COUT, 1)

    per_batch = lambda shape: pl.BlockSpec(shape, lambda b: (b, 0, 0))

    in_specs = [
        per_batch((1, CIN, P)),                                # x
        _full((9, 1, P)),                                      # conv tap masks
        _full((P, P4)),                                        # avg-pool matrix
        _full((CIN, CIN)), _full((COUT, COUT)),                # group matrices
        _full((CIN, 1)), _full((CIN, 1)),                      # b1 gn1 gamma/beta
        _full((COUT, 9 * CIN)), _full((COUT, 1)),              # b1 conv1 w/b
        _full((COUT, 1)), _full((COUT, 1)),                    # b1 gn2 gamma/beta
        per_batch((1, COUT, 1)), per_batch((1, COUT, 1)),      # b1 scale / shift
        _full((COUT, 9 * COUT)), _full((COUT, 1)),             # b1 conv2 w/b
        _full((COUT, CIN)), _full((COUT, 1)),                  # rechannel w/b
        _full((COUT, 1)), _full((COUT, 1)),                    # b2 gn1 gamma/beta
        _full((COUT, 9 * COUT)), _full((COUT, 1)),             # b2 conv1 w/b
        _full((COUT, 1)), _full((COUT, 1)),                    # b2 gn2 gamma/beta
        per_batch((1, COUT, 1)), per_batch((1, COUT, 1)),      # b2 scale / shift
        _full((COUT, 9 * COUT)), _full((COUT, 1)),             # b2 conv2 w/b
    ]

    out = pl.pallas_call(
        unet_down_kernel,
        out_shape=jax.ShapeDtypeStruct((N, COUT, P4), jnp.float32),
        grid=(N,),
        in_specs=in_specs,
        out_specs=pl.BlockSpec((1, COUT, P4), lambda b: (b, 0, 0)),
        compiler_params=pltpu.CompilerParams(
            dimension_semantics=("parallel",)),   # batch axis independent (v7x 2 TCs)
    )(
        x, MASKS, POOL, A_IN, A_OUT,
        _col(params["b1_gn1_g"]), _col(params["b1_gn1_b"]),
        _stack_conv_w(params["b1_w1"]), _col(params["b1_b1"]),
        _col(params["b1_gn2_g"]), _col(params["b1_gn2_b"]),
        sc1, sh1,
        _stack_conv_w(params["b1_w2"]), _col(params["b1_b2"]),
        params["rw"][:, :, 0, 0], _col(params["rb"]),
        _col(params["b2_gn1_g"]), _col(params["b2_gn1_b"]),
        _stack_conv_w(params["b2_w1"]), _col(params["b2_b1"]),
        _col(params["b2_gn2_g"]), _col(params["b2_gn2_b"]),
        sc2, sh2,
        _stack_conv_w(params["b2_w2"]), _col(params["b2_b2"]),
    )
    return out.reshape(N, COUT, H // 2, W // 2)


unet_down_pallas = jax.jit(_unet_down_pallas)


# --------------------------- parameters & reference ---------------------------
def init_params(key):
    keys = iter(jax.random.split(key, 32))

    def nrm(shape, sc):
        return (sc * jax.random.normal(next(keys), shape)).astype(jnp.float32)

    p = {}
    # block 1: ResnetBlock(CIN -> COUT)
    p["b1_gn1_g"] = 1.0 + nrm((CIN,), 0.1)
    p["b1_gn1_b"] = nrm((CIN,), 0.1)
    p["b1_w1"]    = nrm((COUT, CIN, 3, 3), 0.15)         # OIHW
    p["b1_b1"]    = nrm((COUT,), 0.05)
    p["b1_gn2_g"] = 1.0 + nrm((COUT,), 0.1)
    p["b1_gn2_b"] = nrm((COUT,), 0.1)
    p["b1_ts_w"]  = nrm((TDIM, 2 * COUT), 0.1)
    p["b1_ts_b"]  = nrm((2 * COUT,), 0.05)
    p["b1_w2"]    = nrm((COUT, COUT, 3, 3), 0.1)
    p["b1_b2"]    = nrm((COUT,), 0.05)
    p["rw"]       = nrm((COUT, CIN, 1, 1), 0.2)          # rechannel 1x1, OIHW
    p["rb"]       = nrm((COUT,), 0.05)
    # block 2: ResnetBlock(COUT -> COUT)
    p["b2_gn1_g"] = 1.0 + nrm((COUT,), 0.1)
    p["b2_gn1_b"] = nrm((COUT,), 0.1)
    p["b2_w1"]    = nrm((COUT, COUT, 3, 3), 0.1)
    p["b2_b1"]    = nrm((COUT,), 0.05)
    p["b2_gn2_g"] = 1.0 + nrm((COUT,), 0.1)
    p["b2_gn2_b"] = nrm((COUT,), 0.1)
    p["b2_ts_w"]  = nrm((TDIM, 2 * COUT), 0.1)
    p["b2_ts_b"]  = nrm((2 * COUT,), 0.05)
    p["b2_w2"]    = nrm((COUT, COUT, 3, 3), 0.1)
    p["b2_b2"]    = nrm((COUT,), 0.05)
    return p


def ref_forward(x, t_emb, p):
    """Pure-JAX NCHW reference mirroring the PyTorch UNetDownBlock forward."""
    def silu(v):
        return v * jax.nn.sigmoid(v)

    def gn(y, gamma, beta):
        n, c, hh, ww = y.shape
        yg = y.reshape(n, GROUPS, c // GROUPS, hh, ww)
        mu = yg.mean(axis=(2, 3, 4), keepdims=True)
        var = ((yg - mu) ** 2).mean(axis=(2, 3, 4), keepdims=True)
        yn = ((yg - mu) * jax.lax.rsqrt(var + EPS)).reshape(n, c, hh, ww)
        return yn * gamma[None, :, None, None] + beta[None, :, None, None]

    def conv(y, w, b, pad):
        out = jax.lax.conv_general_dilated(
            y, w, (1, 1), ((pad, pad), (pad, pad)),
            dimension_numbers=("NCHW", "OIHW", "NCHW"),
            precision=jax.lax.Precision.HIGHEST)
        return out + b[None, :, None, None]

    def block(y, pre, rechannel):
        h = silu(gn(y, p[pre + "gn1_g"], p[pre + "gn1_b"]))
        h = conv(h, p[pre + "w1"], p[pre + "b1"], 1)
        h = gn(h, p[pre + "gn2_g"], p[pre + "gn2_b"])
        ss = t_emb @ p[pre + "ts_w"] + p[pre + "ts_b"]
        scale, shift = ss[:, :COUT], ss[:, COUT:]
        h = h * (1.0 + scale[:, :, None, None]) + shift[:, :, None, None]
        h = silu(h)
        h = conv(h, p[pre + "w2"], p[pre + "b2"], 1)
        res = conv(y, p["rw"], p["rb"], 0) if rechannel else y
        return h + res

    h = block(x, "b1_", True)
    h = block(h, "b2_", False)
    return h.reshape(N, COUT, H // 2, 2, W // 2, 2).mean(axis=(3, 5))


if __name__ == "__main__":
    key = jax.random.PRNGKey(0)
    kx, kt, kp = jax.random.split(key, 3)
    x = jax.random.normal(kx, (N, CIN, H, W), jnp.float32)          # NCHW input
    t_emb = jax.random.normal(kt, (N, TDIM), jnp.float32)
    params = init_params(kp)

    out = unet_down_pallas(x, t_emb, params)
    out = jax.block_until_ready(out)
    assert out.shape == (N, COUT, H // 2, W // 2)

    ref = ref_forward(x, t_emb, params)
    max_err = float(jnp.max(jnp.abs(out - ref)))
    if not bool(jnp.allclose(out, ref, atol=5e-3, rtol=5e-3)):
        raise AssertionError(f"Pallas vs reference mismatch, max abs err = {max_err}")
    print("KERNEL_OK")
</pallas_src>

<mosaic_0001>
module attributes {stable_mosaic.version = 11 : i64} {
  func.func @unet_down_kernel(%arg0: i32, %arg1: memref<1x8x256xf32, #tpu.memory_space<vmem>>, %arg2: memref<9x1x256xf32, #tpu.memory_space<vmem>>, %arg3: memref<256x64xf32, #tpu.memory_space<vmem>>, %arg4: memref<8x8xf32, #tpu.memory_space<vmem>>, %arg5: memref<16x16xf32, #tpu.memory_space<vmem>>, %arg6: memref<8x1xf32, #tpu.memory_space<vmem>>, %arg7: memref<8x1xf32, #tpu.memory_space<vmem>>, %arg8: memref<16x72xf32, #tpu.memory_space<vmem>>, %arg9: memref<16x1xf32, #tpu.memory_space<vmem>>, %arg10: memref<16x1xf32, #tpu.memory_space<vmem>>, %arg11: memref<16x1xf32, #tpu.memory_space<vmem>>, %arg12: memref<1x16x1xf32, #tpu.memory_space<vmem>>, %arg13: memref<1x16x1xf32, #tpu.memory_space<vmem>>, %arg14: memref<16x144xf32, #tpu.memory_space<vmem>>, %arg15: memref<16x1xf32, #tpu.memory_space<vmem>>, %arg16: memref<16x8xf32, #tpu.memory_space<vmem>>, %arg17: memref<16x1xf32, #tpu.memory_space<vmem>>, %arg18: memref<16x1xf32, #tpu.memory_space<vmem>>, %arg19: memref<16x1xf32, #tpu.memory_space<vmem>>, %arg20: memref<16x144xf32, #tpu.memory_space<vmem>>, %arg21: memref<16x1xf32, #tpu.memory_space<vmem>>, %arg22: memref<16x1xf32, #tpu.memory_space<vmem>>, %arg23: memref<16x1xf32, #tpu.memory_space<vmem>>, %arg24: memref<1x16x1xf32, #tpu.memory_space<vmem>>, %arg25: memref<1x16x1xf32, #tpu.memory_space<vmem>>, %arg26: memref<16x144xf32, #tpu.memory_space<vmem>>, %arg27: memref<16x1xf32, #tpu.memory_space<vmem>>, %arg28: memref<1x16x64xf32, #tpu.memory_space<vmem>>) attributes {dimension_semantics = [#tpu.dimension_semantics<parallel>], iteration_bounds = array<i64: 2>, scalar_prefetch = 0 : i64, scratch_operands = 0 : i64, tpu.core_type = #tpu.core_type<tc>, window_params = [{transform_indices = @transform_0, window_bounds = array<i64: 1, 8, 256>}, {pipeline_mode = #tpu.pipeline_mode<synchronous>, transform_indices = @transform_1, window_bounds = array<i64: 9, 1, 256>}, {pipeline_mode = #tpu.pipeline_mode<synchronous>, transform_indices = @transform_2, window_bounds = array<i64: 256, 64>}, {pipeline_mode = #tpu.pipeline_mode<synchronous>, transform_indices = @transform_3, window_bounds = array<i64: 8, 8>}, {pipeline_mode = #tpu.pipeline_mode<synchronous>, transform_indices = @transform_4, window_bounds = array<i64: 16, 16>}, {pipeline_mode = #tpu.pipeline_mode<synchronous>, transform_indices = @transform_5, window_bounds = array<i64: 8, 1>}, {pipeline_mode = #tpu.pipeline_mode<synchronous>, transform_indices = @transform_6, window_bounds = array<i64: 8, 1>}, {pipeline_mode = #tpu.pipeline_mode<synchronous>, transform_indices = @transform_7, window_bounds = array<i64: 16, 72>}, {pipeline_mode = #tpu.pipeline_mode<synchronous>, transform_indices = @transform_8, window_bounds = array<i64: 16, 1>}, {pipeline_mode = #tpu.pipeline_mode<synchronous>, transform_indices = @transform_9, window_bounds = array<i64: 16, 1>}, {pipeline_mode = #tpu.pipeline_mode<synchronous>, transform_indices = @transform_10, window_bounds = array<i64: 16, 1>}, {transform_indices = @transform_11, window_bounds = array<i64: 1, 16, 1>}, {transform_indices = @transform_12, window_bounds = array<i64: 1, 16, 1>}, {pipeline_mode = #tpu.pipeline_mode<synchronous>, transform_indices = @transform_13, window_bounds = array<i64: 16, 144>}, {pipeline_mode = #tpu.pipeline_mode<synchronous>, transform_indices = @transform_14, window_bounds = array<i64: 16, 1>}, {pipeline_mode = #tpu.pipeline_mode<synchronous>, transform_indices = @transform_15, window_bounds = array<i64: 16, 8>}, {pipeline_mode = #tpu.pipeline_mode<synchronous>, transform_indices = @transform_16, window_bounds = array<i64: 16, 1>}, {pipeline_mode = #tpu.pipeline_mode<synchronous>, transform_indices = @transform_17, window_bounds = array<i64: 16, 1>}, {pipeline_mode = #tpu.pipeline_mode<synchronous>, transform_indices = @transform_18, window_bounds = array<i64: 16, 1>}, {pipeline_mode = #tpu.pipeline_mode<synchronous>, transform_indices = @transform_19, window_bounds = array<i64: 16, 144>}, {pipeline_mode = #tpu.pipeline_mode<synchronous>, transform_indices = @transform_20, window_bounds = array<i64: 16, 1>}, {pipeline_mode = #tpu.pipeline_mode<synchronous>, transform_indices = @transform_21, window_bounds = array<i64: 16, 1>}, {pipeline_mode = #tpu.pipeline_mode<synchronous>, transform_indices = @transform_22, window_bounds = array<i64: 16, 1>}, {transform_indices = @transform_23, window_bounds = array<i64: 1, 16, 1>}, {transform_indices = @transform_24, window_bounds = array<i64: 1, 16, 1>}, {pipeline_mode = #tpu.pipeline_mode<synchronous>, transform_indices = @transform_25, window_bounds = array<i64: 16, 144>}, {pipeline_mode = #tpu.pipeline_mode<synchronous>, transform_indices = @transform_26, window_bounds = array<i64: 16, 1>}, {transform_indices = @transform_27, window_bounds = array<i64: 1, 16, 64>}]} {
    %c0 = arith.constant 0 : index
    %c0_0 = arith.constant 0 : index
    %c0_1 = arith.constant 0 : index
    %0 = vector.load %arg1[%c0, %c0_0, %c0_1] : memref<1x8x256xf32, #tpu.memory_space<vmem>>, vector<1x8x256xf32>
    %1 = vector.shape_cast %0 : vector<1x8x256xf32> to vector<8x256xf32>
    %c0_2 = arith.constant 0 : index
    %c0_3 = arith.constant 0 : index
    %2 = vector.load %arg16[%c0_2, %c0_3] : memref<16x8xf32, #tpu.memory_space<vmem>>, vector<16x8xf32>
    %cst = arith.constant dense<0.000000e+00> : vector<16x256xf32>
    %3 = tpu.matmul %2, %1, %cst {dimension_numbers = #tpu.dot_dimension_numbers<[1], [0], [0], [1], [0, 0, 1, 1], [], []>} : vector<16x8xf32>, vector<8x256xf32>, vector<16x256xf32> -> vector<16x256xf32>
    %c0_4 = arith.constant 0 : index
    %c0_5 = arith.constant 0 : index
    %4 = vector.load %arg17[%c0_4, %c0_5] : memref<16x1xf32, #tpu.memory_space<vmem>>, vector<16x1xf32>
    %5 = vector.broadcast %4 : vector<16x1xf32> to vector<16x256xf32>
    %6 = arith.addf %3, %5 : vector<16x256xf32>
    %c0_6 = arith.constant 0 : index
    %c0_7 = arith.constant 0 : index
    %7 = vector.load %arg4[%c0_6, %c0_7] : memref<8x8xf32, #tpu.memory_space<vmem>>, vector<8x8xf32>
    %cst_8 = arith.constant dense<0.000000e+00> : vector<8x256xf32>
    %8 = tpu.matmul %7, %1, %cst_8 {dimension_numbers = #tpu.dot_dimension_numbers<[1], [0], [0], [1], [0, 0, 1, 1], [], []>} : vector<8x8xf32>, vector<8x256xf32>, vector<8x256xf32> -> vector<8x256xf32>
    %cst_9 = arith.constant dense<0.000000e+00> : vector<8xf32>
    %9 = vector.multi_reduction <add>, %8, %cst_9 [1] : vector<8x256xf32> to vector<8xf32>
    %10 = vector.shape_cast %9 : vector<8xf32> to vector<8x1xf32>
    %cst_10 = arith.constant 0.001953125 : f32
    %11 = vector.broadcast %cst_10 : f32 to vector<8x1xf32>
    %12 = arith.mulf %10, %11 : vector<8x1xf32>
    %13 = vector.broadcast %12 : vector<8x1xf32> to vector<8x256xf32>
    %14 = arith.subf %1, %13 : vector<8x256xf32>
    %15 = arith.mulf %14, %14 : vector<8x256xf32>
    %cst_11 = arith.constant dense<0.000000e+00> : vector<8x256xf32>
    %16 = tpu.matmul %7, %15, %cst_11 {dimension_numbers = #tpu.dot_dimension_numbers<[1], [0], [0], [1], [0, 0, 1, 1], [], []>} : vector<8x8xf32>, vector<8x256xf32>, vector<8x256xf32> -> vector<8x256xf32>
    %cst_12 = arith.constant dense<0.000000e+00> : vector<8xf32>
    %17 = vector.multi_reduction <add>, %16, %cst_12 [1] : vector<8x256xf32> to vector<8xf32>
    %18 = vector.shape_cast %17 : vector<8xf32> to vector<8x1xf32>
    %cst_13 = arith.constant 0.001953125 : f32
    %19 = vector.broadcast %cst_13 : f32 to vector<8x1xf32>
    %20 = arith.mulf %18, %19 : vector<8x1xf32>
    %cst_14 = arith.constant 9.99999974E-6 : f32
    %21 = vector.broadcast %cst_14 : f32 to vector<8x1xf32>
    %22 = arith.addf %20, %21 : vector<8x1xf32>
    %23 = math.rsqrt %22 : vector<8x1xf32>
    %24 = vector.broadcast %23 : vector<8x1xf32> to vector<8x256xf32>
    %25 = arith.mulf %14, %24 : vector<8x256xf32>
    %c0_15 = arith.constant 0 : index
    %c0_16 = arith.constant 0 : index
    %26 = vector.load %arg6[%c0_15, %c0_16] : memref<8x1xf32, #tpu.memory_space<vmem>>, vector<8x1xf32>
    %27 = vector.broadcast %26 : vector<8x1xf32> to vector<8x256xf32>
    %28 = arith.mulf %25, %27 : vector<8x256xf32>
    %c0_17 = arith.constant 0 : index
    %c0_18 = arith.constant 0 : index
    %29 = vector.load %arg7[%c0_17, %c0_18] : memref<8x1xf32, #tpu.memory_space<vmem>>, vector<8x1xf32>
    %30 = vector.broadcast %29 : vector<8x1xf32> to vector<8x256xf32>
    %31 = arith.addf %28, %30 : vector<8x256xf32>
    %cst_19 = arith.constant 5.000000e-01 : f32
    %32 = vector.broadcast %cst_19 : f32 to vector<8x256xf32>
    %33 = arith.mulf %32, %31 : vector<8x256xf32>
    %34 = math.tanh %33 : vector<8x256xf32>
    %cst_20 = arith.constant 5.000000e-01 : f32
    %35 = vector.broadcast %cst_20 : f32 to vector<8x256xf32>
    %36 = arith.mulf %35, %34 : vector<8x256xf32>
    %cst_21 = arith.constant 5.000000e-01 : f32
    %37 = vector.broadcast %cst_21 : f32 to vector<8x256xf32>
    %38 = arith.addf %36, %37 : vector<8x256xf32>
    %39 = arith.mulf %31, %38 : vector<8x256xf32>
    %c17_i32 = arith.constant 17 : i32
    %40 = tpu.dynamic_rotate %39 by %c17_i32 dim 1 : vector<8x256xf32>, i32 -> vector<8x256xf32>
    %c0_22 = arith.constant 0 : index
    %c0_23 = arith.constant 0 : index
    %c0_24 = arith.constant 0 : index
    %41 = vector.load %arg2[%c0_22, %c0_23, %c0_24] : memref<9x1x256xf32, #tpu.memory_space<vmem>>, vector<1x1x256xf32>
    %42 = vector.shape_cast %41 : vector<1x1x256xf32> to vector<1x256xf32>
    %43 = vector.broadcast %42 : vector<1x256xf32> to vector<8x256xf32>
    %44 = arith.mulf %40, %43 : vector<8x256xf32>
    %c16_i32 = arith.constant 16 : i32
    %45 = tpu.dynamic_rotate %39 by %c16_i32 dim 1 : vector<8x256xf32>, i32 -> vector<8x256xf32>
    %c1 = arith.constant 1 : index
    %c0_25 = arith.constant 0 : index
    %c0_26 = arith.constant 0 : index
    %46 = vector.load %arg2[%c1, %c0_25, %c0_26] : memref<9x1x256xf32, #tpu.memory_space<vmem>>, vector<1x1x256xf32>
    %47 = vector.shape_cast %46 : vector<1x1x256xf32> to vector<1x256xf32>
    %48 = vector.broadcast %47 : vector<1x256xf32> to vector<8x256xf32>
    %49 = arith.mulf %45, %48 : vector<8x256xf32>
    %c15_i32 = arith.constant 15 : i32
    %50 = tpu.dynamic_rotate %39 by %c15_i32 dim 1 : vector<8x256xf32>, i32 -> vector<8x256xf32>
    %c2 = arith.constant 2 : index
    %c0_27 = arith.constant 0 : index
    %c0_28 = arith.constant 0 : index
    %51 = vector.load %arg2[%c2, %c0_27, %c0_28] : memref<9x1x256xf32, #tpu.memory_space<vmem>>, vector<1x1x256xf32>
    %52 = vector.shape_cast %51 : vector<1x1x256xf32> to vector<1x256xf32>
    %53 = vector.broadcast %52 : vector<1x256xf32> to vector<8x256xf32>
    %54 = arith.mulf %50, %53 : vector<8x256xf32>
    %c1_i32 = arith.constant 1 : i32
    %55 = tpu.dynamic_rotate %39 by %c1_i32 dim 1 : vector<8x256xf32>, i32 -> vector<8x256xf32>
    %c3 = arith.constant 3 : index
    %c0_29 = arith.constant 0 : index
    %c0_30 = arith.constant 0 : index
    %56 = vector.load %arg2[%c3, %c0_29, %c0_30] : memref<9x1x256xf32, #tpu.memory_space<vmem>>, vector<1x1x256xf32>
    %57 = vector.shape_cast %56 : vector<1x1x256xf32> to vector<1x256xf32>
    %58 = vector.broadcast %57 : vector<1x256xf32> to vector<8x256xf32>
    %59 = arith.mulf %55, %58 : vector<8x256xf32>
    %c255_i32 = arith.constant 255 : i32
    %60 = tpu.dynamic_rotate %39 by %c255_i32 dim 1 : vector<8x256xf32>, i32 -> vector<8x256xf32>
    %c5 = arith.constant 5 : index
    %c0_31 = arith.constant 0 : index
    %c0_32 = arith.constant 0 : index
    %61 = vector.load %arg2[%c5, %c0_31, %c0_32] : memref<9x1x256xf32, #tpu.memory_space<vmem>>, vector<1x1x256xf32>
    %62 = vector.shape_cast %61 : vector<1x1x256xf32> to vector<1x256xf32>
    %63 = vector.broadcast %62 : vector<1x256xf32> to vector<8x256xf32>
    %64 = arith.mulf %60, %63 : vector<8x256xf32>
    %c241_i32 = arith.constant 241 : i32
    %65 = tpu.dynamic_rotate %39 by %c241_i32 dim 1 : vector<8x256xf32>, i32 -> vector<8x256xf32>
    %c6 = arith.constant 6 : index
    %c0_33 = arith.constant 0 : index
    %c0_34 = arith.constant 0 : index
    %66 = vector.load %arg2[%c6, %c0_33, %c0_34] : memref<9x1x256xf32, #tpu.memory_space<vmem>>, vector<1x1x256xf32>
    %67 = vector.shape_cast %66 : vector<1x1x256xf32> to vector<1x256xf32>
    %68 = vector.broadcast %67 : vector<1x256xf32> to vector<8x256xf32>
    %69 = arith.mulf %65, %68 : vector<8x256xf32>
    %c240_i32 = arith.constant 240 : i32
    %70 = tpu.dynamic_rotate %39 by %c240_i32 dim 1 : vector<8x256xf32>, i32 -> vector<8x256xf32>
    %c7 = arith.constant 7 : index
    %c0_35 = arith.constant 0 : index
    %c0_36 = arith.constant 0 : index
    %71 = vector.load %arg2[%c7, %c0_35, %c0_36] : memref<9x1x256xf32, #tpu.memory_space<vmem>>, vector<1x1x256xf32>
    %72 = vector.shape_cast %71 : vector<1x1x256xf32> to vector<1x256xf32>
    %73 = vector.broadcast %72 : vector<1x256xf32> to vector<8x256xf32>
    %74 = arith.mulf %70, %73 : vector<8x256xf32>
    %c239_i32 = arith.constant 239 : i32
    %75 = tpu.dynamic_rotate %39 by %c239_i32 dim 1 : vector<8x256xf32>, i32 -> vector<8x256xf32>
    %c8 = arith.constant 8 : index
    %c0_37 = arith.constant 0 : index
    %c0_38 = arith.constant 0 : index
    %76 = vector.load %arg2[%c8, %c0_37, %c0_38] : memref<9x1x256xf32, #tpu.memory_space<vmem>>, vector<1x1x256xf32>
    %77 = vector.shape_cast %76 : vector<1x1x256xf32> to vector<1x256xf32>
    %78 = vector.broadcast %77 : vector<1x256xf32> to vector<8x256xf32>
    %79 = arith.mulf %75, %78 : vector<8x256xf32>
    %80 = tpu.concatenate %44, %49, %54, %59, %39, %64, %69, %74, %79 in 0 : vector<8x256xf32>, vector<8x256xf32>, vector<8x256xf32>, vector<8x256xf32>, vector<8x256xf32>, vector<8x256xf32>, vector<8x256xf32>, vector<8x256xf32>, vector<8x256xf32> -> vector<72x256xf32>
    %c0_39 = arith.constant 0 : index
    %c0_40 = arith.constant 0 : index
    %81 = vector.load %arg8[%c0_39, %c0_40] : memref<16x72xf32, #tpu.memory_space<vmem>>, vector<16x72xf32>
    %cst_41 = arith.constant dense<0.000000e+00> : vector<16x256xf32>
    %82 = tpu.matmul %81, %80, %cst_41 {dimension_numbers = #tpu.dot_dimension_numbers<[1], [0], [0], [1], [0, 0, 1, 1], [], []>} : vector<16x72xf32>, vector<72x256xf32>, vector<16x256xf32> -> vector<16x256xf32>
    %c0_42 = arith.constant 0 : index
    %c0_43 = arith.constant 0 : index
    %83 = vector.load %arg9[%c0_42, %c0_43] : memref<16x1xf32, #tpu.memory_space<vmem>>, vector<16x1xf32>
    %84 = vector.broadcast %83 : vector<16x1xf32> to vector<16x256xf32>
    %85 = arith.addf %82, %84 : vector<16x256xf32>
    %c0_44 = arith.constant 0 : index
    %c0_45 = arith.constant 0 : index
    %86 = vector.load %arg5[%c0_44, %c0_45] : memref<16x16xf32, #tpu.memory_space<vmem>>, vector<16x16xf32>
    %cst_46 = arith.constant dense<0.000000e+00> : vector<16x256xf32>
    %87 = tpu.matmul %86, %85, %cst_46 {dimension_numbers = #tpu.dot_dimension_numbers<[1], [0], [0], [1], [0, 0, 1, 1], [], []>} : vector<16x16xf32>, vector<16x256xf32>, vector<16x256xf32> -> vector<16x256xf32>
    %cst_47 = arith.constant dense<0.000000e+00> : vector<16xf32>
    %88 = vector.multi_reduction <add>, %87, %cst_47 [1] : vector<16x256xf32> to vector<16xf32>
    %89 = vector.shape_cast %88 : vector<16xf32> to vector<16x1xf32>
    %cst_48 = arith.constant 9.765625E-4 : f32
    %90 = vector.broadcast %cst_48 : f32 to vector<16x1xf32>
    %91 = arith.mulf %89, %90 : vector<16x1xf32>
    %92 = vector.broadcast %91 : vector<16x1xf32> to vector<16x256xf32>
    %93 = arith.subf %85, %92 : vector<16x256xf32>
    %94 = arith.mulf %93, %93 : vector<16x256xf32>
    %cst_49 = arith.constant dense<0.000000e+00> : vector<16x256xf32>
    %95 = tpu.matmul %86, %94, %cst_49 {dimension_numbers = #tpu.dot_dimension_numbers<[1], [0], [0], [1], [0, 0, 1, 1], [], []>} : vector<16x16xf32>, vector<16x256xf32>, vector<16x256xf32> -> vector<16x256xf32>
    %cst_50 = arith.constant dense<0.000000e+00> : vector<16xf32>
    %96 = vector.multi_reduction <add>, %95, %cst_50 [1] : vector<16x256xf32> to vector<16xf32>
    %97 = vector.shape_cast %96 : vector<16xf32> to vector<16x1xf32>
    %cst_51 = arith.constant 9.765625E-4 : f32
    %98 = vector.broadcast %cst_51 : f32 to vector<16x1xf32>
    %99 = arith.mulf %97, %98 : vector<16x1xf32>
    %cst_52 = arith.constant 9.99999974E-6 : f32
    %100 = vector.broadcast %cst_52 : f32 to vector<16x1xf32>
    %101 = arith.addf %99, %100 : vector<16x1xf32>
    %102 = math.rsqrt %101 : vector<16x1xf32>
    %103 = vector.broadcast %102 : vector<16x1xf32> to vector<16x256xf32>
    %104 = arith.mulf %93, %103 : vector<16x256xf32>
    %c0_53 = arith.constant 0 : index
    %c0_54 = arith.constant 0 : index
    %105 = vector.load %arg10[%c0_53, %c0_54] : memref<16x1xf32, #tpu.memory_space<vmem>>, vector<16x1xf32>
    %106 = vector.broadcast %105 : vector<16x1xf32> to vector<16x256xf32>
    %107 = arith.mulf %104, %106 : vector<16x256xf32>
    %c0_55 = arith.constant 0 : index
    %c0_56 = arith.constant 0 : index
    %108 = vector.load %arg11[%c0_55, %c0_56] : memref<16x1xf32, #tpu.memory_space<vmem>>, vector<16x1xf32>
    %109 = vector.broadcast %108 : vector<16x1xf32> to vector<16x256xf32>
    %110 = arith.addf %107, %109 : vector<16x256xf32>
    %c0_57 = arith.constant 0 : index
    %c0_58 = arith.constant 0 : index
    %c0_59 = arith.constant 0 : index
    %111 = vector.load %arg12[%c0_57, %c0_58, %c0_59] : memref<1x16x1xf32, #tpu.memory_space<vmem>>, vector<1x16x1xf32>
    %112 = vector.shape_cast %111 : vector<1x16x1xf32> to vector<16x1xf32>
    %cst_60 = arith.constant 1.000000e+00 : f32
    %113 = vector.broadcast %cst_60 : f32 to vector<16x1xf32>
    %114 = arith.addf %113, %112 : vector<16x1xf32>
    %115 = vector.broadcast %114 : vector<16x1xf32> to vector<16x256xf32>
    %116 = arith.mulf %110, %115 : vector<16x256xf32>
    %c0_61 = arith.constant 0 : index
    %c0_62 = arith.constant 0 : index
    %c0_63 = arith.constant 0 : index
    %117 = vector.load %arg13[%c0_61, %c0_62, %c0_63] : memref<1x16x1xf32, #tpu.memory_space<vmem>>, vector<1x16x1xf32>
    %118 = vector.shape_cast %117 : vector<1x16x1xf32> to vector<16x1xf32>
    %119 = vector.broadcast %118 : vector<16x1xf32> to vector<16x256xf32>
    %120 = arith.addf %116, %119 : vector<16x256xf32>
    %cst_64 = arith.constant 5.000000e-01 : f32
    %121 = vector.broadcast %cst_64 : f32 to vector<16x256xf32>
    %122 = arith.mulf %121, %120 : vector<16x256xf32>
    %123 = math.tanh %122 : vector<16x256xf32>
    %cst_65 = arith.constant 5.000000e-01 : f32
    %124 = vector.broadcast %cst_65 : f32 to vector<16x256xf32>
    %125 = arith.mulf %124, %123 : vector<16x256xf32>
    %cst_66 = arith.constant 5.000000e-01 : f32
    %126 = vector.broadcast %cst_66 : f32 to vector<16x256xf32>
    %127 = arith.addf %125, %126 : vector<16x256xf32>
    %128 = arith.mulf %120, %127 : vector<16x256xf32>
    %c17_i32_67 = arith.constant 17 : i32
    %129 = tpu.dynamic_rotate %128 by %c17_i32_67 dim 1 : vector<16x256xf32>, i32 -> vector<16x256xf32>
    %c0_68 = arith.constant 0 : index
    %c0_69 = arith.constant 0 : index
    %c0_70 = arith.constant 0 : index
    %130 = vector.load %arg2[%c0_68, %c0_69, %c0_70] : memref<9x1x256xf32, #tpu.memory_space<vmem>>, vector<1x1x256xf32>
    %131 = vector.shape_cast %130 : vector<1x1x256xf32> to vector<1x256xf32>
    %132 = vector.broadcast %131 : vector<1x256xf32> to vector<16x256xf32>
    %133 = arith.mulf %129, %132 : vector<16x256xf32>
    %c16_i32_71 = arith.constant 16 : i32
    %134 = tpu.dynamic_rotate %128 by %c16_i32_71 dim 1 : vector<16x256xf32>, i32 -> vector<16x256xf32>
    %c1_72 = arith.constant 1 : index
    %c0_73 = arith.constant 0 : index
    %c0_74 = arith.constant 0 : index
    %135 = vector.load %arg2[%c1_72, %c0_73, %c0_74] : memref<9x1x256xf32, #tpu.memory_space<vmem>>, vector<1x1x256xf32>
    %136 = vector.shape_cast %135 : vector<1x1x256xf32> to vector<1x256xf32>
    %137 = vector.broadcast %136 : vector<1x256xf32> to vector<16x256xf32>
    %138 = arith.mulf %134, %137 : vector<16x256xf32>
    %c15_i32_75 = arith.constant 15 : i32
    %139 = tpu.dynamic_rotate %128 by %c15_i32_75 dim 1 : vector<16x256xf32>, i32 -> vector<16x256xf32>
    %c2_76 = arith.constant 2 : index
    %c0_77 = arith.constant 0 : index
    %c0_78 = arith.constant 0 : index
    %140 = vector.load %arg2[%c2_76, %c0_77, %c0_78] : memref<9x1x256xf32, #tpu.memory_space<vmem>>, vector<1x1x256xf32>
    %141 = vector.shape_cast %140 : vector<1x1x256xf32> to vector<1x256xf32>
    %142 = vector.broadcast %141 : vector<1x256xf32> to vector<16x256xf32>
    %143 = arith.mulf %139, %142 : vector<16x256xf32>
    %c1_i32_79 = arith.constant 1 : i32
    %144 = tpu.dynamic_rotate %128 by %c1_i32_79 dim 1 : vector<16x256xf32>, i32 -> vector<16x256xf32>
    %c3_80 = arith.constant 3 : index
    %c0_81 = arith.constant 0 : index
    %c0_82 = arith.constant 0 : index
    %145 = vector.load %arg2[%c3_80, %c0_81, %c0_82] : memref<9x1x256xf32, #tpu.memory_space<vmem>>, vector<1x1x256xf32>
    %146 = vector.shape_cast %145 : vector<1x1x256xf32> to vector<1x256xf32>
    %147 = vector.broadcast %146 : vector<1x256xf32> to vector<16x256xf32>
    %148 = arith.mulf %144, %147 : vector<16x256xf32>
    %c255_i32_83 = arith.constant 255 : i32
    %149 = tpu.dynamic_rotate %128 by %c255_i32_83 dim 1 : vector<16x256xf32>, i32 -> vector<16x256xf32>
    %c5_84 = arith.constant 5 : index
    %c0_85 = arith.constant 0 : index
    %c0_86 = arith.constant 0 : index
    %150 = vector.load %arg2[%c5_84, %c0_85, %c0_86] : memref<9x1x256xf32, #tpu.memory_space<vmem>>, vector<1x1x256xf32>
    %151 = vector.shape_cast %150 : vector<1x1x256xf32> to vector<1x256xf32>
    %152 = vector.broadcast %151 : vector<1x256xf32> to vector<16x256xf32>
    %153 = arith.mulf %149, %152 : vector<16x256xf32>
    %c241_i32_87 = arith.constant 241 : i32
    %154 = tpu.dynamic_rotate %128 by %c241_i32_87 dim 1 : vector<16x256xf32>, i32 -> vector<16x256xf32>
    %c6_88 = arith.constant 6 : index
    %c0_89 = arith.constant 0 : index
    %c0_90 = arith.constant 0 : index
    %155 = vector.load %arg2[%c6_88, %c0_89, %c0_90] : memref<9x1x256xf32, #tpu.memory_space<vmem>>, vector<1x1x256xf32>
    %156 = vector.shape_cast %155 : vector<1x1x256xf32> to vector<1x256xf32>
    %157 = vector.broadcast %156 : vector<1x256xf32> to vector<16x256xf32>
    %158 = arith.mulf %154, %157 : vector<16x256xf32>
    %c240_i32_91 = arith.constant 240 : i32
    %159 = tpu.dynamic_rotate %128 by %c240_i32_91 dim 1 : vector<16x256xf32>, i32 -> vector<16x256xf32>
    %c7_92 = arith.constant 7 : index
    %c0_93 = arith.constant 0 : index
    %c0_94 = arith.constant 0 : index
    %160 = vector.load %arg2[%c7_92, %c0_93, %c0_94] : memref<9x1x256xf32, #tpu.memory_space<vmem>>, vector<1x1x256xf32>
    %161 = vector.shape_cast %160 : vector<1x1x256xf32> to vector<1x256xf32>
    %162 = vector.broadcast %161 : vector<1x256xf32> to vector<16x256xf32>
    %163 = arith.mulf %159, %162 : vector<16x256xf32>
    %c239_i32_95 = arith.constant 239 : i32
    %164 = tpu.dynamic_rotate %128 by %c239_i32_95 dim 1 : vector<16x256xf32>, i32 -> vector<16x256xf32>
    %c8_96 = arith.constant 8 : index
    %c0_97 = arith.constant 0 : index
    %c0_98 = arith.constant 0 : index
    %165 = vector.load %arg2[%c8_96, %c0_97, %c0_98] : memref<9x1x256xf32, #tpu.memory_space<vmem>>, vector<1x1x256xf32>
    %166 = vector.shape_cast %165 : vector<1x1x256xf32> to vector<1x256xf32>
    %167 = vector.broadcast %166 : vector<1x256xf32> to vector<16x256xf32>
    %168 = arith.mulf %164, %167 : vector<16x256xf32>
    %169 = tpu.concatenate %133, %138, %143, %148, %128, %153, %158, %163, %168 in 0 : vector<16x256xf32>, vector<16x256xf32>, vector<16x256xf32>, vector<16x256xf32>, vector<16x256xf32>, vector<16x256xf32>, vector<16x256xf32>, vector<16x256xf32>, vector<16x256xf32> -> vector<144x256xf32>
    %c0_99 = arith.constant 0 : index
    %c0_100 = arith.constant 0 : index
    %170 = vector.load %arg14[%c0_99, %c0_100] : memref<16x144xf32, #tpu.memory_space<vmem>>, vector<16x144xf32>
    %cst_101 = arith.constant dense<0.000000e+00> : vector<16x256xf32>
    %171 = tpu.matmul %170, %169, %cst_101 {dimension_numbers = #tpu.dot_dimension_numbers<[1], [0], [0], [1], [0, 0, 1, 1], [], []>} : vector<16x144xf32>, vector<144x256xf32>, vector<16x256xf32> -> vector<16x256xf32>
    %c0_102 = arith.constant 0 : index
    %c0_103 = arith.constant 0 : index
    %172 = vector.load %arg15[%c0_102, %c0_103] : memref<16x1xf32, #tpu.memory_space<vmem>>, vector<16x1xf32>
    %173 = vector.broadcast %172 : vector<16x1xf32> to vector<16x256xf32>
    %174 = arith.addf %171, %173 : vector<16x256xf32>
    %175 = arith.addf %174, %6 : vector<16x256xf32>
    %c0_104 = arith.constant 0 : index
    %c0_105 = arith.constant 0 : index
    %176 = vector.load %arg5[%c0_104, %c0_105] : memref<16x16xf32, #tpu.memory_space<vmem>>, vector<16x16xf32>
    %cst_106 = arith.constant dense<0.000000e+00> : vector<16x256xf32>
    %177 = tpu.matmul %176, %175, %cst_106 {dimension_numbers = #tpu.dot_dimension_numbers<[1], [0], [0], [1], [0, 0, 1, 1], [], []>} : vector<16x16xf32>, vector<16x256xf32>, vector<16x256xf32> -> vector<16x256xf32>
    %cst_107 = arith.constant dense<0.000000e+00> : vector<16xf32>
    %178 = vector.multi_reduction <add>, %177, %cst_107 [1] : vector<16x256xf32> to vector<16xf32>
    %179 = vector.shape_cast %178 : vector<16xf32> to vector<16x1xf32>
    %cst_108 = arith.constant 9.765625E-4 : f32
    %180 = vector.broadcast %cst_108 : f32 to vector<16x1xf32>
    %181 = arith.mulf %179, %180 : vector<16x1xf32>
    %182 = vector.broadcast %181 : vector<16x1xf32> to vector<16x256xf32>
    %183 = arith.subf %175, %182 : vector<16x256xf32>
    %184 = arith.mulf %183, %183 : vector<16x256xf32>
    %cst_109 = arith.constant dense<0.000000e+00> : vector<16x256xf32>
    %185 = tpu.matmul %176, %184, %cst_109 {dimension_numbers = #tpu.dot_dimension_numbers<[1], [0], [0], [1], [0, 0, 1, 1], [], []>} : vector<16x16xf32>, vector<16x256xf32>, vector<16x256xf32> -> vector<16x256xf32>
    %cst_110 = arith.constant dense<0.000000e+00> : vector<16xf32>
    %186 = vector.multi_reduction <add>, %185, %cst_110 [1] : vector<16x256xf32> to vector<16xf32>
    %187 = vector.shape_cast %186 : vector<16xf32> to vector<16x1xf32>
    %cst_111 = arith.constant 9.765625E-4 : f32
    %188 = vector.broadcast %cst_111 : f32 to vector<16x1xf32>
    %189 = arith.mulf %187, %188 : vector<16x1xf32>
    %cst_112 = arith.constant 9.99999974E-6 : f32
    %190 = vector.broadcast %cst_112 : f32 to vector<16x1xf32>
    %191 = arith.addf %189, %190 : vector<16x1xf32>
    %192 = math.rsqrt %191 : vector<16x1xf32>
    %193 = vector.broadcast %192 : vector<16x1xf32> to vector<16x256xf32>
    %194 = arith.mulf %183, %193 : vector<16x256xf32>
    %c0_113 = arith.constant 0 : index
    %c0_114 = arith.constant 0 : index
    %195 = vector.load %arg18[%c0_113, %c0_114] : memref<16x1xf32, #tpu.memory_space<vmem>>, vector<16x1xf32>
    %196 = vector.broadcast %195 : vector<16x1xf32> to vector<16x256xf32>
    %197 = arith.mulf %194, %196 : vector<16x256xf32>
    %c0_115 = arith.constant 0 : index
    %c0_116 = arith.constant 0 : index
    %198 = vector.load %arg19[%c0_115, %c0_116] : memref<16x1xf32, #tpu.memory_space<vmem>>, vector<16x1xf32>
    %199 = vector.broadcast %198 : vector<16x1xf32> to vector<16x256xf32>
    %200 = arith.addf %197, %199 : vector<16x256xf32>
    %cst_117 = arith.constant 5.000000e-01 : f32
    %201 = vector.broadcast %cst_117 : f32 to vector<16x256xf32>
    %202 = arith.mulf %201, %200 : vector<16x256xf32>
    %203 = math.tanh %202 : vector<16x256xf32>
    %cst_118 = arith.constant 5.000000e-01 : f32
    %204 = vector.broadcast %cst_118 : f32 to vector<16x256xf32>
    %205 = arith.mulf %204, %203 : vector<16x256xf32>
    %cst_119 = arith.constant 5.000000e-01 : f32
    %206 = vector.broadcast %cst_119 : f32 to vector<16x256xf32>
    %207 = arith.addf %205, %206 : vector<16x256xf32>
    %208 = arith.mulf %200, %207 : vector<16x256xf32>
    %c17_i32_120 = arith.constant 17 : i32
    %209 = tpu.dynamic_rotate %208 by %c17_i32_120 dim 1 : vector<16x256xf32>, i32 -> vector<16x256xf32>
    %c0_121 = arith.constant 0 : index
    %c0_122 = arith.constant 0 : index
    %c0_123 = arith.constant 0 : index
    %210 = vector.load %arg2[%c0_121, %c0_122, %c0_123] : memref<9x1x256xf32, #tpu.memory_space<vmem>>, vector<1x1x256xf32>
    %211 = vector.shape_cast %210 : vector<1x1x256xf32> to vector<1x256xf32>
    %212 = vector.broadcast %211 : vector<1x256xf32> to vector<16x256xf32>
    %213 = arith.mulf %209, %212 : vector<16x256xf32>
    %c16_i32_124 = arith.constant 16 : i32
    %214 = tpu.dynamic_rotate %208 by %c16_i32_124 dim 1 : vector<16x256xf32>, i32 -> vector<16x256xf32>
    %c1_125 = arith.constant 1 : index
    %c0_126 = arith.constant 0 : index
    %c0_127 = arith.constant 0 : index
    %215 = vector.load %arg2[%c1_125, %c0_126, %c0_127] : memref<9x1x256xf32, #tpu.memory_space<vmem>>, vector<1x1x256xf32>
    %216 = vector.shape_cast %215 : vector<1x1x256xf32> to vector<1x256xf32>
    %217 = vector.broadcast %216 : vector<1x256xf32> to vector<16x256xf32>
    %218 = arith.mulf %214, %217 : vector<16x256xf32>
    %c15_i32_128 = arith.constant 15 : i32
    %219 = tpu.dynamic_rotate %208 by %c15_i32_128 dim 1 : vector<16x256xf32>, i32 -> vector<16x256xf32>
    %c2_129 = arith.constant 2 : index
    %c0_130 = arith.constant 0 : index
    %c0_131 = arith.constant 0 : index
    %220 = vector.load %arg2[%c2_129, %c0_130, %c0_131] : memref<9x1x256xf32, #tpu.memory_space<vmem>>, vector<1x1x256xf32>
    %221 = vector.shape_cast %220 : vector<1x1x256xf32> to vector<1x256xf32>
    %222 = vector.broadcast %221 : vector<1x256xf32> to vector<16x256xf32>
    %223 = arith.mulf %219, %222 : vector<16x256xf32>
    %c1_i32_132 = arith.constant 1 : i32
    %224 = tpu.dynamic_rotate %208 by %c1_i32_132 dim 1 : vector<16x256xf32>, i32 -> vector<16x256xf32>
    %c3_133 = arith.constant 3 : index
    %c0_134 = arith.constant 0 : index
    %c0_135 = arith.constant 0 : index
    %225 = vector.load %arg2[%c3_133, %c0_134, %c0_135] : memref<9x1x256xf32, #tpu.memory_space<vmem>>, vector<1x1x256xf32>
    %226 = vector.shape_cast %225 : vector<1x1x256xf32> to vector<1x256xf32>
    %227 = vector.broadcast %226 : vector<1x256xf32> to vector<16x256xf32>
    %228 = arith.mulf %224, %227 : vector<16x256xf32>
    %c255_i32_136 = arith.constant 255 : i32
    %229 = tpu.dynamic_rotate %208 by %c255_i32_136 dim 1 : vector<16x256xf32>, i32 -> vector<16x256xf32>
    %c5_137 = arith.constant 5 : index
    %c0_138 = arith.constant 0 : index
    %c0_139 = arith.constant 0 : index
    %230 = vector.load %arg2[%c5_137, %c0_138, %c0_139] : memref<9x1x256xf32, #tpu.memory_space<vmem>>, vector<1x1x256xf32>
    %231 = vector.shape_cast %230 : vector<1x1x256xf32> to vector<1x256xf32>
    %232 = vector.broadcast %231 : vector<1x256xf32> to vector<16x256xf32>
    %233 = arith.mulf %229, %232 : vector<16x256xf32>
    %c241_i32_140 = arith.constant 241 : i32
    %234 = tpu.dynamic_rotate %208 by %c241_i32_140 dim 1 : vector<16x256xf32>, i32 -> vector<16x256xf32>
    %c6_141 = arith.constant 6 : index
    %c0_142 = arith.constant 0 : index
    %c0_143 = arith.constant 0 : index
    %235 = vector.load %arg2[%c6_141, %c0_142, %c0_143] : memref<9x1x256xf32, #tpu.memory_space<vmem>>, vector<1x1x256xf32>
    %236 = vector.shape_cast %235 : vector<1x1x256xf32> to vector<1x256xf32>
    %237 = vector.broadcast %236 : vector<1x256xf32> to vector<16x256xf32>
    %238 = arith.mulf %234, %237 : vector<16x256xf32>
    %c240_i32_144 = arith.constant 240 : i32
    %239 = tpu.dynamic_rotate %208 by %c240_i32_144 dim 1 : vector<16x256xf32>, i32 -> vector<16x256xf32>
    %c7_145 = arith.constant 7 : index
    %c0_146 = arith.constant 0 : index
    %c0_147 = arith.constant 0 : index
    %240 = vector.load %arg2[%c7_145, %c0_146, %c0_147] : memref<9x1x256xf32, #tpu.memory_space<vmem>>, vector<1x1x256xf32>
    %241 = vector.shape_cast %240 : vector<1x1x256xf32> to vector<1x256xf32>
    %242 = vector.broadcast %241 : vector<1x256xf32> to vector<16x256xf32>
    %243 = arith.mulf %239, %242 : vector<16x256xf32>
    %c239_i32_148 = arith.constant 239 : i32
    %244 = tpu.dynamic_rotate %208 by %c239_i32_148 dim 1 : vector<16x256xf32>, i32 -> vector<16x256xf32>
    %c8_149 = arith.constant 8 : index
    %c0_150 = arith.constant 0 : index
    %c0_151 = arith.constant 0 : index
    %245 = vector.load %arg2[%c8_149, %c0_150, %c0_151] : memref<9x1x256xf32, #tpu.memory_space<vmem>>, vector<1x1x256xf32>
    %246 = vector.shape_cast %245 : vector<1x1x256xf32> to vector<1x256xf32>
    %247 = vector.broadcast %246 : vector<1x256xf32> to vector<16x256xf32>
    %248 = arith.mulf %244, %247 : vector<16x256xf32>
    %249 = tpu.concatenate %213, %218, %223, %228, %208, %233, %238, %243, %248 in 0 : vector<16x256xf32>, vector<16x256xf32>, vector<16x256xf32>, vector<16x256xf32>, vector<16x256xf32>, vector<16x256xf32>, vector<16x256xf32>, vector<16x256xf32>, vector<16x256xf32> -> vector<144x256xf32>
    %c0_152 = arith.constant 0 : index
    %c0_153 = arith.constant 0 : index
    %250 = vector.load %arg20[%c0_152, %c0_153] : memref<16x144xf32, #tpu.memory_space<vmem>>, vector<16x144xf32>
    %cst_154 = arith.constant dense<0.000000e+00> : vector<16x256xf32>
    %251 = tpu.matmul %250, %249, %cst_154 {dimension_numbers = #tpu.dot_dimension_numbers<[1], [0], [0], [1], [0, 0, 1, 1], [], []>} : vector<16x144xf32>, vector<144x256xf32>, vector<16x256xf32> -> vector<16x256xf32>
    %c0_155 = arith.constant 0 : index
    %c0_156 = arith.constant 0 : index
    %252 = vector.load %arg21[%c0_155, %c0_156] : memref<16x1xf32, #tpu.memory_space<vmem>>, vector<16x1xf32>
    %253 = vector.broadcast %252 : vector<16x1xf32> to vector<16x256xf32>
    %254 = arith.addf %251, %253 : vector<16x256xf32>
    %c0_157 = arith.constant 0 : index
    %c0_158 = arith.constant 0 : index
    %255 = vector.load %arg5[%c0_157, %c0_158] : memref<16x16xf32, #tpu.memory_space<vmem>>, vector<16x16xf32>
    %cst_159 = arith.constant dense<0.000000e+00> : vector<16x256xf32>
    %256 = tpu.matmul %255, %254, %cst_159 {dimension_numbers = #tpu.dot_dimension_numbers<[1], [0], [0], [1], [0, 0, 1, 1], [], []>} : vector<16x16xf32>, vector<16x256xf32>, vector<16x256xf32> -> vector<16x256xf32>
    %cst_160 = arith.constant dense<0.000000e+00> : vector<16xf32>
    %257 = vector.multi_reduction <add>, %256, %cst_160 [1] : vector<16x256xf32> to vector<16xf32>
    %258 = vector.shape_cast %257 : vector<16xf32> to vector<16x1xf32>
    %cst_161 = arith.constant 9.765625E-4 : f32
    %259 = vector.broadcast %cst_161 : f32 to vector<16x1xf32>
    %260 = arith.mulf %258, %259 : vector<16x1xf32>
    %261 = vector.broadcast %260 : vector<16x1xf32> to vector<16x256xf32>
    %262 = arith.subf %254, %261 : vector<16x256xf32>
    %263 = arith.mulf %262, %262 : vector<16x256xf32>
    %cst_162 = arith.constant dense<0.000000e+00> : vector<16x256xf32>
    %264 = tpu.matmul %255, %263, %cst_162 {dimension_numbers = #tpu.dot_dimension_numbers<[1], [0], [0], [1], [0, 0, 1, 1], [], []>} : vector<16x16xf32>, vector<16x256xf32>, vector<16x256xf32> -> vector<16x256xf32>
    %cst_163 = arith.constant dense<0.000000e+00> : vector<16xf32>
    %265 = vector.multi_reduction <add>, %264, %cst_163 [1] : vector<16x256xf32> to vector<16xf32>
    %266 = vector.shape_cast %265 : vector<16xf32> to vector<16x1xf32>
    %cst_164 = arith.constant 9.765625E-4 : f32
    %267 = vector.broadcast %cst_164 : f32 to vector<16x1xf32>
    %268 = arith.mulf %266, %267 : vector<16x1xf32>
    %cst_165 = arith.constant 9.99999974E-6 : f32
    %269 = vector.broadcast %cst_165 : f32 to vector<16x1xf32>
    %270 = arith.addf %268, %269 : vector<16x1xf32>
    %271 = math.rsqrt %270 : vector<16x1xf32>
    %272 = vector.broadcast %271 : vector<16x1xf32> to vector<16x256xf32>
    %273 = arith.mulf %262, %272 : vector<16x256xf32>
    %c0_166 = arith.constant 0 : index
    %c0_167 = arith.constant 0 : index
    %274 = vector.load %arg22[%c0_166, %c0_167] : memref<16x1xf32, #tpu.memory_space<vmem>>, vector<16x1xf32>
    %275 = vector.broadcast %274 : vector<16x1xf32> to vector<16x256xf32>
    %276 = arith.mulf %273, %275 : vector<16x256xf32>
    %c0_168 = arith.constant 0 : index
    %c0_169 = arith.constant 0 : index
    %277 = vector.load %arg23[%c0_168, %c0_169] : memref<16x1xf32, #tpu.memory_space<vmem>>, vector<16x1xf32>
    %278 = vector.broadcast %277 : vector<16x1xf32> to vector<16x256xf32>
    %279 = arith.addf %276, %278 : vector<16x256xf32>
    %c0_170 = arith.constant 0 : index
    %c0_171 = arith.constant 0 : index
    %c0_172 = arith.constant 0 : index
    %280 = vector.load %arg24[%c0_170, %c0_171, %c0_172] : memref<1x16x1xf32, #tpu.memory_space<vmem>>, vector<1x16x1xf32>
    %281 = vector.shape_cast %280 : vector<1x16x1xf32> to vector<16x1xf32>
    %cst_173 = arith.constant 1.000000e+00 : f32
    %282 = vector.broadcast %cst_173 : f32 to vector<16x1xf32>
    %283 = arith.addf %282, %281 : vector<16x1xf32>
    %284 = vector.broadcast %283 : vector<16x1xf32> to vector<16x256xf32>
    %285 = arith.mulf %279, %284 : vector<16x256xf32>
    %c0_174 = arith.constant 0 : index
    %c0_175 = arith.constant 0 : index
    %c0_176 = arith.constant 0 : index
    %286 = vector.load %arg25[%c0_174, %c0_175, %c0_176] : memref<1x16x1xf32, #tpu.memory_space<vmem>>, vector<1x16x1xf32>
    %287 = vector.shape_cast %286 : vector<1x16x1xf32> to vector<16x1xf32>
    %288 = vector.broadcast %287 : vector<16x1xf32> to vector<16x256xf32>
    %289 = arith.addf %285, %288 : vector<16x256xf32>
    %cst_177 = arith.constant 5.000000e-01 : f32
    %290 = vector.broadcast %cst_177 : f32 to vector<16x256xf32>
    %291 = arith.mulf %290, %289 : vector<16x256xf32>
    %292 = math.tanh %291 : vector<16x256xf32>
    %cst_178 = arith.constant 5.000000e-01 : f32
    %293 = vector.broadcast %cst_178 : f32 to vector<16x256xf32>
    %294 = arith.mulf %293, %292 : vector<16x256xf32>
    %cst_179 = arith.constant 5.000000e-01 : f32
    %295 = vector.broadcast %cst_179 : f32 to vector<16x256xf32>
    %296 = arith.addf %294, %295 : vector<16x256xf32>
    %297 = arith.mulf %289, %296 : vector<16x256xf32>
    %c17_i32_180 = arith.constant 17 : i32
    %298 = tpu.dynamic_rotate %297 by %c17_i32_180 dim 1 : vector<16x256xf32>, i32 -> vector<16x256xf32>
    %c0_181 = arith.constant 0 : index
    %c0_182 = arith.constant 0 : index
    %c0_183 = arith.constant 0 : index
    %299 = vector.load %arg2[%c0_181, %c0_182, %c0_183] : memref<9x1x256xf32, #tpu.memory_space<vmem>>, vector<1x1x256xf32>
    %300 = vector.shape_cast %299 : vector<1x1x256xf32> to vector<1x256xf32>
    %301 = vector.broadcast %300 : vector<1x256xf32> to vector<16x256xf32>
    %302 = arith.mulf %298, %301 : vector<16x256xf32>
    %c16_i32_184 = arith.constant 16 : i32
    %303 = tpu.dynamic_rotate %297 by %c16_i32_184 dim 1 : vector<16x256xf32>, i32 -> vector<16x256xf32>
    %c1_185 = arith.constant 1 : index
    %c0_186 = arith.constant 0 : index
    %c0_187 = arith.constant 0 : index
    %304 = vector.load %arg2[%c1_185, %c0_186, %c0_187] : memref<9x1x256xf32, #tpu.memory_space<vmem>>, vector<1x1x256xf32>
    %305 = vector.shape_cast %304 : vector<1x1x256xf32> to vector<1x256xf32>
    %306 = vector.broadcast %305 : vector<1x256xf32> to vector<16x256xf32>
    %307 = arith.mulf %303, %306 : vector<16x256xf32>
    %c15_i32_188 = arith.constant 15 : i32
    %308 = tpu.dynamic_rotate %297 by %c15_i32_188 dim 1 : vector<16x256xf32>, i32 -> vector<16x256xf32>
    %c2_189 = arith.constant 2 : index
    %c0_190 = arith.constant 0 : index
    %c0_191 = arith.constant 0 : index
    %309 = vector.load %arg2[%c2_189, %c0_190, %c0_191] : memref<9x1x256xf32, #tpu.memory_space<vmem>>, vector<1x1x256xf32>
    %310 = vector.shape_cast %309 : vector<1x1x256xf32> to vector<1x256xf32>
    %311 = vector.broadcast %310 : vector<1x256xf32> to vector<16x256xf32>
    %312 = arith.mulf %308, %311 : vector<16x256xf32>
    %c1_i32_192 = arith.constant 1 : i32
    %313 = tpu.dynamic_rotate %297 by %c1_i32_192 dim 1 : vector<16x256xf32>, i32 -> vector<16x256xf32>
    %c3_193 = arith.constant 3 : index
    %c0_194 = arith.constant 0 : index
    %c0_195 = arith.constant 0 : index
    %314 = vector.load %arg2[%c3_193, %c0_194, %c0_195] : memref<9x1x256xf32, #tpu.memory_space<vmem>>, vector<1x1x256xf32>
    %315 = vector.shape_cast %314 : vector<1x1x256xf32> to vector<1x256xf32>
    %316 = vector.broadcast %315 : vector<1x256xf32> to vector<16x256xf32>
    %317 = arith.mulf %313, %316 : vector<16x256xf32>
    %c255_i32_196 = arith.constant 255 : i32
    %318 = tpu.dynamic_rotate %297 by %c255_i32_196 dim 1 : vector<16x256xf32>, i32 -> vector<16x256xf32>
    %c5_197 = arith.constant 5 : index
    %c0_198 = arith.constant 0 : index
    %c0_199 = arith.constant 0 : index
    %319 = vector.load %arg2[%c5_197, %c0_198, %c0_199] : memref<9x1x256xf32, #tpu.memory_space<vmem>>, vector<1x1x256xf32>
    %320 = vector.shape_cast %319 : vector<1x1x256xf32> to vector<1x256xf32>
    %321 = vector.broadcast %320 : vector<1x256xf32> to vector<16x256xf32>
    %322 = arith.mulf %318, %321 : vector<16x256xf32>
    %c241_i32_200 = arith.constant 241 : i32
    %323 = tpu.dynamic_rotate %297 by %c241_i32_200 dim 1 : vector<16x256xf32>, i32 -> vector<16x256xf32>
    %c6_201 = arith.constant 6 : index
    %c0_202 = arith.constant 0 : index
    %c0_203 = arith.constant 0 : index
    %324 = vector.load %arg2[%c6_201, %c0_202, %c0_203] : memref<9x1x256xf32, #tpu.memory_space<vmem>>, vector<1x1x256xf32>
    %325 = vector.shape_cast %324 : vector<1x1x256xf32> to vector<1x256xf32>
    %326 = vector.broadcast %325 : vector<1x256xf32> to vector<16x256xf32>
    %327 = arith.mulf %323, %326 : vector<16x256xf32>
    %c240_i32_204 = arith.constant 240 : i32
    %328 = tpu.dynamic_rotate %297 by %c240_i32_204 dim 1 : vector<16x256xf32>, i32 -> vector<16x256xf32>
    %c7_205 = arith.constant 7 : index
    %c0_206 = arith.constant 0 : index
    %c0_207 = arith.constant 0 : index
    %329 = vector.load %arg2[%c7_205, %c0_206, %c0_207] : memref<9x1x256xf32, #tpu.memory_space<vmem>>, vector<1x1x256xf32>
    %330 = vector.shape_cast %329 : vector<1x1x256xf32> to vector<1x256xf32>
    %331 = vector.broadcast %330 : vector<1x256xf32> to vector<16x256xf32>
    %332 = arith.mulf %328, %331 : vector<16x256xf32>
    %c239_i32_208 = arith.constant 239 : i32
    %333 = tpu.dynamic_rotate %297 by %c239_i32_208 dim 1 : vector<16x256xf32>, i32 -> vector<16x256xf32>
    %c8_209 = arith.constant 8 : index
    %c0_210 = arith.constant 0 : index
    %c0_211 = arith.constant 0 : index
    %334 = vector.load %arg2[%c8_209, %c0_210, %c0_211] : memref<9x1x256xf32, #tpu.memory_space<vmem>>, vector<1x1x256xf32>
    %335 = vector.shape_cast %334 : vector<1x1x256xf32> to vector<1x256xf32>
    %336 = vector.broadcast %335 : vector<1x256xf32> to vector<16x256xf32>
    %337 = arith.mulf %333, %336 : vector<16x256xf32>
    %338 = tpu.concatenate %302, %307, %312, %317, %297, %322, %327, %332, %337 in 0 : vector<16x256xf32>, vector<16x256xf32>, vector<16x256xf32>, vector<16x256xf32>, vector<16x256xf32>, vector<16x256xf32>, vector<16x256xf32>, vector<16x256xf32>, vector<16x256xf32> -> vector<144x256xf32>
    %c0_212 = arith.constant 0 : index
    %c0_213 = arith.constant 0 : index
    %339 = vector.load %arg26[%c0_212, %c0_213] : memref<16x144xf32, #tpu.memory_space<vmem>>, vector<16x144xf32>
    %cst_214 = arith.constant dense<0.000000e+00> : vector<16x256xf32>
    %340 = tpu.matmul %339, %338, %cst_214 {dimension_numbers = #tpu.dot_dimension_numbers<[1], [0], [0], [1], [0, 0, 1, 1], [], []>} : vector<16x144xf32>, vector<144x256xf32>, vector<16x256xf32> -> vector<16x256xf32>
    %c0_215 = arith.constant 0 : index
    %c0_216 = arith.constant 0 : index
    %341 = vector.load %arg27[%c0_215, %c0_216] : memref<16x1xf32, #tpu.memory_space<vmem>>, vector<16x1xf32>
    %342 = vector.broadcast %341 : vector<16x1xf32> to vector<16x256xf32>
    %343 = arith.addf %340, %342 : vector<16x256xf32>
    %344 = arith.addf %343, %175 : vector<16x256xf32>
    %c0_217 = arith.constant 0 : index
    %c0_218 = arith.constant 0 : index
    %345 = vector.load %arg3[%c0_217, %c0_218] : memref<256x64xf32, #tpu.memory_space<vmem>>, vector<256x64xf32>
    %cst_219 = arith.constant dense<0.000000e+00> : vector<16x64xf32>
    %346 = tpu.matmul %344, %345, %cst_219 {dimension_numbers = #tpu.dot_dimension_numbers<[1], [0], [0], [1], [0, 0, 1, 1], [], []>} : vector<16x256xf32>, vector<256x64xf32>, vector<16x64xf32> -> vector<16x64xf32>
    %c0_220 = arith.constant 0 : index
    %c0_221 = arith.constant 0 : index
    %c0_222 = arith.constant 0 : index
    %347 = vector.load %arg28[%c0_220, %c0_221, %c0_222] : memref<1x16x64xf32, #tpu.memory_space<vmem>>, vector<1x16x64xf32>
    %348 = vector.shape_cast %347 : vector<1x16x64xf32> to vector<16x64xf32>
    %349 = vector.shape_cast %346 : vector<16x64xf32> to vector<1x16x64xf32>
    tpu.vector_store %arg28[%c0_220, %c0_221, %c0_222], %349 {strides = array<i32>} : memref<1x16x64xf32, #tpu.memory_space<vmem>>, vector<1x16x64xf32>,
    return
  }
  func.func @transform_0(%arg0: i32) -> (i32, i32, i32) {
    %c0_i32 = arith.constant 0 : i32
    %c0_i32_0 = arith.constant 0 : i32
    %c0_i32_1 = arith.constant 0 : i32
    return %arg0, %c0_i32, %c0_i32_0 : i32, i32, i32
  }
  func.func @transform_1(%arg0: i32) -> (i32, i32, i32) {
    %c0_i32 = arith.constant 0 : i32
    %c0_i32_0 = arith.constant 0 : i32
    %c0_i32_1 = arith.constant 0 : i32
    %c0_i32_2 = arith.constant 0 : i32
    return %c0_i32, %c0_i32_0, %c0_i32_1 : i32, i32, i32
  }
  func.func @transform_2(%arg0: i32) -> (i32, i32) {
    %c0_i32 = arith.constant 0 : i32
    %c0_i32_0 = arith.constant 0 : i32
    %c0_i32_1 = arith.constant 0 : i32
    return %c0_i32, %c0_i32_0 : i32, i32
  }
  func.func @transform_3(%arg0: i32) -> (i32, i32) {
    %c0_i32 = arith.constant 0 : i32
    %c0_i32_0 = arith.constant 0 : i32
    %c0_i32_1 = arith.constant 0 : i32
    return %c0_i32, %c0_i32_0 : i32, i32
  }
  func.func @transform_4(%arg0: i32) -> (i32, i32) {
    %c0_i32 = arith.constant 0 : i32
    %c0_i32_0 = arith.constant 0 : i32
    %c0_i32_1 = arith.constant 0 : i32
    return %c0_i32, %c0_i32_0 : i32, i32
  }
  func.func @transform_5(%arg0: i32) -> (i32, i32) {
    %c0_i32 = arith.constant 0 : i32
    %c0_i32_0 = arith.constant 0 : i32
    %c0_i32_1 = arith.constant 0 : i32
    return %c0_i32, %c0_i32_0 : i32, i32
  }
  func.func @transform_6(%arg0: i32) -> (i32, i32) {
    %c0_i32 = arith.constant 0 : i32
    %c0_i32_0 = arith.constant 0 : i32
    %c0_i32_1 = arith.constant 0 : i32
    return %c0_i32, %c0_i32_0 : i32, i32
  }
  func.func @transform_7(%arg0: i32) -> (i32, i32) {
    %c0_i32 = arith.constant 0 : i32
    %c0_i32_0 = arith.constant 0 : i32
    %c0_i32_1 = arith.constant 0 : i32
    return %c0_i32, %c0_i32_0 : i32, i32
  }
  func.func @transform_8(%arg0: i32) -> (i32, i32) {
    %c0_i32 = arith.constant 0 : i32
    %c0_i32_0 = arith.constant 0 : i32
    %c0_i32_1 = arith.constant 0 : i32
    return %c0_i32, %c0_i32_0 : i32, i32
  }
  func.func @transform_9(%arg0: i32) -> (i32, i32) {
    %c0_i32 = arith.constant 0 : i32
    %c0_i32_0 = arith.constant 0 : i32
    %c0_i32_1 = arith.constant 0 : i32
    return %c0_i32, %c0_i32_0 : i32, i32
  }
  func.func @transform_10(%arg0: i32) -> (i32, i32) {
    %c0_i32 = arith.constant 0 : i32
    %c0_i32_0 = arith.constant 0 : i32
    %c0_i32_1 = arith.constant 0 : i32
    return %c0_i32, %c0_i32_0 : i32, i32
  }
  func.func @transform_11(%arg0: i32) -> (i32, i32, i32) {
    %c0_i32 = arith.constant 0 : i32
    %c0_i32_0 = arith.constant 0 : i32
    %c0_i32_1 = arith.constant 0 : i32
    return %arg0, %c0_i32, %c0_i32_0 : i32, i32, i32
  }
  func.func @transform_12(%arg0: i32) -> (i32, i32, i32) {
    %c0_i32 = arith.constant 0 : i32
    %c0_i32_0 = arith.constant 0 : i32
    %c0_i32_1 = arith.constant 0 : i32
    return %arg0, %c0_i32, %c0_i32_0 : i32, i32, i32
  }
  func.func @transform_13(%arg0: i32) -> (i32, i32) {
    %c0_i32 = arith.constant 0 : i32
    %c0_i32_0 = arith.constant 0 : i32
    %c0_i32_1 = arith.constant 0 : i32
    return %c0_i32, %c0_i32_0 : i32, i32
  }
  func.func @transform_14(%arg0: i32) -> (i32, i32) {
    %c0_i32 = arith.constant 0 : i32
    %c0_i32_0 = arith.constant 0 : i32
    %c0_i32_1 = arith.constant 0 : i32
    return %c0_i32, %c0_i32_0 : i32, i32
  }
  func.func @transform_15(%arg0: i32) -> (i32, i32) {
    %c0_i32 = arith.constant 0 : i32
    %c0_i32_0 = arith.constant 0 : i32
    %c0_i32_1 = arith.constant 0 : i32
    return %c0_i32, %c0_i32_0 : i32, i32
  }
  func.func @transform_16(%arg0: i32) -> (i32, i32) {
    %c0_i32 = arith.constant 0 : i32
    %c0_i32_0 = arith.constant 0 : i32
    %c0_i32_1 = arith.constant 0 : i32
    return %c0_i32, %c0_i32_0 : i32, i32
  }
  func.func @transform_17(%arg0: i32) -> (i32, i32) {
    %c0_i32 = arith.constant 0 : i32
    %c0_i32_0 = arith.constant 0 : i32
    %c0_i32_1 = arith.constant 0 : i32
    return %c0_i32, %c0_i32_0 : i32, i32
  }
  func.func @transform_18(%arg0: i32) -> (i32, i32) {
    %c0_i32 = arith.constant 0 : i32
    %c0_i32_0 = arith.constant 0 : i32
    %c0_i32_1 = arith.constant 0 : i32
    return %c0_i32, %c0_i32_0 : i32, i32
  }
  func.func @transform_19(%arg0: i32) -> (i32, i32) {
    %c0_i32 = arith.constant 0 : i32
    %c0_i32_0 = arith.constant 0 : i32
    %c0_i32_1 = arith.constant 0 : i32
    return %c0_i32, %c0_i32_0 : i32, i32
  }
  func.func @transform_20(%arg0: i32) -> (i32, i32) {
    %c0_i32 = arith.constant 0 : i32
    %c0_i32_0 = arith.constant 0 : i32
    %c0_i32_1 = arith.constant 0 : i32
    return %c0_i32, %c0_i32_0 : i32, i32
  }
  func.func @transform_21(%arg0: i32) -> (i32, i32) {
    %c0_i32 = arith.constant 0 : i32
    %c0_i32_0 = arith.constant 0 : i32
    %c0_i32_1 = arith.constant 0 : i32
    return %c0_i32, %c0_i32_0 : i32, i32
  }
  func.func @transform_22(%arg0: i32) -> (i32, i32) {
    %c0_i32 = arith.constant 0 : i32
    %c0_i32_0 = arith.constant 0 : i32
    %c0_i32_1 = arith.constant 0 : i32
    return %c0_i32, %c0_i32_0 : i32, i32
  }
  func.func @transform_23(%arg0: i32) -> (i32, i32, i32) {
    %c0_i32 = arith.constant 0 : i32
    %c0_i32_0 = arith.constant 0 : i32
    %c0_i32_1 = arith.constant 0 : i32
    return %arg0, %c0_i32, %c0_i32_0 : i32, i32, i32
  }
  func.func @transform_24(%arg0: i32) -> (i32, i32, i32) {
    %c0_i32 = arith.constant 0 : i32
    %c0_i32_0 = arith.constant 0 : i32
    %c0_i32_1 = arith.constant 0 : i32
    return %arg0, %c0_i32, %c0_i32_0 : i32, i32, i32
  }
  func.func @transform_25(%arg0: i32) -> (i32, i32) {
    %c0_i32 = arith.constant 0 : i32
    %c0_i32_0 = arith.constant 0 : i32
    %c0_i32_1 = arith.constant 0 : i32
    return %c0_i32, %c0_i32_0 : i32, i32
  }
  func.func @transform_26(%arg0: i32) -> (i32, i32) {
    %c0_i32 = arith.constant 0 : i32
    %c0_i32_0 = arith.constant 0 : i32
    %c0_i32_1 = arith.constant 0 : i32
    return %c0_i32, %c0_i32_0 : i32, i32
  }
  func.func @transform_27(%arg0: i32) -> (i32, i32, i32) {
    %c0_i32 = arith.constant 0 : i32
    %c0_i32_0 = arith.constant 0 : i32
    %c0_i32_1 = arith.constant 0 : i32
    return %arg0, %c0_i32, %c0_i32_0 : i32, i32, i32
  }
}

</mosaic_0001>

<bundles_post_ra>
// kernel: _unet_down_pallas.1
= control target key start
LH: loop header
LB: loop body
LE: loop exit
PB: predicated region body
PF: predicated region fallthrough
CT: control target
= control target key end

     0   :  { %s4713_s0 = inlined_call_operand.vmem [shape: f32[2,8,256], index: 0, kind: input, shape index: {}]   ;;  %s4714_s1 = inlined_call_operand.vmem [shape: f32[9,1,256], index: 1, kind: input, shape index: {}]   ;;  %s4715_s2 = inlined_call_operand.vmem [shape: f32[256,64], index: 2, kind: input, shape index: {}]   ;;  %s4716_s3 = inlined_call_operand.vmem [shape: f32[8,8], index: 3, kind: input, shape index: {}]   ;;  %s4717_s4 = inlined_call_operand.vmem [shape: f32[16,16], index: 4, kind: input, shape index: {}]   ;;  %s4718_s5 = inlined_call_operand.vmem [shape: f32[8,1], index: 5, kind: input, shape index: {}]   ;;  %s4719_s6 = inlined_call_operand.vmem [shape: f32[8,1], index: 6, kind: input, shape index: {}]   ;;  %s4720_s7 = inlined_call_operand.vmem [shape: f32[16,72], index: 7, kind: input, shape index: {}]   ;;  %s4721_s8 = inlined_call_operand.vmem [shape: f32[16,1], index: 8, kind: input, shape index: {}]   ;;  %s4722_s9 = inlined_call_operand.vmem [shape: f32[16,1], index: 9, kind: input, shape index: {}]   ;;  %s4723_s10 = inlined_call_operand.vmem [shape: f32[16,1], index: 10, kind: input, shape index: {}]   ;;  %s4724_s11 = inlined_call_operand.vmem [shape: f32[2,16,1], index: 11, kind: input, shape index: {}]   ;;  %s4725_s12 = inlined_call_operand.vmem [shape: f32[2,16,1], index: 12, kind: input, shape index: {}]   ;;  %s4726_s13 = inlined_call_operand.vmem [shape: f32[16,144], index: 13, kind: input, shape index: {}]   ;;  %s4727_s14 = inlined_call_operand.vmem [shape: f32[16,1], index: 14, kind: input, shape index: {}]   ;;  %s4728_s15 = inlined_call_operand.vmem [shape: f32[16,8], index: 15, kind: input, shape index: {}]   ;;  %s4729_s16 = inlined_call_operand.vmem [shape: f32[16,1], index: 16, kind: input, shape index: {}]   ;;  %s4730_s17 = inlined_call_operand.vmem [shape: f32[16,1], index: 17, kind: input, shape index: {}]   ;;  %s4731_s18 = inlined_call_operand.vmem [shape: f32[16,1], index: 18, kind: input, shape index: {}]   ;;  %s4732_s19 = inlined_call_operand.vmem [shape: f32[16,144], index: 19, kind: input, shape index: {}]   ;;  %s4733_s20 = inlined_call_operand.vmem [shape: f32[16,1], index: 20, kind: input, shape index: {}]   ;;  %s4734_s21 = inlined_call_operand.vmem [shape: f32[16,1], index: 21, kind: input, shape index: {}]   ;;  %s4735_s22 = inlined_call_operand.vmem [shape: f32[16,1], index: 22, kind: input, shape index: {}]   ;;  %s4736_s23 = inlined_call_operand.vmem [shape: f32[2,16,1], index: 23, kind: input, shape index: {}]   ;;  %s4737_s24 = inlined_call_operand.vmem [shape: f32[2,16,1], index: 24, kind: input, shape index: {}]   ;;  %s4738_s25 = inlined_call_operand.vmem [shape: f32[16,144], index: 25, kind: input, shape index: {}]   ;;  %s4739_s26 = inlined_call_operand.vmem [shape: f32[16,1], index: 26, kind: input, shape index: {}]   ;;  %s4740_s27 = inlined_call_operand.vmem [shape: f32[2,16,64], index: 27, kind: output, shape index: {}]  }
   0x1   :  { %4771 = sst [smem:[#allocation3_spill]] %s4713_s0 }
   0x2   :  { %4772 = sst [smem:[#allocation4_spill]] %s4714_s1 }
   0x3   :  { %4773 = sst [smem:[#allocation5_spill]] %s4715_s2 }
   0x4   :  { %4774 = sst [smem:[#allocation6_spill]] %s4716_s3 }
   0x5   :  { %4775 = sst [smem:[#allocation7_spill]] %s4717_s4 }
   0x6   :  { %4776 = sst [smem:[#allocation8_spill]] %s4718_s5 }
   0x7   :  { %4777 = sst [smem:[#allocation9_spill]] %s4719_s6 }
   0x8   :  { %4778 = sst [smem:[#allocation10_spill]] %s4720_s7  ;;  %s3663_s7 = smov 0  }
   0x9   :  { %4779 = sst [smem:[#allocation11_spill]] %s4721_s8 }
   0xa   :  { %4780 = sst [smem:[#allocation12_spill]] %s4722_s9 }
   0xb   :  { %4781 = sst [smem:[#allocation13_spill]] %s4723_s10 }
   0xc   :  { %4782 = sst [smem:[#allocation14_spill]] %s4724_s11 }
   0xd   :  { %4783 = sst [smem:[#allocation15_spill]] %s4725_s12 }
   0xe   :  { %4784 = sst [smem:[#allocation16_spill]] %s4728_s15 }
   0xf   :  { %4785 = sst [smem:[#allocation17_spill]] %s4740_s27 }
  0x10 LB: > { %4786 = sst [smem:[#allocation2_spill]] %s3511_s7  ;;  %s3155_s4 = sadd.s32 4294967295, %s3511_s7   ;;  %s3511_s7 = sphi %s3663_s7, %s37_s7  }
  0x11   : > { %p3159_p0 = scmp.ge.s32.totalorder %s3511_s7, 1  ;;  %p777_p1 = scmp.lt.s32.totalorder %s3511_s7, 3 }
  0x13   : > { %p778_p2 = pnand %p3159_p0, %p777_p1 }
  0x14   : > { %p869_p3 = scmp.lt.s32.totalorder (!%p778_p2), %s3155_s4, 1  ;;  %v3513_v0 = vmov (!%p778_p2), 0.0   ;;  %s4787_s5 = sld [smem:[#allocation3_spill]] (!%p778_p2)  ;;  %vm915_vm0 = vcmask (!%p778_p2), 64512   ;;  %v3514_v14 = vmov (!%p778_p2), 0   ;;  %v1191_v45 = vlaneseq (!%p778_p2) }
  0x15   : > { %781 = sbr.rel (%p778_p2) target bundleno = 4950 (0x1356), region = 128  ;;  %1067 = vmatprep.mubr.f32.mxu1 (!%p778_p2), %v3513_v0  ;;  %986 = vmatprep.mubr.f32.mxu0 (!%p778_p2), %v3513_v0  ;;  %s4788_s29 = sld [smem:[#allocation6_spill]] (!%p778_p2)  ;;  %vm1378_vm9 = vcmask (!%p778_p2), 588800   ;;  %vm1464_vm10 = vcmask (!%p778_p2), 130048   ;;  %vm3049_vm11 = vcmask (!%p778_p2), 523264  }
  0x16   : > { %s4789_s11 = sld [smem:[#allocation8_spill]] (!%p778_p2)  ;;  %3459 = vset.pattern.permute.xlu1 (!%p778_p2), %v3514_v14  ;;  %3460 = vset.pattern.permute.xlu0 (!%p778_p2), %v3514_v14  ;;  %s4762_s30 = smov (!%p778_p2), 17   ;;  %v1199_v46 = vshrl.u32 (!%p778_p2), %v1191_v45, 7  ;;  %v3744_v48 = vand.u32 (!%p778_p2), 127, %v1191_v45 }
  0x17   : > { %s4791_s15 = sld [smem:[#allocation16_spill]] (!%p778_p2)  ;;  %s4760_s0 = smov (!%p778_p2), 16  }
  0x18   : > { %s4748_s10 = smov (!%p778_p2), 127   ;;  %s4758_s1 = smov (!%p778_p2), 15   ;;  %v3746_v49 = vsub.s32 (!%p778_p2), 0, %v1199_v46  ;;  %v3751_v51 = vsub.s32 (!%p778_p2), 1, %v1199_v46  ;;  %vm1193_vm1 = vcmp.lt.s32.totalorder (!%p778_p2), %v3744_v48, 17  ;;  %vm1214_vm2 = vcmp.lt.s32.totalorder (!%p778_p2), %v3744_v48, 16 }
  0x19   : > { %s4750_s6 = smov (!%p778_p2), 112   ;;  %vm1236_vm3 = vcmp.lt.s32.totalorder (!%p778_p2), %v3744_v48, 15  ;;  %vm1258_vm4 = vcmp.lt.s32.totalorder (!%p778_p2), %v3744_v48, 1  ;;  %vm1280_vm5 = vcmp.lt.s32.totalorder (!%p778_p2), %v3744_v48, 127  ;;  %vm1302_vm6 = vcmp.lt.s32.totalorder (!%p778_p2), %v3744_v48, 113  ;;  %s4794_s2 = sld [smem:[#allocation10_spill]] (!%p778_p2) }
  0x1a   : > { %vm1324_vm7 = vcmp.lt.s32.totalorder (!%p778_p2), %v3744_v48, 112  ;;  %vm1346_vm8 = vcmp.lt.s32.totalorder (!%p778_p2), %v3744_v48, 111  ;;  %s4799_s12 = sld [smem:[#allocation15_spill]] (!%p778_p2)  ;;  %s4805_s9 = smov (!%p778_p2), 113   ;;  %v2842_v48 = vld [vmem:[%s4738_s25 + $0x18] sm:$0xff] (!%p778_p2) }
  0x1b   : > { %v999_v3 = vld [vmem:[%s4788_s29] sm:$0xff] (!%p778_p2)  ;;  %s4754_s29 = smov (!%p778_p2), 113   ;;  %s4807_s3 = smov (!%p778_p2), 111  }
  0x1c   : > { %s4812_s4 = smov (!%p869_p3, %s3155_s4), 1  ;;  %v1161_v13 = vld [vmem:[%s4789_s11] sm:$0xff]  ;;  %s4752_s11 = smov 111  }
  0x1d   : > { %s3673_s8 = sshll.u32 %s4812_s4, 4  ;;  %1164 = vperm.xlu1 %3459, %v1161_v13   ;;  %s4790_s4 = sld [smem:[#allocation9_spill]]  ;;  %v901_v41 = vld [vmem:[%s4791_s15] sm:$0xff]  ;;  %v902_v42 = vld [vmem:[%s4791_s15 + $0x8] sm:$0xff] }
  0x1e   : > { %s873_s28 = scalar_lea.vmem %s4787_s5, %s3673_s8  ;;  %s4792_s5 = sld [smem:[#allocation11_spill]] }
  0x1f   : > { %v900_v1 = vld [vmem:[%s873_s28 + $0x8] sm:$0xff]  ;;  %v899_v2 = vld [vmem:[%s873_s28] sm:$0xff]  ;;  %s4756_s28 = smov 1  }
  0x20   : > { %1003 = vmatprep.subr.mxu1 %v900_v1  ;;  %922 = vmatprep.subr.mxu0 %v900_v1 }
  0x21   : > { %1004 = vmatpush1.msra.mxu1 %v899_v2  ;;  %923 = vmatpush1.msra.mxu0 %v899_v2 }
  0x22   : > { %3174 = vmatmul.mubr.msk.f32.vlgmr.msra.gmra.mrb[0].mxu1 %vm915_vm0, %v999_v3  ;;  %3172 = vmatmul.mubr.msk.f32.vlgmr.msra.gmra.mrb[0].mxu0 %vm915_vm0, %v901_v41 }
  0x23   : > { %1146 = vmatprep.mubr.f32.mxu1 %v3513_v0  ;;  %v1169_v15 = vld [vmem:[%s4790_s4] sm:$0xff]  ;;  %992 = vmatprep.mubr.f32.mxu0 %v3513_v0 }
  0x24   : > { %1172 = vperm.xlu1 %3459, %v1169_v15   ;;  %v1366_v43 = vld [vmem:[%s4792_s5] sm:$0xff]  ;;  %v1367_v44 = vld [vmem:[%s4792_s5 + $0x8] sm:$0xff]  ;;  %s4803_s5 = smov 1  }
  0x26   : > { %3173 = vmatmul.mubr.msk.f32.gmra.mrb[2].mxu0 %vm915_vm0, %v902_v42 }
  0x27   : > { %1449 = vmatprep.mubr.f32.mxu0 %v3513_v0 }
  0x9c   : > { %v1165_v22 = vpop.permute.xlu1 %1164 }
  0xa3   : > { %v1173_v28 = vpop.permute.xlu1 %1172 }
  0xf5   : > { %v1069_v4 = vpop.f32.mrb[0].mxu1 }
  0xf6   : > { %v1071_v5 = vpop.f32.mrb[1].mxu1 }
  0xf7   : > { %v1074_v6 = vadd.f32 %v1071_v5, %v1069_v4 }
  0xf9   : > { %1075 = vadd.xlane.f32.xlu0 %v1074_v6 }
 0x186   : > { %v1076_v7 = vpop.xlane.xlu0 %1075 }
 0x187   : > { %v1077_v8 = vmul.f32 0.001953125, %v1076_v7 }
 0x189   : > { %v1078_v9 = vsub.f32 %v899_v2, %v1077_v8  ;;  %v1079_v10 = vsub.f32 %v900_v1, %v1077_v8 }
 0x18b   : > { %v1080_v11 = vmul.f32 %v1078_v9, %v1078_v9  ;;  %v1081_v12 = vmul.f32 %v1079_v10, %v1079_v10 }
 0x18d   : > { %1082 = vmatprep.subr.mxu1 %v1081_v12 }
 0x18e   : > { %1083 = vmatpush1.msra.mxu1 %v1080_v11 }
 0x18f   : > { %3175 = vmatmul.mubr.msk.f32.vlgmr.msra.gmra.mrb[2].mxu1 %vm915_vm0, %v999_v3 }
 0x190   : > { %1535 = vmatprep.mubr.f32.mxu1 %v3513_v0 }
 0x262   : > { %v1148_v16 = vpop.f32.mrb[2].mxu1 }
 0x263   : > { %v1150_v17 = vpop.f32.mrb[3].mxu1 }
 0x264   : > { %v1153_v18 = vadd.f32 %v1150_v17, %v1148_v16 }
 0x266   : > { %1154 = vadd.xlane.f32.xlu0 %v1153_v18 }
 0x2f3   : > { %v1155_v19 = vpop.xlane.xlu0 %1154 }
 0x2f4   : > { %v1156_v20 = vmul.f32 0.001953125, %v1155_v19 }
 0x2f6   : > { %v1157_v21 = vadd.f32 1e-05, %v1156_v20 }
 0x2f8   : > { %3461 = vrsqrt.f32 %v1157_v21 }
 0x302   : > { %v3462_v23 = vpop.eup %3461 }
 0x303   : > { %v1159_v24 = vmul.f32 %v3462_v23, %v1078_v9  ;;  %v1160_v25 = vmul.f32 %v3462_v23, %v1079_v10 }
 0x305   : > { %v1167_v26 = vmul.f32 %v1165_v22, %v1159_v24  ;;  %v1168_v27 = vmul.f32 %v1165_v22, %v1160_v25 }
 0x307   : > { %v1175_v29 = vadd.f32 %v1173_v28, %v1167_v26  ;;  %v1176_v30 = vadd.f32 %v1173_v28, %v1168_v27 }
 0x309   : > { %v1177_v31 = vmul.f32 0.5, %v1175_v29  ;;  %v1178_v32 = vmul.f32 0.5, %v1176_v30 }
 0x30b   : > { %3463 = vtanh.f32 %v1177_v31 }
 0x30c   : > { %3465 = vtanh.f32 %v1178_v32 }
 0x315   : > { %v3464_v33 = vpop.eup %3463 }
 0x316   : > { %v3466_v34 = vpop.eup %3465  ;;  %v1181_v35 = vmul.f32 0.5, %v3464_v33 }
 0x317   : > { %v1182_v36 = vmul.f32 0.5, %v3466_v34 }
 0x318   : > { %v1183_v37 = vadd.f32 0.5, %v1181_v35 }
 0x319   : > { %v1184_v38 = vadd.f32 0.5, %v1182_v36 }
 0x31a   : > { %v3692_v39 = vmul.f32 %v1183_v37, %v1175_v29 }
 0x31b   : > { %v3694_v40 = vmul.f32 %v1184_v38, %v1176_v30 }
 0x31c   : > { %1187 = vrot.lane.b32.xlu0 %v3692_v39, %s4762_s30 }
 0x31d   : > { %1189 = vrot.lane.b32.xlu1 %v3694_v40, %s4762_s30  ;;  %s4798_s30 = sld [smem:[#allocation14_spill]] }
 0x320   : > { %1256 = vrot.lane.b32.xlu0 %v3694_v40, %s4756_s28 }
 0x321   : > { %1210 = vrot.lane.b32.xlu1 %v3692_v39, %s4760_s0 }
 0x324   : > { %1278 = vrot.lane.b32.xlu0 %v3694_v40, %s4748_s10 }
 0x325   : > { %1212 = vrot.lane.b32.xlu1 %v3694_v40, %s4760_s0  ;;  %s4800_s0 = smov 17  }
 0x328   : > { %1300 = vrot.lane.b32.xlu0 %v3694_v40, %s4754_s29 }
 0x329   : > { %1232 = vrot.lane.b32.xlu1 %v3692_v39, %s4758_s1 }
 0x32c   : > { %1322 = vrot.lane.b32.xlu0 %v3694_v40, %s4750_s6 }
 0x32d   : > { %1234 = vrot.lane.b32.xlu1 %v3694_v40, %s4758_s1  ;;  %s4801_s1 = smov 16  }
 0x330   : > { %1344 = vrot.lane.b32.xlu0 %v3694_v40, %s4752_s11 }
 0x331   : > { %1254 = vrot.lane.b32.xlu1 %v3692_v39, %s4756_s28  ;;  %s4797_s28 = sld [smem:[#allocation13_spill]] }
 0x334   : > { %1375 = vperm.xlu0 %3460, %v1367_v44  }
 0x335   : > { %1276 = vrot.lane.b32.xlu1 %v3692_v39, %s4748_s10  ;;  %s4806_s10 = smov 112  }
 0x339   : > { %1298 = vrot.lane.b32.xlu1 %v3692_v39, %s4754_s29  ;;  %s4796_s29 = sld [smem:[#allocation12_spill]] }
 0x33d   : > { %1320 = vrot.lane.b32.xlu1 %v3692_v39, %s4750_s6  ;;  %s4795_s6 = sld [smem:[#allocation7_spill]] }
 0x341   : > { %1342 = vrot.lane.b32.xlu1 %v3692_v39, %s4752_s11  ;;  %s4793_s11 = sld [smem:[#allocation4_spill]] }
 0x345   : > { %1370 = vperm.xlu1 %3459, %v1366_v43  }
 0x347   : > { %v1196_v50 = vld [vmem:[%s4793_s11] sm:$0x3]  ;;  %v3176_v52 = vld [vmem:[%s4793_s11 + $0x2] sm:$0x3]  ;;  %v3177_v9 = vld [vmem:[%s4793_s11 + $0x4] sm:$0x3] }
 0x348   : > { %v3758_v55 = vrot.slane %v1196_v50, %v3746_v49  ;;  %v3761_v56 = vrot.slane %v1196_v50, %v3751_v51  ;;  %v3765_v57 = vrot.slane %v3176_v52, %v3746_v49  ;;  %v3768_v58 = vrot.slane %v3176_v52, %v3751_v51  ;;  %v3178_v10 = vld [vmem:[%s4793_s11 + $0x6] sm:$0x3]  ;;  %v3179_v17 = vld [vmem:[%s4793_s11 + $0xa] sm:$0x3]  ;;  %v3180_v37 = vld [vmem:[%s4793_s11 + $0xc] sm:$0x3] }
 0x349   : > { %v3790_v12 = vrot.slane %v3177_v9, %v3746_v49  ;;  %v3793_v14 = vrot.slane %v3177_v9, %v3751_v51  ;;  %v3797_v15 = vrot.slane %v3178_v10, %v3746_v49  ;;  %v3800_v16 = vrot.slane %v3178_v10, %v3751_v51  ;;  %v3181_v38 = vld [vmem:[%s4793_s11 + $0xe] sm:$0x3]  ;;  %v1364_v10 = vld [vmem:[%s4794_s2] sm:$0xff] }
 0x34a   : > { %v3815_v23 = vrot.slane %v3179_v17, %v3746_v49  ;;  %v3818_v24 = vrot.slane %v3179_v17, %v3751_v51  ;;  %v3840_v44 = vrot.slane %v3180_v37, %v3746_v49  ;;  %v3843_v46 = vrot.slane %v3180_v37, %v3751_v51  ;;  %v1657_v37 = vld [vmem:[%s4796_s29] sm:$0xff] }
 0x38e   : > { %v1188_v53 = vpop.permute.xlu0 %1187 }
 0x38f   : > { %v1190_v47 = vpop.permute.xlu1 %1189 }
 0x390   : > { %v1194_v59 = vsel %vm1193_vm1, %v1188_v53, %v1190_v47  ;;  %v1195_v60 = vsel %vm1193_vm1, %v1190_v47, %v1188_v53  ;;  %v3847_v47 = vrot.slane %v3181_v38, %v3746_v49 }
 0x391   : > { %v1208_v1 = vmul.f32 %v3758_v55, %v1195_v60  ;;  %v1209_v2 = vmul.f32 %v3761_v56, %v1194_v59 }
 0x392   : > { %v1257_v5 = vpop.permute.xlu0 %1256 }
 0x393   : > { %v1211_v54 = vpop.permute.xlu1 %1210 }
 0x396   : > { %v1279_v13 = vpop.permute.xlu0 %1278 }
 0x397   : > { %v1213_v61 = vpop.permute.xlu1 %1212 }
 0x398   : > { %v1215_v62 = vsel %vm1214_vm2, %v1211_v54, %v1213_v61  ;;  %v1216_v63 = vsel %vm1214_vm2, %v1213_v61, %v1211_v54 }
 0x399   : > { %v1230_v3 = vmul.f32 %v3765_v57, %v1216_v63  ;;  %v1231_v4 = vmul.f32 %v3768_v58, %v1215_v62 }
 0x39a   : > { %v1301_v29 = vpop.permute.xlu0 %1300 }
 0x39b   : > { %v3251_v6 = vpack.c.bf16 %v1230_v3, %v1208_v1  ;;  %v1233_v7 = vpop.permute.xlu1 %1232  ;;  %v3249_v8 = vpack.c.bf16 %v1231_v4, %v1209_v2 }
 0x39d   : > { %3250 = vmatprep.subr.bf16.mxu0 %v3249_v8 }
 0x39e   : > { %3252 = vmatpush1.bf16.msra.mxu0 %v3251_v6  ;;  %v1323_v45 = vpop.permute.xlu0 %1322 }
 0x39f   : > { %v1235_v11 = vpop.permute.xlu1 %1234 }
 0x3a0   : > { %v1237_v18 = vsel %vm1236_vm3, %v1233_v7, %v1235_v11  ;;  %v1238_v19 = vsel %vm1236_vm3, %v1235_v11, %v1233_v7 }
 0x3a1   : > { %v1252_v25 = vmul.f32 %v3790_v12, %v1238_v19  ;;  %v1253_v26 = vmul.f32 %v3793_v14, %v1237_v18 }
 0x3a2   : > { %v1345_v2 = vpop.permute.xlu0 %1344 }
 0x3a3   : > { %v1255_v20 = vpop.permute.xlu1 %1254 }
 0x3a4   : > { %v1259_v21 = vsel %vm1258_vm4, %v1255_v20, %v1257_v5  ;;  %v1260_v22 = vsel %vm1258_vm4, %v1257_v5, %v1255_v20 }
 0x3a5   : > { %v1274_v27 = vmul.f32 %v3797_v15, %v1260_v22  ;;  %v1275_v28 = vmul.f32 %v3800_v16, %v1259_v21 }
 0x3a7   : > { %v3255_v30 = vpack.c.bf16 %v1274_v27, %v1252_v25  ;;  %v1277_v31 = vpop.permute.xlu1 %1276  ;;  %v3253_v32 = vpack.c.bf16 %v1275_v28, %v1253_v26 }
 0x3a8   : > { %v1281_v33 = vsel %vm1280_vm5, %v1277_v31, %v1279_v13  ;;  %v1282_v34 = vsel %vm1280_vm5, %v1279_v13, %v1277_v31 }
 0x3a9   : > { %v1296_v35 = vmul.f32 %v3815_v23, %v1281_v33  ;;  %v1297_v36 = vmul.f32 %v3818_v24, %v1282_v34  ;;  %3254 = vmatprep.subr.bf16.mxu0 %v3253_v32 }
 0x3aa   : > { %3256 = vmatpush1.bf16.msra.mxu0 %v3255_v30  ;;  %v3898_v30 = vld [vmem:[%s4795_s6 + $0x8] sm:$0xff] }
 0x3ab   : > { %v3259_v41 = vpack.c.bf16 %v1296_v35, %v3692_v39  ;;  %v1299_v42 = vpop.permute.xlu1 %1298  ;;  %v3257_v43 = vpack.c.bf16 %v1297_v36, %v3694_v40  ;;  %v3850_v39 = vrot.slane %v3181_v38, %v3751_v51  ;;  %v3182_v40 = vld [vmem:[%s4793_s11 + $0x10] sm:$0x3]  ;;  %v1673_v38 = vld [vmem:[%s4797_s28] sm:$0xff]  ;;  %s4802_s11 = smov 15  }
 0x3ac   : > { %v1303_v50 = vsel %vm1302_vm6, %v1299_v42, %v1301_v29  ;;  %v1304_v52 = vsel %vm1302_vm6, %v1301_v29, %v1299_v42  ;;  %v3865_v60 = vrot.slane %v3182_v40, %v3751_v51  ;;  %v3872_v6 = vrot.slane %v3182_v40, %v3746_v49  ;;  %v1365_v49 = vld [vmem:[%s4794_s2 + $0x8] sm:$0xff]  ;;  %v3890_v29 = vld [vmem:[%s4795_s6] sm:$0xff]  ;;  %s878_s2 = scalar_lea.vmem %s4798_s30, %s3673_s8  ;;  %s883_s30 = scalar_lea.vmem %s4799_s12, %s3673_s8 }
 0x3ad   : > { %3258 = vmatprep.subr.bf16.mxu0 %v3257_v43  ;;  %v1318_v61 = vmul.f32 %v3840_v44, %v1303_v50  ;;  %v1319_v62 = vmul.f32 %v3843_v46, %v1304_v52  ;;  %v1690_v42 = vld [vmem:[%s878_s2 + $0x8] sm:$0xff]  ;;  %s888_s12 = scalar_lea.vmem %s4736_s23, %s3673_s8 }
 0x3ae   : > { %3260 = vmatpush1.bf16.msra.mxu0 %v3259_v41  ;;  %v1674_v41 = vld [vmem:[%s4797_s28 + $0x8] sm:$0xff]  ;;  %v1692_v40 = vadd.f32 1.0, %v1690_v42  ;;  %s4809_s28 = sld [smem:[#allocation17_spill]] }
 0x3af   : > { %v1321_v53 = vpop.permute.xlu1 %1320  ;;  %v1658_v43 = vld [vmem:[%s4796_s29 + $0x8] sm:$0xff]  ;;  %s4401_s29 = scalar_lea.vmem %s4737_s24, %s3673_s8 }
 0x3b0   : > { %v1325_v54 = vsel %vm1324_vm7, %v1321_v53, %v1323_v45  ;;  %v1326_v59 = vsel %vm1324_vm7, %v1323_v45, %v1321_v53  ;;  %v1689_v45 = vld [vmem:[%s878_s2] sm:$0xff]  ;;  %s4804_s2 = smov 127  }
 0x3b1   : > { %v1340_v63 = vmul.f32 %v3847_v47, %v1325_v54  ;;  %v1341_v1 = vmul.f32 %v3850_v39, %v1326_v59  ;;  %v1691_v50 = vadd.f32 1.0, %v1689_v45 }
 0x3b3   : > { %v3263_v3 = vpack.c.bf16 %v1340_v63, %v1318_v61  ;;  %v1343_v4 = vpop.permute.xlu1 %1342  ;;  %v3261_v5 = vpack.c.bf16 %v1341_v1, %v1319_v62  ;;  %v1376_v17 = vpop.permute.xlu0 %1375 }
 0x3b4   : > { %v1348_v7 = vsel %vm1346_vm8, %v1345_v2, %v1343_v4  ;;  %v1347_v51 = vsel %vm1346_vm8, %v1343_v4, %v1345_v2 }
 0x3b5   : > { %3262 = vmatprep.subr.bf16.mxu0 %v3261_v5  ;;  %v1363_v8 = vmul.f32 %v3865_v60, %v1348_v7  ;;  %v1362_v9 = vmul.f32 %v3872_v6, %v1347_v51 }
 0x3b6   : > { %3264 = vmatpush1.bf16.msra.mxu0 %v3263_v3 }
 0x3b7   : > { %1401 = vmatprep.subr.mxu0 %v1363_v8 }
 0x3ba   : > { %1402 = vmatpush1.msra.mxu0 %v1362_v9 }
 0x3bb   : > { %3183 = vmatmul.mubr.msk.f32.vlgmr.msra.gmra.mrb[4].mxu0 %vm1378_vm9, %v1364_v10 }
 0x3bc   : > { %1455 = vmatprep.mubr.f32.mxu0 %v3513_v0 }
 0x3bf   : > { %3184 = vmatmul.mubr.msk.f32.gmra.mrb[6].mxu0 %vm1378_vm9, %v1365_v49 }
 0x3c4   : > { %v1371_v19 = vpop.permute.xlu1 %1370 }
 0x48e   : > { %v1451_v11 = vpop.f32.mrb[4].mxu0 }
 0x48f   : > { %v1453_v13 = vpop.f32.mrb[5].mxu0  ;;  %v1452_v26 = vadd.f32 %v1451_v11, %v1371_v19 }
 0x490   : > { %v1454_v22 = vadd.f32 %v1453_v13, %v1371_v19 }
 0x492   : > { %v1457_v18 = vpop.f32.mrb[6].mxu0 }
 0x493   : > { %v1458_v20 = vadd.f32 %v1457_v18, %v1376_v17  ;;  %v1459_v21 = vpop.f32.mrb[7].mxu0  ;;  %v1707_v18 = vld [vmem:[%s883_s30] sm:$0xff] }
 0x494   : > { %v1460_v25 = vadd.f32 %v1459_v21, %v1376_v17  ;;  %v1708_v17 = vld [vmem:[%s883_s30 + $0x8] sm:$0xff] }
 0x495   : > { %v3267_v28 = vpack.c.bf16 %v1458_v20, %v1452_v26 }
 0x496   : > { %v3265_v27 = vpack.c.bf16 %v1460_v25, %v1454_v22 }
 0x498   : > { %3266 = vmatprep.subr.bf16.mxu1 %v3265_v27 }
 0x499   : > { %3268 = vmatpush1.bf16.msra.mxu1 %v3267_v28 }
 0x49c   : > { %3185 = vmatmul.mubr.msk.f32.vlgmr.msra.gmra.mrb[4].mxu1 %vm1464_vm10, %v3890_v29 }
 0x49d   : > { %1541 = vmatprep.mubr.f32.mxu1 %v3513_v0 }
 0x4a0   : > { %3186 = vmatmul.mubr.msk.f32.gmra.mrb[6].mxu1 %vm1464_vm10, %v3898_v30 }
 0x4a1   : > { %1628 = vmatprep.mubr.f32.mxu1 %v3513_v0 }
 0x56f   : > { %v1537_v31 = vpop.f32.mrb[4].mxu1 }
 0x570   : > { %v1539_v32 = vpop.f32.mrb[5].mxu1 }
 0x571   : > { %v1548_v33 = vadd.f32 %v1539_v32, %v1537_v31 }
 0x573   : > { %1549 = vadd.xlane.f32.xlu1 %v1548_v33  ;;  %v1543_v34 = vpop.f32.mrb[6].mxu1 }
 0x574   : > { %v1545_v35 = vpop.f32.mrb[7].mxu1 }
 0x575   : > { %v1551_v36 = vadd.f32 %v1545_v35, %v1543_v34 }
 0x577   : > { %1552 = vadd.xlane.f32.xlu0 %v1551_v36 }
 0x584   : > { %1661 = vperm.xlu1 %3459, %v1657_v37  }
 0x588   : > { %1677 = vperm.xlu1 %3459, %v1673_v38  }
 0x58c   : > { %1682 = vperm.xlu1 %3459, %v1674_v41  }
 0x58d   : > { %1666 = vperm.xlu0 %3460, %v1658_v43  }
 0x590   : > { %1700 = vperm.xlu1 %3459, %v1692_v40  }
 0x591   : > { %1695 = vperm.xlu0 %3460, %v1691_v50  }
 0x600   : > { %v1550_v52 = vpop.xlane.xlu1 %1549 }
 0x601   : > { %v1554_v53 = vmul.f32 0.0009765625, %v1550_v52 }
 0x603   : > { %v1556_v59 = vsub.f32 %v1452_v26, %v1554_v53  ;;  %v1557_v61 = vsub.f32 %v1454_v22, %v1554_v53 }
 0x604   : > { %v1553_v54 = vpop.xlane.xlu0 %1552  ;;  %v1662_v19 = vpop.permute.xlu1 %1661 }
 0x605   : > { %v1555_v62 = vmul.f32 0.0009765625, %v1553_v54  ;;  %v1560_v2 = vmul.f32 %v1556_v59, %v1556_v59  ;;  %v1561_v3 = vmul.f32 %v1557_v61, %v1557_v61 }
 0x607   : > { %v1558_v63 = vsub.f32 %v1458_v20, %v1555_v62  ;;  %v1559_v1 = vsub.f32 %v1460_v25, %v1555_v62 }
 0x608   : > { %v1678_v20 = vpop.permute.xlu1 %1677 }
 0x609   : > { %v1562_v4 = vmul.f32 %v1558_v63, %v1558_v63  ;;  %v1563_v5 = vmul.f32 %v1559_v1, %v1559_v1 }
 0x60b   : > { %v3269_v7 = vpack.c.bf16 %v1563_v5, %v1561_v3  ;;  %v3271_v51 = vpack.c.bf16 %v1562_v4, %v1560_v2 }
 0x60c   : > { %v1683_v21 = vpop.permute.xlu1 %1682  ;;  %v1667_v22 = vpop.permute.xlu0 %1666 }
 0x60d   : > { %3270 = vmatprep.subr.bf16.mxu1 %v3269_v7 }
 0x60e   : > { %3272 = vmatpush1.bf16.msra.mxu1 %v3271_v51 }
 0x610   : > { %v1701_v25 = vpop.permute.xlu1 %1700  ;;  %v1696_v26 = vpop.permute.xlu0 %1695 }
 0x611   : > { %3187 = vmatmul.mubr.msk.f32.vlgmr.msra.gmra.mrb[8].mxu1 %vm1464_vm10, %v3890_v29 }
 0x612   : > { %1634 = vmatprep.mubr.f32.mxu1 %v3513_v0 }
 0x615   : > { %3188 = vmatmul.mubr.msk.f32.gmra.mrb[10].mxu1 %vm1464_vm10, %v3898_v30 }
 0x616   : > { %2038 = vmatprep.mubr.f32.mxu1 %v3513_v0 }
 0x6e4   : > { %v1630_v8 = vpop.f32.mrb[8].mxu1 }
 0x6e5   : > { %v1632_v9 = vpop.f32.mrb[9].mxu1 }
 0x6e6   : > { %v1641_v10 = vadd.f32 %v1632_v9, %v1630_v8 }
 0x6e8   : > { %1642 = vadd.xlane.f32.xlu1 %v1641_v10  ;;  %v1636_v49 = vpop.f32.mrb[10].mxu1 }
 0x6e9   : > { %v1638_v11 = vpop.f32.mrb[11].mxu1 }
 0x6ea   : > { %v1644_v13 = vadd.f32 %v1638_v11, %v1636_v49 }
 0x6ec   : > { %1645 = vadd.xlane.f32.xlu0 %v1644_v13 }
 0x6f9   : > { %1716 = vperm.xlu1 %3459, %v1708_v17  }
 0x702   : > { %1711 = vperm.xlu0 %3460, %v1707_v18  }
 0x775   : > { %v1643_v27 = vpop.xlane.xlu1 %1642 }
 0x776   : > { %v1647_v28 = vmul.f32 0.0009765625, %v1643_v27 }
 0x778   : > { %v1649_v31 = vadd.f32 1e-05, %v1647_v28 }
 0x779   : > { %v1646_v32 = vpop.xlane.xlu0 %1645  ;;  %v1717_v9 = vpop.permute.xlu1 %1716 }
 0x77a   : > { %3467 = vrsqrt.f32 %v1649_v31  ;;  %v1648_v33 = vmul.f32 0.0009765625, %v1646_v32 }
 0x77c   : > { %v1650_v34 = vadd.f32 1e-05, %v1648_v33 }
 0x77e   : > { %3469 = vrsqrt.f32 %v1650_v34 }
 0x781   : > { %v1712_v2 = vpop.permute.xlu0 %1711 }
 0x784   : > { %v3468_v35 = vpop.eup %3467 }
 0x785   : > { %v1653_v36 = vmul.f32 %v3468_v35, %v1556_v59  ;;  %v1654_v37 = vmul.f32 %v3468_v35, %v1557_v61 }
 0x787   : > { %v1669_v38 = vmul.f32 %v1662_v19, %v1653_v36  ;;  %v1670_v41 = vmul.f32 %v1662_v19, %v1654_v37  ;;  %v1872_v37 = vld [vmem:[%s4726_s13 + $0x8] sm:$0xff] }
 0x788   : > { %v3470_v42 = vpop.eup %3469  ;;  %3189 = vmatprep.mubr.msk.f32.mxu0 %vm1464_vm10, %v1872_v37 }
 0x789   : > { %v1655_v43 = vmul.f32 %v3470_v42, %v1558_v63  ;;  %v1656_v45 = vmul.f32 %v3470_v42, %v1559_v1  ;;  %v1685_v40 = vadd.f32 %v1678_v20, %v1669_v38  ;;  %v1686_v50 = vadd.f32 %v1678_v20, %v1670_v41  ;;  %v903_v38 = vld [vmem:[%s4729_s16] sm:$0xff]  ;;  %v904_v41 = vld [vmem:[%s4729_s16 + $0x8] sm:$0xff] }
 0x78a   : > { %v1875_v42 = vld [vmem:[%s4727_s14] sm:$0xff] }
 0x78b   : > { %v1671_v52 = vmul.f32 %v1667_v22, %v1655_v43  ;;  %v1672_v53 = vmul.f32 %v1667_v22, %v1656_v45  ;;  %v1703_v54 = vmul.f32 %v1696_v26, %v1685_v40  ;;  %v1704_v62 = vmul.f32 %v1696_v26, %v1686_v50  ;;  %v1876_v43 = vld [vmem:[%s4727_s14 + $0x8] sm:$0xff] }
 0x78d   : > { %v1687_v3 = vadd.f32 %v1683_v21, %v1671_v52  ;;  %v1688_v4 = vadd.f32 %v1683_v21, %v1672_v53  ;;  %v1719_v5 = vadd.f32 %v1712_v2, %v1703_v54  ;;  %v1720_v7 = vadd.f32 %v1712_v2, %v1704_v62 }
 0x78f   : > { %v1705_v51 = vmul.f32 %v1701_v25, %v1687_v3  ;;  %v1706_v8 = vmul.f32 %v1701_v25, %v1688_v4  ;;  %v1723_v59 = vmul.f32 0.5, %v1719_v5  ;;  %v1724_v61 = vmul.f32 0.5, %v1720_v7 }
 0x791   : > { %v1721_v10 = vadd.f32 %v1717_v9, %v1705_v51  ;;  %v1722_v49 = vadd.f32 %v1717_v9, %v1706_v8  ;;  %3471 = vtanh.f32 %v1723_v59 }
 0x792   : > { %3473 = vtanh.f32 %v1724_v61 }
 0x793   : > { %v1725_v63 = vmul.f32 0.5, %v1721_v10  ;;  %v1726_v1 = vmul.f32 0.5, %v1722_v49 }
 0x795   : > { %3475 = vtanh.f32 %v1725_v63 }
 0x796   : > { %3477 = vtanh.f32 %v1726_v1 }
 0x79b   : > { %v3472_v11 = vpop.eup %3471 }
 0x79c   : > { %v3474_v13 = vpop.eup %3473  ;;  %v1731_v17 = vmul.f32 0.5, %v3472_v11 }
 0x79d   : > { %v1732_v18 = vmul.f32 0.5, %v3474_v13 }
 0x79e   : > { %v1735_v19 = vadd.f32 0.5, %v1731_v17 }
 0x79f   : > { %v3476_v20 = vpop.eup %3475  ;;  %v1736_v25 = vadd.f32 0.5, %v1732_v18 }
 0x7a0   : > { %v3478_v21 = vpop.eup %3477  ;;  %v1733_v22 = vmul.f32 0.5, %v3476_v20  ;;  %v3929_v26 = vmul.f32 %v1735_v19, %v1719_v5 }
 0x7a1   : > { %v1734_v27 = vmul.f32 0.5, %v3478_v21  ;;  %v3935_v33 = vmul.f32 %v1736_v25, %v1720_v7 }
 0x7a2   : > { %v1737_v28 = vadd.f32 0.5, %v1733_v22  ;;  %1743 = vrot.lane.b32.xlu0 %v3929_v26, %s4800_s0 }
 0x7a3   : > { %v1738_v31 = vadd.f32 0.5, %v1734_v27 }
 0x7a4   : > { %v3933_v32 = vmul.f32 %v1737_v28, %v1721_v10 }
 0x7a5   : > { %v3937_v34 = vmul.f32 %v1738_v31, %v1722_v49 }
 0x7a6   : > { %1745 = vrot.lane.b32.xlu1 %v3933_v32, %s4800_s0  ;;  %1747 = vrot.lane.b32.xlu0 %v3935_v33, %s4800_s0  ;;  %v3291_v35 = vpack.c.bf16 %v3933_v32, %v3929_v26 }
 0x7a7   : > { %v3289_v36 = vpack.c.bf16 %v3937_v34, %v3935_v33 }
 0x7aa   : > { %1749 = vrot.lane.b32.xlu1 %v3937_v34, %s4800_s0  ;;  %1759 = vrot.lane.b32.xlu0 %v3929_v26, %s4801_s1 }
 0x7ae   : > { %1761 = vrot.lane.b32.xlu1 %v3933_v32, %s4801_s1  ;;  %1763 = vrot.lane.b32.xlu0 %v3935_v33, %s4801_s1 }
 0x7b2   : > { %1765 = vrot.lane.b32.xlu1 %v3937_v34, %s4801_s1  ;;  %1775 = vrot.lane.b32.xlu0 %v3929_v26, %s4802_s11 }
 0x7b6   : > { %1777 = vrot.lane.b32.xlu1 %v3933_v32, %s4802_s11  ;;  %1779 = vrot.lane.b32.xlu0 %v3935_v33, %s4802_s11 }
 0x7ba   : > { %1781 = vrot.lane.b32.xlu1 %v3937_v34, %s4802_s11  ;;  %1791 = vrot.lane.b32.xlu0 %v3929_v26, %s4803_s5 }
 0x7be   : > { %1793 = vrot.lane.b32.xlu1 %v3933_v32, %s4803_s5  ;;  %1795 = vrot.lane.b32.xlu0 %v3935_v33, %s4803_s5 }
 0x7c2   : > { %1797 = vrot.lane.b32.xlu1 %v3937_v34, %s4803_s5  ;;  %1807 = vrot.lane.b32.xlu0 %v3929_v26, %s4804_s2 }
 0x7c6   : > { %1809 = vrot.lane.b32.xlu1 %v3933_v32, %s4804_s2  ;;  %1811 = vrot.lane.b32.xlu0 %v3935_v33, %s4804_s2 }
 0x7ca   : > { %1813 = vrot.lane.b32.xlu1 %v3937_v34, %s4804_s2  ;;  %1823 = vrot.lane.b32.xlu0 %v3929_v26, %s4805_s9 }
 0x7ce   : > { %1825 = vrot.lane.b32.xlu1 %v3933_v32, %s4805_s9  ;;  %1827 = vrot.lane.b32.xlu0 %v3935_v33, %s4805_s9 }
 0x7d2   : > { %1829 = vrot.lane.b32.xlu1 %v3937_v34, %s4805_s9  ;;  %1839 = vrot.lane.b32.xlu0 %v3929_v26, %s4806_s10 }
 0x7d6   : > { %1841 = vrot.lane.b32.xlu1 %v3933_v32, %s4806_s10  ;;  %1843 = vrot.lane.b32.xlu0 %v3935_v33, %s4806_s10 }
 0x7da   : > { %1845 = vrot.lane.b32.xlu1 %v3937_v34, %s4806_s10  ;;  %1855 = vrot.lane.b32.xlu0 %v3929_v26, %s4807_s3 }
 0x7de   : > { %1857 = vrot.lane.b32.xlu1 %v3933_v32, %s4807_s3  ;;  %1859 = vrot.lane.b32.xlu0 %v3935_v33, %s4807_s3 }
 0x7e2   : > { %1861 = vrot.lane.b32.xlu1 %v3937_v34, %s4807_s3  ;;  %907 = vperm.xlu0 %3460, %v903_v38  }
 0x7e6   : > { %912 = vperm.xlu1 %3459, %v904_v41   ;;  %1879 = vperm.xlu0 %3460, %v1875_v42  }
 0x7ea   : > { %1884 = vperm.xlu1 %3459, %v1876_v43  }
 0x814   : > { %v1744_v45 = vpop.permute.xlu0 %1743 }
 0x818   : > { %v1746_v40 = vpop.permute.xlu1 %1745  ;;  %v1748_v50 = vpop.permute.xlu0 %1747 }
 0x819   : > { %v1751_v52 = vsel %vm1193_vm1, %v1744_v45, %v1748_v50  ;;  %v1753_v53 = vsel %vm1193_vm1, %v1748_v50, %v1744_v45 }
 0x81a   : > { %v1755_v4 = vmul.f32 %v1753_v53, %v3758_v55  ;;  %v1756_v5 = vmul.f32 %v1751_v52, %v3761_v56 }
 0x81c   : > { %v1750_v54 = vpop.permute.xlu1 %1749  ;;  %v1760_v62 = vpop.permute.xlu0 %1759 }
 0x81d   : > { %v1752_v2 = vsel %vm1193_vm1, %v1746_v40, %v1750_v54  ;;  %v1754_v3 = vsel %vm1193_vm1, %v1750_v54, %v1746_v40 }
 0x81e   : > { %v1757_v7 = vmul.f32 %v1754_v3, %v3758_v55  ;;  %v1758_v51 = vmul.f32 %v1752_v2, %v3761_v56 }
 0x820   : > { %v3275_v8 = vpack.c.bf16 %v1757_v7, %v1755_v4  ;;  %v1762_v59 = vpop.permute.xlu1 %1761  ;;  %v1764_v61 = vpop.permute.xlu0 %1763  ;;  %v3273_v9 = vpack.c.bf16 %v1758_v51, %v1756_v5 }
 0x821   : > { %v1767_v10 = vsel %vm1214_vm2, %v1760_v62, %v1764_v61  ;;  %v1769_v49 = vsel %vm1214_vm2, %v1764_v61, %v1760_v62 }
 0x822   : > { %3274 = vmatprep.subr.bf16.mxu0 %v3273_v9  ;;  %v1771_v17 = vmul.f32 %v1769_v49, %v3765_v57  ;;  %v1772_v18 = vmul.f32 %v1767_v10, %v3768_v58 }
 0x823   : > { %3276 = vmatpush1.bf16.msra.mxu0 %v3275_v8 }
 0x824   : > { %v1766_v63 = vpop.permute.xlu1 %1765  ;;  %v1776_v1 = vpop.permute.xlu0 %1775 }
 0x825   : > { %v1768_v11 = vsel %vm1214_vm2, %v1762_v59, %v1766_v63  ;;  %v1770_v13 = vsel %vm1214_vm2, %v1766_v63, %v1762_v59 }
 0x826   : > { %v1773_v19 = vmul.f32 %v1770_v13, %v3765_v57  ;;  %v1774_v20 = vmul.f32 %v1768_v11, %v3768_v58 }
 0x828   : > { %v3279_v21 = vpack.c.bf16 %v1773_v19, %v1771_v17  ;;  %v1778_v22 = vpop.permute.xlu1 %1777  ;;  %v1780_v25 = vpop.permute.xlu0 %1779  ;;  %v3277_v27 = vpack.c.bf16 %v1774_v20, %v1772_v18 }
 0x829   : > { %v1783_v28 = vsel %vm1236_vm3, %v1776_v1, %v1780_v25  ;;  %v1785_v31 = vsel %vm1236_vm3, %v1780_v25, %v1776_v1 }
 0x82a   : > { %3278 = vmatprep.subr.bf16.mxu0 %v3277_v27  ;;  %v1787_v43 = vmul.f32 %v1785_v31, %v3790_v12  ;;  %v1788_v45 = vmul.f32 %v1783_v28, %v3793_v14 }
 0x82b   : > { %3280 = vmatpush1.bf16.msra.mxu0 %v3279_v21 }
 0x82c   : > { %v1782_v37 = vpop.permute.xlu1 %1781  ;;  %v1792_v38 = vpop.permute.xlu0 %1791 }
 0x82d   : > { %v1784_v41 = vsel %vm1236_vm3, %v1778_v22, %v1782_v37  ;;  %v1786_v42 = vsel %vm1236_vm3, %v1782_v37, %v1778_v22 }
 0x82e   : > { %v1789_v40 = vmul.f32 %v1786_v42, %v3790_v12  ;;  %v1790_v50 = vmul.f32 %v1784_v41, %v3793_v14 }
 0x830   : > { %v3283_v52 = vpack.c.bf16 %v1789_v40, %v1787_v43  ;;  %v1794_v53 = vpop.permute.xlu1 %1793  ;;  %v1796_v54 = vpop.permute.xlu0 %1795  ;;  %v3281_v62 = vpack.c.bf16 %v1790_v50, %v1788_v45 }
 0x831   : > { %v1799_v2 = vsel %vm1258_vm4, %v1792_v38, %v1796_v54  ;;  %v1801_v3 = vsel %vm1258_vm4, %v1796_v54, %v1792_v38 }
 0x832   : > { %3282 = vmatprep.subr.bf16.mxu0 %v3281_v62  ;;  %v1803_v8 = vmul.f32 %v1801_v3, %v3797_v15  ;;  %v1804_v59 = vmul.f32 %v1799_v2, %v3800_v16 }
 0x833   : > { %3284 = vmatpush1.bf16.msra.mxu0 %v3283_v52 }
 0x834   : > { %v1798_v4 = vpop.permute.xlu1 %1797  ;;  %v1808_v5 = vpop.permute.xlu0 %1807 }
 0x835   : > { %v1800_v7 = vsel %vm1258_vm4, %v1794_v53, %v1798_v4  ;;  %v1802_v51 = vsel %vm1258_vm4, %v1798_v4, %v1794_v53 }
 0x836   : > { %v1805_v61 = vmul.f32 %v1802_v51, %v3797_v15  ;;  %v1806_v9 = vmul.f32 %v1800_v7, %v3800_v16 }
 0x838   : > { %v3287_v10 = vpack.c.bf16 %v1805_v61, %v1803_v8  ;;  %v1810_v49 = vpop.permute.xlu1 %1809  ;;  %v1812_v63 = vpop.permute.xlu0 %1811  ;;  %v3285_v1 = vpack.c.bf16 %v1806_v9, %v1804_v59 }
 0x839   : > { %v1815_v11 = vsel %vm1280_vm5, %v1808_v5, %v1812_v63  ;;  %v1817_v13 = vsel %vm1280_vm5, %v1812_v63, %v1808_v5 }
 0x83a   : > { %3286 = vmatprep.subr.bf16.mxu0 %v3285_v1  ;;  %v1819_v21 = vmul.f32 %v1815_v11, %v3815_v23  ;;  %v1820_v22 = vmul.f32 %v1817_v13, %v3818_v24 }
 0x83b   : > { %3288 = vmatpush1.bf16.msra.mxu0 %v3287_v10 }
 0x83c   : > { %v1814_v17 = vpop.permute.xlu1 %1813  ;;  %3290 = vmatprep.subr.bf16.mxu0 %v3289_v36  ;;  %v1824_v18 = vpop.permute.xlu0 %1823 }
 0x83d   : > { %v1816_v19 = vsel %vm1280_vm5, %v1810_v49, %v1814_v17  ;;  %v1818_v20 = vsel %vm1280_vm5, %v1814_v17, %v1810_v49 }
 0x83e   : > { %v1821_v25 = vmul.f32 %v1816_v19, %v3815_v23  ;;  %v1822_v27 = vmul.f32 %v1818_v20, %v3818_v24 }
 0x83f   : > { %3292 = vmatpush1.bf16.msra.mxu0 %v3291_v35 }
 0x840   : > { %v3295_v33 = vpack.c.bf16 %v1821_v25, %v1819_v21  ;;  %v1826_v34 = vpop.permute.xlu1 %1825  ;;  %v1828_v36 = vpop.permute.xlu0 %1827  ;;  %v3293_v28 = vpack.c.bf16 %v1822_v27, %v1820_v22  ;;  %v1871_v27 = vld [vmem:[%s4726_s13] sm:$0xff] }
 0x841   : > { %v1831_v31 = vsel %vm1302_vm6, %v1824_v18, %v1828_v36  ;;  %v1833_v37 = vsel %vm1302_vm6, %v1828_v36, %v1824_v18 }
 0x842   : > { %3294 = vmatprep.subr.bf16.mxu0 %v3293_v28  ;;  %v1835_v32 = vmul.f32 %v1831_v31, %v3840_v44  ;;  %v1836_v35 = vmul.f32 %v1833_v37, %v3843_v46 }
 0x843   : > { %3296 = vmatpush1.bf16.msra.mxu0 %v3295_v33  ;;  %v1874_v33 = vld [vmem:[%s4726_s13 + $0x18] sm:$0xff] }
 0x844   : > { %v1830_v38 = vpop.permute.xlu1 %1829  ;;  %v1840_v41 = vpop.permute.xlu0 %1839 }
 0x845   : > { %v1832_v42 = vsel %vm1302_vm6, %v1826_v34, %v1830_v38  ;;  %v1834_v26 = vsel %vm1302_vm6, %v1830_v38, %v1826_v34  ;;  %v1873_v34 = vld [vmem:[%s4726_s13 + $0x10] sm:$0xff] }
 0x846   : > { %v1837_v43 = vmul.f32 %v1832_v42, %v3840_v44  ;;  %v1838_v45 = vmul.f32 %v1834_v26, %v3843_v46 }
 0x848   : > { %v3299_v40 = vpack.c.bf16 %v1837_v43, %v1835_v32  ;;  %v1842_v50 = vpop.permute.xlu1 %1841  ;;  %v1844_v52 = vpop.permute.xlu0 %1843  ;;  %v3297_v53 = vpack.c.bf16 %v1838_v45, %v1836_v35 }
 0x849   : > { %v1847_v54 = vsel %vm1324_vm7, %v1840_v41, %v1844_v52  ;;  %v1849_v62 = vsel %vm1324_vm7, %v1844_v52, %v1840_v41 }
 0x84a   : > { %3298 = vmatprep.subr.bf16.mxu0 %v3297_v53  ;;  %v1851_v7 = vmul.f32 %v1847_v54, %v3847_v47  ;;  %v1852_v51 = vmul.f32 %v1849_v62, %v3850_v39 }
 0x84b   : > { %3300 = vmatpush1.bf16.msra.mxu0 %v3299_v40 }
 0x84c   : > { %v1846_v2 = vpop.permute.xlu1 %1845  ;;  %v1856_v3 = vpop.permute.xlu0 %1855 }
 0x84d   : > { %v1848_v4 = vsel %vm1324_vm7, %v1842_v50, %v1846_v2  ;;  %v1850_v5 = vsel %vm1324_vm7, %v1846_v2, %v1842_v50 }
 0x84e   : > { %v1853_v8 = vmul.f32 %v1848_v4, %v3847_v47  ;;  %v1854_v59 = vmul.f32 %v1850_v5, %v3850_v39 }
 0x850   : > { %v3303_v61 = vpack.c.bf16 %v1853_v8, %v1851_v7  ;;  %v1858_v9 = vpop.permute.xlu1 %1857  ;;  %v1860_v10 = vpop.permute.xlu0 %1859  ;;  %v3301_v49 = vpack.c.bf16 %v1854_v59, %v1852_v51  ;;  %v2160_v7 = vld [vmem:[%s4730_s17] sm:$0xff]  ;;  %v2177_v8 = vld [vmem:[%s4731_s18 + $0x8] sm:$0xff] }
 0x851   : > { %v1863_v63 = vsel %vm1346_vm8, %v1856_v3, %v1860_v10  ;;  %v1865_v1 = vsel %vm1346_vm8, %v1860_v10, %v1856_v3  ;;  %v2176_v51 = vld [vmem:[%s4731_s18] sm:$0xff] }
 0x852   : > { %3302 = vmatprep.subr.bf16.mxu0 %v3301_v49  ;;  %v1867_v18 = vmul.f32 %v1863_v63, %v3872_v6  ;;  %v1868_v19 = vmul.f32 %v1865_v1, %v3865_v60 }
 0x853   : > { %3304 = vmatpush1.bf16.msra.mxu0 %v3303_v61 }
 0x854   : > { %v1862_v11 = vpop.permute.xlu1 %1861 }
 0x855   : > { %v1864_v13 = vsel %vm1346_vm8, %v1858_v9, %v1862_v11  ;;  %v1866_v17 = vsel %vm1346_vm8, %v1862_v11, %v1858_v9 }
 0x856   : > { %v1869_v20 = vmul.f32 %v1864_v13, %v3872_v6  ;;  %v1870_v21 = vmul.f32 %v1866_v17, %v3865_v60 }
 0x858   : > { %v3307_v22 = vpack.c.bf16 %v1869_v20, %v1867_v18  ;;  %v3305_v25 = vpack.c.bf16 %v1870_v21, %v1868_v19 }
 0x85a   : > { %3306 = vmatprep.subr.bf16.mxu0 %v3305_v25 }
 0x85b   : > { %3308 = vmatpush1.bf16.msra.mxu0 %v3307_v22 }
 0x85e   : > { %1958 = vmatmul.mubr.f32.vlgmr.msra.gmra.mrb[0].mxu0 %v1871_v27 }
 0x85f   : > { %3190 = vmatprep.mubr.msk.f32.mxu0 %vm1464_vm10, %v1874_v33 }
 0x861   : > { %v908_v28 = vpop.permute.xlu0 %907 }
 0x862   : > { %1964 = vmatmul.mubr.f32.gmra.mrb[2].mxu0 %v1873_v34 }
 0x863   : > { %2503 = vmatprep.mubr.f32.mxu0 %v3513_v0 }
 0x865   : > { %v913_v36 = vpop.permute.xlu1 %912  ;;  %v1880_v38 = vpop.permute.xlu0 %1879 }
 0x866   : > { %v3429_v26 = vadd.f32 %v1880_v38, %v908_v28  ;;  %v2161_v28 = vld [vmem:[%s4730_s17 + $0x8] sm:$0xff] }
 0x869   : > { %v1885_v31 = vpop.permute.xlu1 %1884 }
 0x86a   : > { %v3433_v42 = vadd.f32 %v1885_v31, %v913_v36 }
 0x931   : > { %v1959_v37 = vpop.f32.mrb[0].mxu0 }
 0x932   : > { %v1961_v41 = vpop.f32.mrb[1].mxu0  ;;  %v4140_v50 = vadd.f32 %v3429_v26, %v1959_v37 }
 0x933   : > { %v4136_v45 = vadd.f32 %v3429_v26, %v1961_v41 }
 0x935   : > { %v1965_v32 = vpop.f32.mrb[2].mxu0 }
 0x936   : > { %v4134_v35 = vadd.f32 %v3433_v42, %v1965_v32  ;;  %v1967_v43 = vpop.f32.mrb[3].mxu0 }
 0x937   : > { %v4138_v40 = vadd.f32 %v3433_v42, %v1967_v43 }
 0x938   : > { %v3311_v53 = vpack.c.bf16 %v4134_v35, %v4140_v50 }
 0x939   : > { %v3309_v52 = vpack.c.bf16 %v4138_v40, %v4136_v45 }
 0x93b   : > { %3310 = vmatprep.subr.bf16.mxu1 %v3309_v52 }
 0x93c   : > { %3312 = vmatpush1.bf16.msra.mxu1 %v3311_v53 }
 0x93f   : > { %3191 = vmatmul.mubr.msk.f32.vlgmr.msra.gmra.mrb[12].mxu1 %vm1464_vm10, %v3890_v29 }
 0x940   : > { %2044 = vmatprep.mubr.f32.mxu1 %v3513_v0 }
 0x943   : > { %3192 = vmatmul.mubr.msk.f32.gmra.mrb[14].mxu1 %vm1464_vm10, %v3898_v30 }
 0x944   : > { %2131 = vmatprep.mubr.f32.mxu1 %v3513_v0 }
 0xa12   : > { %v2040_v54 = vpop.f32.mrb[12].mxu1 }
 0xa13   : > { %v2042_v62 = vpop.f32.mrb[13].mxu1 }
 0xa14   : > { %v2051_v2 = vadd.f32 %v2042_v62, %v2040_v54 }
 0xa16   : > { %2052 = vadd.xlane.f32.xlu0 %v2051_v2  ;;  %v2046_v3 = vpop.f32.mrb[14].mxu1 }
 0xa17   : > { %v2048_v4 = vpop.f32.mrb[15].mxu1 }
 0xa18   : > { %v2054_v5 = vadd.f32 %v2048_v4, %v2046_v3 }
 0xa1a   : > { %2055 = vadd.xlane.f32.xlu1 %v2054_v5 }
 0xa2b   : > { %2164 = vperm.xlu1 %3459, %v2160_v7  }
 0xa2f   : > { %2180 = vperm.xlu1 %3459, %v2176_v51  }
 0xa33   : > { %2185 = vperm.xlu1 %3459, %v2177_v8  }
 0xaa3   : > { %v2053_v59 = vpop.xlane.xlu0 %2052 }
 0xaa4   : > { %v2057_v61 = vmul.f32 0.0009765625, %v2053_v59 }
 0xaa6   : > { %v2059_v10 = vsub.f32 %v4140_v50, %v2057_v61  ;;  %v2060_v49 = vsub.f32 %v4136_v45, %v2057_v61 }
 0xaa7   : > { %v2056_v9 = vpop.xlane.xlu1 %2055 }
 0xaa8   : > { %v2058_v63 = vmul.f32 0.0009765625, %v2056_v9  ;;  %v2063_v13 = vmul.f32 %v2059_v10, %v2059_v10  ;;  %v2064_v17 = vmul.f32 %v2060_v49, %v2060_v49 }
 0xaaa   : > { %v2061_v1 = vsub.f32 %v4134_v35, %v2058_v63  ;;  %v2062_v11 = vsub.f32 %v4138_v40, %v2058_v63 }
 0xaab   : > { %v2165_v42 = vpop.permute.xlu1 %2164 }
 0xaac   : > { %v2065_v18 = vmul.f32 %v2061_v1, %v2061_v1  ;;  %v2066_v19 = vmul.f32 %v2062_v11, %v2062_v11 }
 0xaae   : > { %v3315_v20 = vpack.c.bf16 %v2065_v18, %v2063_v13  ;;  %v3313_v21 = vpack.c.bf16 %v2066_v19, %v2064_v17 }
 0xaaf   : > { %v2181_v52 = vpop.permute.xlu1 %2180 }
 0xab0   : > { %3314 = vmatprep.subr.bf16.mxu1 %v3313_v21 }
 0xab1   : > { %3316 = vmatpush1.bf16.msra.mxu1 %v3315_v20 }
 0xab3   : > { %v2186_v9 = vpop.permute.xlu1 %2185 }
 0xab4   : > { %3193 = vmatmul.mubr.msk.f32.vlgmr.msra.gmra.mrb[16].mxu1 %vm1464_vm10, %v3890_v29 }
 0xab5   : > { %2137 = vmatprep.mubr.f32.mxu1 %v3513_v0 }
 0xab8   : > { %3194 = vmatmul.mubr.msk.f32.gmra.mrb[18].mxu1 %vm1464_vm10, %v3898_v30 }
 0xb87   : > { %v2133_v22 = vpop.f32.mrb[16].mxu1 }
 0xb88   : > { %v2135_v25 = vpop.f32.mrb[17].mxu1 }
 0xb89   : > { %v2144_v27 = vadd.f32 %v2135_v25, %v2133_v22 }
 0xb8b   : > { %2145 = vadd.xlane.f32.xlu0 %v2144_v27  ;;  %v2139_v33 = vpop.f32.mrb[18].mxu1 }
 0xb8c   : > { %v2141_v34 = vpop.f32.mrb[19].mxu1 }
 0xb8d   : > { %v2147_v36 = vadd.f32 %v2141_v34, %v2139_v33 }
 0xb8f   : > { %2148 = vadd.xlane.f32.xlu0 %v2147_v36 }
 0xba5   : > { %2169 = vperm.xlu0 %3460, %v2161_v28  }
 0xc18   : > { %v2146_v31 = vpop.xlane.xlu0 %2145 }
 0xc19   : > { %v2150_v29 = vmul.f32 0.0009765625, %v2146_v31 }
 0xc1b   : > { %v2152_v37 = vadd.f32 1e-05, %v2150_v29 }
 0xc1c   : > { %v2149_v38 = vpop.xlane.xlu0 %2148 }
 0xc1d   : > { %3479 = vrsqrt.f32 %v2152_v37  ;;  %v2151_v41 = vmul.f32 0.0009765625, %v2149_v38 }
 0xc1f   : > { %v2153_v30 = vadd.f32 1e-05, %v2151_v41  ;;  %v2341_v41 = vld [vmem:[%s4732_s19 + $0x8] sm:$0xff] }
 0xc20   : > { %3195 = vmatprep.mubr.msk.f32.mxu1 %vm1464_vm10, %v2341_v41 }
 0xc21   : > { %3481 = vrsqrt.f32 %v2153_v30  ;;  %v2344_v30 = vld [vmem:[%s4733_s20] sm:$0xff] }
 0xc24   : > { %v2170_v7 = vpop.permute.xlu0 %2169 }
 0xc27   : > { %v3480_v26 = vpop.eup %3479 }
 0xc28   : > { %v2156_v32 = vmul.f32 %v3480_v26, %v2059_v10  ;;  %v2157_v43 = vmul.f32 %v3480_v26, %v2060_v49 }
 0xc2a   : > { %v2172_v53 = vmul.f32 %v2165_v42, %v2156_v32  ;;  %v2173_v54 = vmul.f32 %v2165_v42, %v2157_v43  ;;  %v2345_v42 = vld [vmem:[%s4733_s20 + $0x8] sm:$0xff] }
 0xc2b   : > { %v3482_v62 = vpop.eup %3481 }
 0xc2c   : > { %v2188_v2 = vadd.f32 %v2181_v52, %v2172_v53  ;;  %v2189_v3 = vadd.f32 %v2181_v52, %v2173_v54  ;;  %v2158_v4 = vmul.f32 %v3482_v62, %v2061_v1  ;;  %v2159_v5 = vmul.f32 %v3482_v62, %v2062_v11 }
 0xc2e   : > { %v2192_v51 = vmul.f32 0.5, %v2188_v2  ;;  %v2193_v8 = vmul.f32 0.5, %v2189_v3  ;;  %v2174_v59 = vmul.f32 %v2170_v7, %v2158_v4  ;;  %v2175_v61 = vmul.f32 %v2170_v7, %v2159_v5 }
 0xc30   : > { %3483 = vtanh.f32 %v2192_v51  ;;  %v2190_v63 = vadd.f32 %v2186_v9, %v2174_v59  ;;  %v2191_v13 = vadd.f32 %v2186_v9, %v2175_v61 }
 0xc31   : > { %3485 = vtanh.f32 %v2193_v8 }
 0xc32   : > { %v2194_v10 = vmul.f32 0.5, %v2190_v63  ;;  %v2195_v49 = vmul.f32 0.5, %v2191_v13 }
 0xc34   : > { %3487 = vtanh.f32 %v2194_v10 }
 0xc35   : > { %3489 = vtanh.f32 %v2195_v49 }
 0xc3a   : > { %v3484_v17 = vpop.eup %3483 }
 0xc3b   : > { %v3486_v18 = vpop.eup %3485  ;;  %v2200_v19 = vmul.f32 0.5, %v3484_v17 }
 0xc3c   : > { %v2201_v20 = vmul.f32 0.5, %v3486_v18 }
 0xc3d   : > { %v2204_v1 = vadd.f32 0.5, %v2200_v19 }
 0xc3e   : > { %v3488_v11 = vpop.eup %3487  ;;  %v2205_v22 = vadd.f32 0.5, %v2201_v20 }
 0xc3f   : > { %v3490_v21 = vpop.eup %3489  ;;  %v4173_v25 = vmul.f32 %v2204_v1, %v2188_v2  ;;  %v2202_v27 = vmul.f32 0.5, %v3488_v11 }
 0xc40   : > { %v2203_v33 = vmul.f32 0.5, %v3490_v21  ;;  %v4177_v28 = vmul.f32 %v2205_v22, %v2189_v3 }
 0xc41   : > { %v2206_v34 = vadd.f32 0.5, %v2202_v27  ;;  %2212 = vrot.lane.b32.xlu0 %v4173_v25, %s4800_s0 }
 0xc42   : > { %v2207_v36 = vadd.f32 0.5, %v2203_v33 }
 0xc43   : > { %v4179_v31 = vmul.f32 %v2206_v34, %v2190_v63 }
 0xc44   : > { %v4181_v29 = vmul.f32 %v2207_v36, %v2191_v13 }
 0xc45   : > { %2216 = vrot.lane.b32.xlu0 %v4177_v28, %s4800_s0  ;;  %2214 = vrot.lane.b32.xlu1 %v4179_v31, %s4800_s0  ;;  %v3335_v37 = vpack.c.bf16 %v4179_v31, %v4173_v25 }
 0xc46   : > { %v3333_v38 = vpack.c.bf16 %v4181_v29, %v4177_v28 }
 0xc49   : > { %2228 = vrot.lane.b32.xlu0 %v4173_v25, %s4801_s1  ;;  %2218 = vrot.lane.b32.xlu1 %v4181_v29, %s4800_s0 }
 0xc4d   : > { %2232 = vrot.lane.b32.xlu0 %v4177_v28, %s4801_s1  ;;  %2230 = vrot.lane.b32.xlu1 %v4179_v31, %s4801_s1 }
 0xc51   : > { %2244 = vrot.lane.b32.xlu0 %v4173_v25, %s4802_s11  ;;  %2234 = vrot.lane.b32.xlu1 %v4181_v29, %s4801_s1 }
 0xc55   : > { %2248 = vrot.lane.b32.xlu0 %v4177_v28, %s4802_s11  ;;  %2246 = vrot.lane.b32.xlu1 %v4179_v31, %s4802_s11 }
 0xc59   : > { %2260 = vrot.lane.b32.xlu0 %v4173_v25, %s4803_s5  ;;  %2250 = vrot.lane.b32.xlu1 %v4181_v29, %s4802_s11 }
 0xc5d   : > { %2264 = vrot.lane.b32.xlu0 %v4177_v28, %s4803_s5  ;;  %2262 = vrot.lane.b32.xlu1 %v4179_v31, %s4803_s5 }
 0xc61   : > { %2276 = vrot.lane.b32.xlu0 %v4173_v25, %s4804_s2  ;;  %2266 = vrot.lane.b32.xlu1 %v4181_v29, %s4803_s5 }
 0xc65   : > { %2280 = vrot.lane.b32.xlu0 %v4177_v28, %s4804_s2  ;;  %2278 = vrot.lane.b32.xlu1 %v4179_v31, %s4804_s2 }
 0xc69   : > { %2292 = vrot.lane.b32.xlu0 %v4173_v25, %s4805_s9  ;;  %2282 = vrot.lane.b32.xlu1 %v4181_v29, %s4804_s2 }
 0xc6d   : > { %2296 = vrot.lane.b32.xlu0 %v4177_v28, %s4805_s9  ;;  %2294 = vrot.lane.b32.xlu1 %v4179_v31, %s4805_s9 }
 0xc71   : > { %2308 = vrot.lane.b32.xlu0 %v4173_v25, %s4806_s10  ;;  %2298 = vrot.lane.b32.xlu1 %v4181_v29, %s4805_s9 }
 0xc75   : > { %2312 = vrot.lane.b32.xlu0 %v4177_v28, %s4806_s10  ;;  %2310 = vrot.lane.b32.xlu1 %v4179_v31, %s4806_s10 }
 0xc79   : > { %2324 = vrot.lane.b32.xlu0 %v4173_v25, %s4807_s3  ;;  %2314 = vrot.lane.b32.xlu1 %v4181_v29, %s4806_s10 }
 0xc7d   : > { %2328 = vrot.lane.b32.xlu0 %v4177_v28, %s4807_s3  ;;  %2326 = vrot.lane.b32.xlu1 %v4179_v31, %s4807_s3 }
 0xc81   : > { %2348 = vperm.xlu0 %3460, %v2344_v30   ;;  %2330 = vrot.lane.b32.xlu1 %v4181_v29, %s4807_s3 }
 0xc85   : > { %2353 = vperm.xlu1 %3459, %v2345_v42  }
 0xcb3   : > { %v2213_v26 = vpop.permute.xlu0 %2212 }
 0xcb7   : > { %v2217_v32 = vpop.permute.xlu0 %2216  ;;  %v2215_v43 = vpop.permute.xlu1 %2214 }
 0xcb8   : > { %v2220_v52 = vsel %vm1193_vm1, %v2213_v26, %v2217_v32  ;;  %v2222_v53 = vsel %vm1193_vm1, %v2217_v32, %v2213_v26 }
 0xcb9   : > { %v2224_v4 = vmul.f32 %v2222_v53, %v3758_v55  ;;  %v2225_v5 = vmul.f32 %v2220_v52, %v3761_v56 }
 0xcbb   : > { %v2229_v54 = vpop.permute.xlu0 %2228  ;;  %v2219_v62 = vpop.permute.xlu1 %2218 }
 0xcbc   : > { %v2221_v2 = vsel %vm1193_vm1, %v2215_v43, %v2219_v62  ;;  %v2223_v3 = vsel %vm1193_vm1, %v2219_v62, %v2215_v43 }
 0xcbd   : > { %v2226_v7 = vmul.f32 %v2223_v3, %v3758_v55  ;;  %v2227_v51 = vmul.f32 %v2221_v2, %v3761_v56 }
 0xcbf   : > { %v3319_v8 = vpack.c.bf16 %v2226_v7, %v2224_v4  ;;  %v2233_v59 = vpop.permute.xlu0 %2232  ;;  %v2231_v61 = vpop.permute.xlu1 %2230  ;;  %v3317_v9 = vpack.c.bf16 %v2227_v51, %v2225_v5 }
 0xcc0   : > { %v2236_v63 = vsel %vm1214_vm2, %v2229_v54, %v2233_v59  ;;  %v2238_v13 = vsel %vm1214_vm2, %v2233_v59, %v2229_v54 }
 0xcc1   : > { %3318 = vmatprep.subr.bf16.mxu1 %v3317_v9  ;;  %v2240_v19 = vmul.f32 %v2238_v13, %v3765_v57  ;;  %v2241_v20 = vmul.f32 %v2236_v63, %v3768_v58 }
 0xcc2   : > { %3320 = vmatpush1.bf16.msra.mxu1 %v3319_v8 }
 0xcc3   : > { %v2245_v10 = vpop.permute.xlu0 %2244  ;;  %v2235_v49 = vpop.permute.xlu1 %2234 }
 0xcc4   : > { %v2237_v17 = vsel %vm1214_vm2, %v2231_v61, %v2235_v49  ;;  %v2239_v18 = vsel %vm1214_vm2, %v2235_v49, %v2231_v61 }
 0xcc5   : > { %v2242_v1 = vmul.f32 %v2239_v18, %v3765_v57  ;;  %v2243_v11 = vmul.f32 %v2237_v17, %v3768_v58 }
 0xcc7   : > { %v3323_v21 = vpack.c.bf16 %v2242_v1, %v2240_v19  ;;  %v2249_v22 = vpop.permute.xlu0 %2248  ;;  %v2247_v27 = vpop.permute.xlu1 %2246  ;;  %v3321_v33 = vpack.c.bf16 %v2243_v11, %v2241_v20 }
 0xcc8   : > { %v2252_v34 = vsel %vm1236_vm3, %v2245_v10, %v2249_v22  ;;  %v2254_v36 = vsel %vm1236_vm3, %v2249_v22, %v2245_v10 }
 0xcc9   : > { %3322 = vmatprep.subr.bf16.mxu1 %v3321_v33  ;;  %v2256_v32 = vmul.f32 %v2254_v36, %v3790_v12  ;;  %v2257_v43 = vmul.f32 %v2252_v34, %v3793_v14 }
 0xcca   : > { %3324 = vmatpush1.bf16.msra.mxu1 %v3323_v21 }
 0xccb   : > { %v2261_v41 = vpop.permute.xlu0 %2260  ;;  %v2251_v30 = vpop.permute.xlu1 %2250 }
 0xccc   : > { %v2253_v42 = vsel %vm1236_vm3, %v2247_v27, %v2251_v30  ;;  %v2255_v26 = vsel %vm1236_vm3, %v2251_v30, %v2247_v27 }
 0xccd   : > { %v2258_v52 = vmul.f32 %v2255_v26, %v3790_v12  ;;  %v2259_v53 = vmul.f32 %v2253_v42, %v3793_v14 }
 0xccf   : > { %v3327_v54 = vpack.c.bf16 %v2258_v52, %v2256_v32  ;;  %v2265_v62 = vpop.permute.xlu0 %2264  ;;  %v2263_v2 = vpop.permute.xlu1 %2262  ;;  %v3325_v3 = vpack.c.bf16 %v2259_v53, %v2257_v43 }
 0xcd0   : > { %v2268_v4 = vsel %vm1258_vm4, %v2261_v41, %v2265_v62  ;;  %v2270_v5 = vsel %vm1258_vm4, %v2265_v62, %v2261_v41 }
 0xcd1   : > { %3326 = vmatprep.subr.bf16.mxu1 %v3325_v3  ;;  %v2272_v61 = vmul.f32 %v2270_v5, %v3797_v15  ;;  %v2273_v9 = vmul.f32 %v2268_v4, %v3800_v16 }
 0xcd2   : > { %3328 = vmatpush1.bf16.msra.mxu1 %v3327_v54 }
 0xcd3   : > { %v2277_v7 = vpop.permute.xlu0 %2276  ;;  %v2267_v51 = vpop.permute.xlu1 %2266 }
 0xcd4   : > { %v2269_v8 = vsel %vm1258_vm4, %v2263_v2, %v2267_v51  ;;  %v2271_v59 = vsel %vm1258_vm4, %v2267_v51, %v2263_v2 }
 0xcd5   : > { %v2274_v63 = vmul.f32 %v2271_v59, %v3797_v15  ;;  %v2275_v13 = vmul.f32 %v2269_v8, %v3800_v16 }
 0xcd7   : > { %v3331_v10 = vpack.c.bf16 %v2274_v63, %v2272_v61  ;;  %v2281_v49 = vpop.permute.xlu0 %2280  ;;  %v2279_v17 = vpop.permute.xlu1 %2278  ;;  %v3329_v18 = vpack.c.bf16 %v2275_v13, %v2273_v9 }
 0xcd8   : > { %v2284_v19 = vsel %vm1280_vm5, %v2277_v7, %v2281_v49  ;;  %v2286_v20 = vsel %vm1280_vm5, %v2281_v49, %v2277_v7 }
 0xcd9   : > { %3330 = vmatprep.subr.bf16.mxu1 %v3329_v18  ;;  %v2288_v27 = vmul.f32 %v2284_v19, %v3815_v23  ;;  %v2289_v33 = vmul.f32 %v2286_v20, %v3818_v24 }
 0xcda   : > { %3332 = vmatpush1.bf16.msra.mxu1 %v3331_v10 }
 0xcdb   : > { %v2293_v1 = vpop.permute.xlu0 %2292  ;;  %3334 = vmatprep.subr.bf16.mxu1 %v3333_v38  ;;  %v2283_v11 = vpop.permute.xlu1 %2282 }
 0xcdc   : > { %v2285_v21 = vsel %vm1280_vm5, %v2279_v17, %v2283_v11  ;;  %v2287_v22 = vsel %vm1280_vm5, %v2283_v11, %v2279_v17 }
 0xcdd   : > { %v2290_v34 = vmul.f32 %v2285_v21, %v3815_v23  ;;  %v2291_v36 = vmul.f32 %v2287_v22, %v3818_v24 }
 0xcde   : > { %3336 = vmatpush1.bf16.msra.mxu1 %v3335_v37 }
 0xcdf   : > { %v3339_v28 = vpack.c.bf16 %v2290_v34, %v2288_v27  ;;  %v2297_v29 = vpop.permute.xlu0 %2296  ;;  %v2295_v38 = vpop.permute.xlu1 %2294  ;;  %v3337_v41 = vpack.c.bf16 %v2291_v36, %v2289_v33 }
 0xce0   : > { %v2300_v30 = vsel %vm1302_vm6, %v2293_v1, %v2297_v29  ;;  %v2302_v42 = vsel %vm1302_vm6, %v2297_v29, %v2293_v1  ;;  %v2340_v29 = vld [vmem:[%s4732_s19] sm:$0xff] }
 0xce1   : > { %3338 = vmatprep.subr.bf16.mxu1 %v3337_v41  ;;  %v2304_v31 = vmul.f32 %v2300_v30, %v3840_v44  ;;  %v2305_v37 = vmul.f32 %v2302_v42, %v3843_v46  ;;  %v2342_v41 = vld [vmem:[%s4732_s19 + $0x10] sm:$0xff] }
 0xce2   : > { %3340 = vmatpush1.bf16.msra.mxu1 %v3339_v28 }
 0xce3   : > { %v2309_v26 = vpop.permute.xlu0 %2308  ;;  %v2299_v32 = vpop.permute.xlu1 %2298 }
 0xce4   : > { %v2301_v43 = vsel %vm1302_vm6, %v2295_v38, %v2299_v32  ;;  %v2303_v25 = vsel %vm1302_vm6, %v2299_v32, %v2295_v38  ;;  %v2343_v38 = vld [vmem:[%s4732_s19 + $0x18] sm:$0xff] }
 0xce5   : > { %v2306_v52 = vmul.f32 %v2301_v43, %v3840_v44  ;;  %v2307_v53 = vmul.f32 %v2303_v25, %v3843_v46 }
 0xce7   : > { %v3343_v54 = vpack.c.bf16 %v2306_v52, %v2304_v31  ;;  %v2313_v62 = vpop.permute.xlu0 %2312  ;;  %v2311_v2 = vpop.permute.xlu1 %2310  ;;  %v3341_v3 = vpack.c.bf16 %v2307_v53, %v2305_v37 }
 0xce8   : > { %v2316_v4 = vsel %vm1324_vm7, %v2309_v26, %v2313_v62  ;;  %v2318_v5 = vsel %vm1324_vm7, %v2313_v62, %v2309_v26 }
 0xce9   : > { %3342 = vmatprep.subr.bf16.mxu1 %v3341_v3  ;;  %v2320_v61 = vmul.f32 %v2316_v4, %v3847_v47  ;;  %v2321_v9 = vmul.f32 %v2318_v5, %v3850_v39  ;;  %v3504_v3 = vld [vmem:[%s4795_s6 + $0x8] sm:$0xff] }
 0xcea   : > { %3344 = vmatpush1.bf16.msra.mxu1 %v3343_v54 }
 0xceb   : > { %v2325_v7 = vpop.permute.xlu0 %2324  ;;  %v2315_v51 = vpop.permute.xlu1 %2314 }
 0xcec   : > { %v2317_v8 = vsel %vm1324_vm7, %v2311_v2, %v2315_v51  ;;  %v2319_v59 = vsel %vm1324_vm7, %v2315_v51, %v2311_v2  ;;  %v3503_v2 = vld [vmem:[%s4795_s6] sm:$0xff] }
 0xced   : > { %v2322_v63 = vmul.f32 %v2317_v8, %v3847_v47  ;;  %v2323_v13 = vmul.f32 %v2319_v59, %v3850_v39 }
 0xcef   : > { %v3347_v10 = vpack.c.bf16 %v2322_v63, %v2320_v61  ;;  %v2329_v49 = vpop.permute.xlu0 %2328  ;;  %v2327_v17 = vpop.permute.xlu1 %2326  ;;  %v3345_v18 = vpack.c.bf16 %v2323_v13, %v2321_v9  ;;  %v2625_v61 = vld [vmem:[%s4734_s21] sm:$0xff]  ;;  %v2626_v9 = vld [vmem:[%s4734_s21 + $0x8] sm:$0xff] }
 0xcf0   : > { %v2332_v19 = vsel %vm1346_vm8, %v2325_v7, %v2329_v49  ;;  %v2334_v20 = vsel %vm1346_vm8, %v2329_v49, %v2325_v7  ;;  %v2657_v63 = vld [vmem:[%s888_s12] sm:$0xff]  ;;  %v2642_v49 = vld [vmem:[%s4735_s22 + $0x8] sm:$0xff] }
 0xcf1   : > { %3346 = vmatprep.subr.bf16.mxu1 %v3345_v18  ;;  %v2336_v22 = vmul.f32 %v2332_v19, %v3872_v6  ;;  %v2337_v27 = vmul.f32 %v2334_v20, %v3865_v60  ;;  %v2641_v13 = vld [vmem:[%s4735_s22] sm:$0xff]  ;;  %v2676_v19 = vld [vmem:[%s4401_s29 + $0x8] sm:$0xff] }
 0xcf2   : > { %3348 = vmatpush1.bf16.msra.mxu1 %v3347_v10  ;;  %v2659_v10 = vadd.f32 1.0, %v2657_v63 }
 0xcf3   : > { %v2331_v1 = vpop.permute.xlu1 %2330 }
 0xcf4   : > { %v2333_v11 = vsel %vm1346_vm8, %v2327_v17, %v2331_v1  ;;  %v2335_v21 = vsel %vm1346_vm8, %v2331_v1, %v2327_v17  ;;  %v2658_v17 = vld [vmem:[%s888_s12 + $0x8] sm:$0xff]  ;;  %s4808_s12 = sld [smem:[#allocation5_spill]] }
 0xcf5   : > { %v2338_v33 = vmul.f32 %v2333_v11, %v3872_v6  ;;  %v2339_v34 = vmul.f32 %v2335_v21, %v3865_v60  ;;  %v2660_v18 = vadd.f32 1.0, %v2658_v17 }
 0xcf7   : > { %v3351_v36 = vpack.c.bf16 %v2338_v33, %v2336_v22  ;;  %v3349_v28 = vpack.c.bf16 %v2339_v34, %v2337_v27 }
 0xcf9   : > { %3350 = vmatprep.subr.bf16.mxu1 %v3349_v28 }
 0xcfa   : > { %3352 = vmatpush1.bf16.msra.mxu1 %v3351_v36 }
 0xcfd   : > { %2427 = vmatmul.mubr.f32.vlgmr.msra.gmra.mrb[20].mxu1 %v2340_v29 }
 0xcfe   : > { %3196 = vmatprep.mubr.msk.f32.mxu1 %vm1464_vm10, %v2343_v38 }
 0xd00   : > { %v2349_v43 = vpop.permute.xlu0 %2348 }
 0xd01   : > { %2433 = vmatmul.mubr.f32.gmra.mrb[22].mxu1 %v2342_v41 }
 0xd04   : > { %v2354_v26 = vpop.permute.xlu1 %2353 }
 0xdd0   : > { %v2428_v30 = vpop.f32.mrb[20].mxu1 }
 0xdd1   : > { %v2430_v42 = vpop.f32.mrb[21].mxu1  ;;  %v2429_v53 = vadd.f32 %v2428_v30, %v2349_v43 }
 0xdd2   : > { %v2431_v37 = vadd.f32 %v2430_v42, %v2349_v43 }
 0xdd4   : > { %v2434_v32 = vpop.f32.mrb[22].mxu1 }
 0xdd5   : > { %v2435_v25 = vadd.f32 %v2434_v32, %v2354_v26  ;;  %v2436_v31 = vpop.f32.mrb[23].mxu1 }
 0xdd6   : > { %v2437_v52 = vadd.f32 %v2436_v31, %v2354_v26 }
 0xdd7   : > { %v3355_v62 = vpack.c.bf16 %v2435_v25, %v2429_v53 }
 0xdd8   : > { %v3353_v54 = vpack.c.bf16 %v2437_v52, %v2431_v37 }
 0xdda   : > { %3354 = vmatprep.subr.bf16.mxu0 %v3353_v54 }
 0xddb   : > { %3356 = vmatpush1.bf16.msra.mxu0 %v3355_v62 }
 0xdde   : > { %3197 = vmatmul.mubr.msk.f32.vlgmr.msra.gmra.mrb[8].mxu0 %vm1464_vm10, %v3503_v2 }
 0xddf   : > { %2509 = vmatprep.mubr.f32.mxu0 %v3513_v0 }
 0xde2   : > { %3198 = vmatmul.mubr.msk.f32.gmra.mrb[10].mxu0 %vm1464_vm10, %v3504_v3 }
 0xde3   : > { %2596 = vmatprep.mubr.f32.mxu0 %v3513_v0 }
 0xeb1   : > { %v2505_v4 = vpop.f32.mrb[8].mxu0 }
 0xeb2   : > { %v2507_v5 = vpop.f32.mrb[9].mxu0 }
 0xeb3   : > { %v2516_v7 = vadd.f32 %v2507_v5, %v2505_v4 }
 0xeb5   : > { %2517 = vadd.xlane.f32.xlu0 %v2516_v7  ;;  %v2511_v51 = vpop.f32.mrb[10].mxu0 }
 0xeb6   : > { %v2513_v8 = vpop.f32.mrb[11].mxu0 }
 0xeb7   : > { %v2519_v59 = vadd.f32 %v2513_v8, %v2511_v51 }
 0xeb9   : > { %2520 = vadd.xlane.f32.xlu1 %v2519_v59 }
 0xeca   : > { %2629 = vperm.xlu1 %3459, %v2625_v61  }
 0xecb   : > { %2634 = vperm.xlu0 %3460, %v2626_v9  }
 0xece   : > { %2645 = vperm.xlu1 %3459, %v2641_v13  }
 0xecf   : > { %2663 = vperm.xlu0 %3460, %v2659_v10  }
 0xed2   : > { %2650 = vperm.xlu1 %3459, %v2642_v49  }
 0xed6   : > { %2668 = vperm.xlu1 %3459, %v2660_v18  }
 0xeda   : > { %2684 = vperm.xlu1 %3459, %v2676_v19  }
 0xf42   : > { %v2518_v20 = vpop.xlane.xlu0 %2517 }
 0xf43   : > { %v2522_v1 = vmul.f32 0.0009765625, %v2518_v20 }
 0xf45   : > { %v2524_v21 = vsub.f32 %v2429_v53, %v2522_v1  ;;  %v2525_v22 = vsub.f32 %v2431_v37, %v2522_v1  ;;  %v2675_v37 = vld [vmem:[%s4401_s29] sm:$0xff]  ;;  %s898_s29 = scalar_lea.vmem %s4809_s28, %s3673_s8 }
 0xf46   : > { %v2521_v11 = vpop.xlane.xlu1 %2520 }
 0xf47   : > { %v2523_v27 = vmul.f32 0.0009765625, %v2521_v11  ;;  %v2528_v36 = vmul.f32 %v2524_v21, %v2524_v21  ;;  %v2529_v28 = vmul.f32 %v2525_v22, %v2525_v22 }
 0xf49   : > { %v2526_v33 = vsub.f32 %v2435_v25, %v2523_v27  ;;  %v2527_v34 = vsub.f32 %v2437_v52, %v2523_v27 }
 0xf4a   : > { %v2635_v52 = vpop.permute.xlu0 %2634  ;;  %v2630_v4 = vpop.permute.xlu1 %2629 }
 0xf4b   : > { %v2530_v29 = vmul.f32 %v2526_v33, %v2526_v33  ;;  %v2531_v38 = vmul.f32 %v2527_v34, %v2527_v34 }
 0xf4d   : > { %v3359_v41 = vpack.c.bf16 %v2530_v29, %v2528_v36  ;;  %v3357_v30 = vpack.c.bf16 %v2531_v38, %v2529_v28 }
 0xf4e   : > { %v2664_v53 = vpop.permute.xlu0 %2663  ;;  %v2646_v7 = vpop.permute.xlu1 %2645 }
 0xf4f   : > { %3358 = vmatprep.subr.bf16.mxu0 %v3357_v30 }
 0xf50   : > { %3360 = vmatpush1.bf16.msra.mxu0 %v3359_v41 }
 0xf52   : > { %v2651_v8 = vpop.permute.xlu1 %2650 }
 0xf53   : > { %3199 = vmatmul.mubr.msk.f32.vlgmr.msra.gmra.mrb[12].mxu0 %vm1464_vm10, %v3503_v2 }
 0xf54   : > { %2602 = vmatprep.mubr.f32.mxu0 %v3513_v0 }
 0xf56   : > { %v2669_v19 = vpop.permute.xlu1 %2668 }
 0xf57   : > { %3200 = vmatmul.mubr.msk.f32.gmra.mrb[14].mxu0 %vm1464_vm10, %v3504_v3 }
0x1026   : > { %v2598_v42 = vpop.f32.mrb[12].mxu0 }
0x1027   : > { %v2600_v26 = vpop.f32.mrb[13].mxu0 }
0x1028   : > { %v2609_v32 = vadd.f32 %v2600_v26, %v2598_v42  ;;  %v2685_v26 = vpop.permute.xlu1 %2684 }
0x102a   : > { %2610 = vadd.xlane.f32.xlu0 %v2609_v32  ;;  %v2604_v43 = vpop.f32.mrb[14].mxu0 }
0x102b   : > { %v2606_v25 = vpop.f32.mrb[15].mxu0 }
0x102c   : > { %v2612_v31 = vadd.f32 %v2606_v25, %v2604_v43 }
0x102e   : > { %2613 = vadd.xlane.f32.xlu0 %v2612_v31 }
0x1044   : > { %2679 = vperm.xlu0 %3460, %v2675_v37  }
0x10b7   : > { %v2611_v54 = vpop.xlane.xlu0 %2610 }
0x10b8   : > { %v2615_v62 = vmul.f32 0.0009765625, %v2611_v54 }
0x10ba   : > { %v2617_v2 = vadd.f32 1e-05, %v2615_v62 }
0x10bb   : > { %v2614_v5 = vpop.xlane.xlu0 %2613 }
0x10bc   : > { %3491 = vrsqrt.f32 %v2617_v2  ;;  %v2616_v0 = vmul.f32 0.0009765625, %v2614_v5 }
0x10be   : > { %v2618_v3 = vadd.f32 1e-05, %v2616_v0 }
0x10c0   : > { %3493 = vrsqrt.f32 %v2618_v3 }
0x10c3   : > { %v2680_v36 = vpop.permute.xlu0 %2679 }
0x10c6   : > { %v3492_v51 = vpop.eup %3491 }
0x10c7   : > { %v2621_v59 = vmul.f32 %v3492_v51, %v2524_v21  ;;  %v2622_v61 = vmul.f32 %v3492_v51, %v2525_v22 }
0x10c9   : > { %v2637_v9 = vmul.f32 %v2630_v4, %v2621_v59  ;;  %v2638_v63 = vmul.f32 %v2630_v4, %v2622_v61 }
0x10ca   : > { %v3494_v13 = vpop.eup %3493 }
0x10cb   : > { %v2623_v10 = vmul.f32 %v3494_v13, %v2526_v33  ;;  %v2624_v49 = vmul.f32 %v3494_v13, %v2527_v34  ;;  %v2653_v17 = vadd.f32 %v2646_v7, %v2637_v9  ;;  %v2654_v18 = vadd.f32 %v2646_v7, %v2638_v63  ;;  %v2840_v63 = vld [vmem:[%s4738_s25 + $0x8] sm:$0xff]  ;;  %v2843_v13 = vld [vmem:[%s4739_s26] sm:$0xff] }
0x10cc   : > { %3201 = vmatprep.mubr.msk.f32.mxu1 %vm1464_vm10, %v2840_v63  ;;  %v2953_v63 = vld [vmem:[%s4808_s12 + $0x58] sm:$0xff] }
0x10cd   : > { %v2639_v20 = vmul.f32 %v2635_v52, %v2623_v10  ;;  %v2640_v1 = vmul.f32 %v2635_v52, %v2624_v49  ;;  %v2671_v11 = vmul.f32 %v2664_v53, %v2653_v17  ;;  %v2672_v27 = vmul.f32 %v2664_v53, %v2654_v18  ;;  %v2844_v10 = vld [vmem:[%s4739_s26 + $0x8] sm:$0xff]  ;;  %v2958_v49 = vld [vmem:[%s4808_s12 + $0x80] sm:$0xff] }
0x10ce   : > { %v2959_v17 = vld [vmem:[%s4808_s12 + $0x88] sm:$0xff]  ;;  %v2942_v18 = vld [vmem:[%s4808_s12] sm:$0xff] }
0x10cf   : > { %v2655_v28 = vadd.f32 %v2651_v8, %v2639_v20  ;;  %v2656_v29 = vadd.f32 %v2651_v8, %v2640_v1  ;;  %v2687_v38 = vadd.f32 %v2680_v36, %v2671_v11  ;;  %v2688_v41 = vadd.f32 %v2680_v36, %v2672_v27  ;;  %v2943_v20 = vld [vmem:[%s4808_s12 + $0x8] sm:$0xff]  ;;  %v2960_v1 = vld [vmem:[%s4808_s12 + $0x90] sm:$0xff]  ;;  %v2961_v11 = vld [vmem:[%s4808_s12 + $0x98] sm:$0xff] }
0x10d0   : > { %v3399_v27 = vpack.c.bf16 %v2943_v20, %v2942_v18  ;;  %v3401_v36 = vpack.c.bf16 %v2961_v11, %v2960_v1 }
0x10d1   : > { %v2673_v30 = vmul.f32 %v2669_v19, %v2655_v28  ;;  %v2674_v21 = vmul.f32 %v2669_v19, %v2656_v29  ;;  %v2691_v22 = vmul.f32 0.5, %v2687_v38  ;;  %v2692_v42 = vmul.f32 0.5, %v2688_v41  ;;  %v2944_v28 = vld [vmem:[%s4808_s12 + $0x10] sm:$0xff]  ;;  %v2945_v29 = vld [vmem:[%s4808_s12 + $0x18] sm:$0xff] }
0x10d2   : > { %v3397_v19 = vpack.c.bf16 %v2959_v17, %v2958_v49 }
0x10d3   : > { %v2689_v32 = vadd.f32 %v2685_v26, %v2673_v30  ;;  %v2690_v33 = vadd.f32 %v2685_v26, %v2674_v21  ;;  %3495 = vtanh.f32 %v2691_v22  ;;  %v3403_v30 = vpack.c.bf16 %v2945_v29, %v2944_v28  ;;  %v2946_v22 = vld [vmem:[%s4808_s12 + $0x20] sm:$0xff]  ;;  %v2964_v26 = vld [vmem:[%s4808_s12 + $0xb0] sm:$0xff] }
0x10d4   : > { %3497 = vtanh.f32 %v2692_v42  ;;  %3398 = vmatprep.subr.bf16.mxu0 %v3397_v19  ;;  %v2947_v42 = vld [vmem:[%s4808_s12 + $0x28] sm:$0xff] }
0x10d5   : > { %v2693_v34 = vmul.f32 0.5, %v2689_v32  ;;  %v2694_v43 = vmul.f32 0.5, %v2690_v33  ;;  %3400 = vmatpush3.bf16.msra.mxu0 %v3399_v27 }
0x10d6   : > { %3402 = vmatprep.subr.bf16.mxu0 %v3401_v36 }
0x10d7   : > { %3499 = vtanh.f32 %v2693_v34 }
0x10d8   : > { %3501 = vtanh.f32 %v2694_v43  ;;  %v2948_v43 = vld [vmem:[%s4808_s12 + $0x30] sm:$0xff] }
0x10d9   : > { %3404 = vmatpush3.bf16.msra.mxu0 %v3403_v30 }
0x10dd   : > { %v3496_v25 = vpop.eup %3495 }
0x10de   : > { %v3498_v31 = vpop.eup %3497  ;;  %v2699_v37 = vmul.f32 0.5, %v3496_v25  ;;  %v2949_v25 = vld [vmem:[%s4808_s12 + $0x38] sm:$0xff] }
0x10df   : > { %v2700_v52 = vmul.f32 0.5, %v3498_v31  ;;  %v2966_v31 = vld [vmem:[%s4808_s12 + $0xc0] sm:$0xff] }
0x10e0   : > { %v2703_v53 = vadd.f32 0.5, %v2699_v37  ;;  %v2967_v37 = vld [vmem:[%s4808_s12 + $0xc8] sm:$0xff] }
0x10e1   : > { %v3500_v54 = vpop.eup %3499  ;;  %v2704_v2 = vadd.f32 0.5, %v2700_v52  ;;  %v3411_v52 = vpack.c.bf16 %v2949_v25, %v2948_v43 }
0x10e2   : > { %v3502_v62 = vpop.eup %3501  ;;  %v2701_v4 = vmul.f32 0.5, %v3500_v54  ;;  %v4408_v5 = vmul.f32 %v2703_v53, %v2687_v38  ;;  %v2962_v38 = vld [vmem:[%s4808_s12 + $0xa0] sm:$0xff]  ;;  %v3413_v53 = vpack.c.bf16 %v2967_v37, %v2966_v31 }
0x10e3   : > { %v2702_v0 = vmul.f32 0.5, %v3502_v62  ;;  %v4414_v8 = vmul.f32 %v2704_v2, %v2688_v41  ;;  %v2963_v41 = vld [vmem:[%s4808_s12 + $0xa8] sm:$0xff]  ;;  %v2950_v54 = vld [vmem:[%s4808_s12 + $0x40] sm:$0xff]  ;;  %v2969_v2 = vld [vmem:[%s4808_s12 + $0xd8] sm:$0xff] }
0x10e4   : > { %v2705_v3 = vadd.f32 0.5, %v2701_v4  ;;  %2711 = vrot.lane.b32.xlu0 %v4408_v5, %s4800_s0  ;;  %v3405_v21 = vpack.c.bf16 %v2963_v41, %v2962_v38  ;;  %v2951_v62 = vld [vmem:[%s4808_s12 + $0x48] sm:$0xff]  ;;  %v2968_v4 = vld [vmem:[%s4808_s12 + $0xd0] sm:$0xff] }
0x10e5   : > { %v2706_v7 = vadd.f32 0.5, %v2702_v0  ;;  %v3415_v0 = vpack.c.bf16 %v2951_v62, %v2950_v54 }
0x10e6   : > { %v4412_v51 = vmul.f32 %v2705_v3, %v2689_v32  ;;  %v2965_v32 = vld [vmem:[%s4808_s12 + $0xb8] sm:$0xff]  ;;  %3406 = vmatprep.subr.bf16.mxu0 %v3405_v21  ;;  %v3417_v3 = vpack.c.bf16 %v2969_v2, %v2968_v4 }
0x10e7   : > { %v4416_v59 = vmul.f32 %v2706_v7, %v2690_v33  ;;  %v3407_v33 = vpack.c.bf16 %v2947_v42, %v2946_v22  ;;  %v3409_v34 = vpack.c.bf16 %v2965_v32, %v2964_v26  ;;  %v2952_v7 = vld [vmem:[%s4808_s12 + $0x50] sm:$0xff] }
0x10e8   : > { %2715 = vrot.lane.b32.xlu0 %v4414_v8, %s4800_s0  ;;  %2713 = vrot.lane.b32.xlu1 %v4412_v51, %s4800_s0  ;;  %v3379_v61 = vpack.c.bf16 %v4412_v51, %v4408_v5  ;;  %v3419_v49 = vpack.c.bf16 %v2953_v63, %v2952_v7 }
0x10e9   : > { %v3377_v9 = vpack.c.bf16 %v4416_v59, %v4414_v8  ;;  %3408 = vmatpush3.bf16.msra.mxu0 %v3407_v33 }
0x10ea   : > { %3410 = vmatprep.subr.bf16.mxu0 %v3409_v34 }
0x10ec   : > { %2727 = vrot.lane.b32.xlu0 %v4408_v5, %s4801_s1  ;;  %2717 = vrot.lane.b32.xlu1 %v4416_v59, %s4800_s0 }
0x10ed   : > { %3412 = vmatpush3.bf16.msra.mxu0 %v3411_v52 }
0x10ee   : > { %3414 = vmatprep.subr.bf16.mxu0 %v3413_v53 }
0x10f0   : > { %2731 = vrot.lane.b32.xlu0 %v4414_v8, %s4801_s1  ;;  %2729 = vrot.lane.b32.xlu1 %v4412_v51, %s4801_s1 }
0x10f1   : > { %3416 = vmatpush3.bf16.msra.mxu0 %v3415_v0 }
0x10f2   : > { %3418 = vmatprep.subr.bf16.mxu0 %v3417_v3 }
0x10f4   : > { %2743 = vrot.lane.b32.xlu0 %v4408_v5, %s4802_s11  ;;  %2733 = vrot.lane.b32.xlu1 %v4416_v59, %s4801_s1 }
0x10f5   : > { %3420 = vmatpush3.bf16.msra.mxu0 %v3419_v49 }
0x10f8   : > { %2747 = vrot.lane.b32.xlu0 %v4414_v8, %s4802_s11  ;;  %2745 = vrot.lane.b32.xlu1 %v4412_v51, %s4802_s11 }
0x10fc   : > { %2759 = vrot.lane.b32.xlu0 %v4408_v5, %s4803_s5  ;;  %2749 = vrot.lane.b32.xlu1 %v4416_v59, %s4802_s11 }
0x1100   : > { %2763 = vrot.lane.b32.xlu0 %v4414_v8, %s4803_s5  ;;  %2761 = vrot.lane.b32.xlu1 %v4412_v51, %s4803_s5 }
0x1104   : > { %2775 = vrot.lane.b32.xlu0 %v4408_v5, %s4804_s2  ;;  %2765 = vrot.lane.b32.xlu1 %v4416_v59, %s4803_s5 }
0x1108   : > { %2779 = vrot.lane.b32.xlu0 %v4414_v8, %s4804_s2  ;;  %2777 = vrot.lane.b32.xlu1 %v4412_v51, %s4804_s2 }
0x110c   : > { %2791 = vrot.lane.b32.xlu0 %v4408_v5, %s4805_s9  ;;  %2781 = vrot.lane.b32.xlu1 %v4416_v59, %s4804_s2 }
0x1110   : > { %2795 = vrot.lane.b32.xlu0 %v4414_v8, %s4805_s9  ;;  %2793 = vrot.lane.b32.xlu1 %v4412_v51, %s4805_s9 }
0x1114   : > { %2807 = vrot.lane.b32.xlu0 %v4408_v5, %s4806_s10  ;;  %2797 = vrot.lane.b32.xlu1 %v4416_v59, %s4805_s9 }
0x1118   : > { %2811 = vrot.lane.b32.xlu0 %v4414_v8, %s4806_s10  ;;  %2809 = vrot.lane.b32.xlu1 %v4412_v51, %s4806_s10 }
0x111c   : > { %2823 = vrot.lane.b32.xlu0 %v4408_v5, %s4807_s3  ;;  %2813 = vrot.lane.b32.xlu1 %v4416_v59, %s4806_s10 }
0x1120   : > { %2827 = vrot.lane.b32.xlu0 %v4414_v8, %s4807_s3  ;;  %2825 = vrot.lane.b32.xlu1 %v4412_v51, %s4807_s3 }
0x1124   : > { %2847 = vperm.xlu0 %3460, %v2843_v13   ;;  %2829 = vrot.lane.b32.xlu1 %v4416_v59, %s4807_s3  ;;  %v2970_v13 = vld [vmem:[%s4808_s12 + $0xe0] sm:$0xff] }
0x1128   : > { %2852 = vperm.xlu1 %3459, %v2844_v10   ;;  %v2971_v10 = vld [vmem:[%s4808_s12 + $0xe8] sm:$0xff] }
0x1129   : > { %v3421_v17 = vpack.c.bf16 %v2971_v10, %v2970_v13 }
0x112b   : > { %3422 = vmatprep.subr.bf16.mxu0 %v3421_v17 }
0x1156   : > { %v2712_v18 = vpop.permute.xlu0 %2711 }
0x115a   : > { %v2716_v19 = vpop.permute.xlu0 %2715  ;;  %v2714_v20 = vpop.permute.xlu1 %2713 }
0x115b   : > { %v2719_v1 = vsel %vm1193_vm1, %v2712_v18, %v2716_v19  ;;  %v2721_v11 = vsel %vm1193_vm1, %v2716_v19, %v2712_v18 }
0x115c   : > { %v2723_v38 = vmul.f32 %v2721_v11, %v3758_v55  ;;  %v2724_v41 = vmul.f32 %v2719_v1, %v3761_v56 }
0x115e   : > { %v2728_v27 = vpop.permute.xlu0 %2727  ;;  %v2718_v36 = vpop.permute.xlu1 %2717 }
0x115f   : > { %v2720_v28 = vsel %vm1193_vm1, %v2714_v20, %v2718_v36  ;;  %v2722_v29 = vsel %vm1193_vm1, %v2718_v36, %v2714_v20 }
0x1160   : > { %v2725_v30 = vmul.f32 %v2722_v29, %v3758_v55  ;;  %v2726_v21 = vmul.f32 %v2720_v28, %v3761_v56 }
0x1162   : > { %v3363_v22 = vpack.c.bf16 %v2725_v30, %v2723_v38  ;;  %v2732_v42 = vpop.permute.xlu0 %2731  ;;  %v2730_v26 = vpop.permute.xlu1 %2729  ;;  %v3361_v32 = vpack.c.bf16 %v2726_v21, %v2724_v41 }
0x1163   : > { %v2735_v33 = vsel %vm1214_vm2, %v2728_v27, %v2732_v42  ;;  %v2737_v34 = vsel %vm1214_vm2, %v2732_v42, %v2728_v27 }
0x1164   : > { %3362 = vmatprep.subr.bf16.mxu1 %v3361_v32  ;;  %v2739_v56 = vmul.f32 %v2737_v34, %v3765_v57  ;;  %v2740_v37 = vmul.f32 %v2735_v33, %v3768_v58 }
0x1165   : > { %3364 = vmatpush1.bf16.msra.mxu1 %v3363_v22 }
0x1166   : > { %v2744_v43 = vpop.permute.xlu0 %2743  ;;  %v2734_v25 = vpop.permute.xlu1 %2733 }
0x1167   : > { %v2736_v31 = vsel %vm1214_vm2, %v2730_v26, %v2734_v25  ;;  %v2738_v55 = vsel %vm1214_vm2, %v2734_v25, %v2730_v26 }
0x1168   : > { %v2741_v52 = vmul.f32 %v2738_v55, %v3765_v57  ;;  %v2742_v53 = vmul.f32 %v2736_v31, %v3768_v58 }
0x116a   : > { %v3367_v54 = vpack.c.bf16 %v2741_v52, %v2739_v56  ;;  %v2748_v62 = vpop.permute.xlu0 %2747  ;;  %v2746_v4 = vpop.permute.xlu1 %2745  ;;  %v3365_v2 = vpack.c.bf16 %v2742_v53, %v2740_v37 }
0x116b   : > { %v2751_v0 = vsel %vm1236_vm3, %v2744_v43, %v2748_v62  ;;  %v2753_v3 = vsel %vm1236_vm3, %v2748_v62, %v2744_v43 }
0x116c   : > { %3366 = vmatprep.subr.bf16.mxu1 %v3365_v2  ;;  %v2755_v58 = vmul.f32 %v2753_v3, %v3790_v12  ;;  %v2756_v10 = vmul.f32 %v2751_v0, %v3793_v14 }
0x116d   : > { %3368 = vmatpush1.bf16.msra.mxu1 %v3367_v54 }
0x116e   : > { %v2760_v7 = vpop.permute.xlu0 %2759  ;;  %v2750_v63 = vpop.permute.xlu1 %2749 }
0x116f   : > { %v2752_v13 = vsel %vm1236_vm3, %v2746_v4, %v2750_v63  ;;  %v2754_v57 = vsel %vm1236_vm3, %v2750_v63, %v2746_v4 }
0x1170   : > { %v2757_v49 = vmul.f32 %v2754_v57, %v3790_v12  ;;  %v2758_v17 = vmul.f32 %v2752_v13, %v3793_v14 }
0x1172   : > { %v3371_v18 = vpack.c.bf16 %v2757_v49, %v2755_v58  ;;  %v2764_v19 = vpop.permute.xlu0 %2763  ;;  %v2762_v20 = vpop.permute.xlu1 %2761  ;;  %v3369_v1 = vpack.c.bf16 %v2758_v17, %v2756_v10 }
0x1173   : > { %v2767_v11 = vsel %vm1258_vm4, %v2760_v7, %v2764_v19  ;;  %v2769_v27 = vsel %vm1258_vm4, %v2764_v19, %v2760_v7 }
0x1174   : > { %3370 = vmatprep.subr.bf16.mxu1 %v3369_v1  ;;  %v2771_v14 = vmul.f32 %v2769_v27, %v3797_v15  ;;  %v2772_v38 = vmul.f32 %v2767_v11, %v3800_v16 }
0x1175   : > { %3372 = vmatpush1.bf16.msra.mxu1 %v3371_v18 }
0x1176   : > { %v2776_v36 = vpop.permute.xlu0 %2775  ;;  %v2766_v28 = vpop.permute.xlu1 %2765 }
0x1177   : > { %v2768_v29 = vsel %vm1258_vm4, %v2762_v20, %v2766_v28  ;;  %v2770_v12 = vsel %vm1258_vm4, %v2766_v28, %v2762_v20 }
0x1178   : > { %v2773_v41 = vmul.f32 %v2770_v12, %v3797_v15  ;;  %v2774_v30 = vmul.f32 %v2768_v29, %v3800_v16 }
0x117a   : > { %v3375_v21 = vpack.c.bf16 %v2773_v41, %v2771_v14  ;;  %v2780_v22 = vpop.permute.xlu0 %2779  ;;  %v2778_v42 = vpop.permute.xlu1 %2777  ;;  %v3373_v26 = vpack.c.bf16 %v2774_v30, %v2772_v38 }
0x117b   : > { %v2783_v32 = vsel %vm1280_vm5, %v2776_v36, %v2780_v22  ;;  %v2785_v33 = vsel %vm1280_vm5, %v2780_v22, %v2776_v36  ;;  %v2955_v22 = vld [vmem:[%s4808_s12 + $0x68] sm:$0xff] }
0x117c   : > { %3374 = vmatprep.subr.bf16.mxu1 %v3373_v26  ;;  %v2787_v25 = vmul.f32 %v2783_v32, %v3815_v23  ;;  %v2788_v31 = vmul.f32 %v2785_v33, %v3818_v24  ;;  %v2972_v26 = vld [vmem:[%s4808_s12 + $0xf0] sm:$0xff]  ;;  %v2973_v32 = vld [vmem:[%s4808_s12 + $0xf8] sm:$0xff] }
0x117d   : > { %3376 = vmatpush1.bf16.msra.mxu1 %v3375_v21  ;;  %v2839_v21 = vld [vmem:[%s4738_s25] sm:$0xff]  ;;  %v3425_v33 = vpack.c.bf16 %v2973_v32, %v2972_v26 }
0x117e   : > { %v2792_v34 = vpop.permute.xlu0 %2791  ;;  %3378 = vmatprep.subr.bf16.mxu1 %v3377_v9  ;;  %v2782_v15 = vpop.permute.xlu1 %2781 }
0x117f   : > { %v2784_v16 = vsel %vm1280_vm5, %v2778_v42, %v2782_v15  ;;  %v2786_v43 = vsel %vm1280_vm5, %v2782_v15, %v2778_v42  ;;  %v2957_v15 = vld [vmem:[%s4808_s12 + $0x78] sm:$0xff] }
0x1180   : > { %v2789_v55 = vmul.f32 %v2784_v16, %v3815_v23  ;;  %v2790_v56 = vmul.f32 %v2786_v43, %v3818_v24 }
0x1181   : > { %3380 = vmatpush1.bf16.msra.mxu1 %v3379_v61 }
0x1182   : > { %v3383_v8 = vpack.c.bf16 %v2789_v55, %v2787_v25  ;;  %v2796_v59 = vpop.permute.xlu0 %2795  ;;  %v2794_v9 = vpop.permute.xlu1 %2793  ;;  %v3381_v37 = vpack.c.bf16 %v2790_v56, %v2788_v31 }
0x1183   : > { %v2799_v52 = vsel %vm1302_vm6, %v2792_v34, %v2796_v59  ;;  %v2801_v53 = vsel %vm1302_vm6, %v2796_v59, %v2792_v34  ;;  %v2956_v34 = vld [vmem:[%s4808_s12 + $0x70] sm:$0xff] }
0x1184   : > { %3382 = vmatprep.subr.bf16.mxu1 %v3381_v37  ;;  %v2803_v51 = vmul.f32 %v2799_v52, %v3840_v44  ;;  %v2804_v61 = vmul.f32 %v2801_v53, %v3843_v46  ;;  %v3427_v16 = vpack.c.bf16 %v2957_v15, %v2956_v34 }
0x1185   : > { %3384 = vmatpush1.bf16.msra.mxu1 %v3383_v8 }
0x1186   : > { %v2808_v54 = vpop.permute.xlu0 %2807  ;;  %v2798_v23 = vpop.permute.xlu1 %2797 }
0x1187   : > { %v2800_v24 = vsel %vm1302_vm6, %v2794_v9, %v2798_v23  ;;  %v2802_v5 = vsel %vm1302_vm6, %v2798_v23, %v2794_v9 }
0x1188   : > { %v2805_v62 = vmul.f32 %v2800_v24, %v3840_v44  ;;  %v2806_v4 = vmul.f32 %v2802_v5, %v3843_v46 }
0x118a   : > { %v3387_v2 = vpack.c.bf16 %v2805_v62, %v2803_v51  ;;  %v2812_v0 = vpop.permute.xlu0 %2811  ;;  %v2810_v3 = vpop.permute.xlu1 %2809  ;;  %v3385_v7 = vpack.c.bf16 %v2806_v4, %v2804_v61 }
0x118b   : > { %v2815_v63 = vsel %vm1324_vm7, %v2808_v54, %v2812_v0  ;;  %v2817_v13 = vsel %vm1324_vm7, %v2812_v0, %v2808_v54 }
0x118c   : > { %3386 = vmatprep.subr.bf16.mxu1 %v3385_v7  ;;  %v2819_v46 = vmul.f32 %v2815_v63, %v3847_v47  ;;  %v2820_v49 = vmul.f32 %v2817_v13, %v3850_v39 }
0x118d   : > { %3388 = vmatpush1.bf16.msra.mxu1 %v3387_v2 }
0x118e   : > { %v2824_v57 = vpop.permute.xlu0 %2823  ;;  %v2814_v58 = vpop.permute.xlu1 %2813 }
0x118f   : > { %v2816_v10 = vsel %vm1324_vm7, %v2810_v3, %v2814_v58  ;;  %v2818_v44 = vsel %vm1324_vm7, %v2814_v58, %v2810_v3 }
0x1190   : > { %v2821_v17 = vmul.f32 %v2816_v10, %v3847_v47  ;;  %v2822_v18 = vmul.f32 %v2818_v44, %v3850_v39 }
0x1192   : > { %v3391_v19 = vpack.c.bf16 %v2821_v17, %v2819_v46  ;;  %v2828_v20 = vpop.permute.xlu0 %2827  ;;  %v2826_v1 = vpop.permute.xlu1 %2825  ;;  %v3389_v11 = vpack.c.bf16 %v2822_v18, %v2820_v49 }
0x1193   : > { %v2831_v27 = vsel %vm1346_vm8, %v2824_v57, %v2828_v20  ;;  %v2833_v36 = vsel %vm1346_vm8, %v2828_v20, %v2824_v57 }
0x1194   : > { %3390 = vmatprep.subr.bf16.mxu1 %v3389_v11  ;;  %v2835_v39 = vmul.f32 %v2831_v27, %v3872_v6  ;;  %v2836_v12 = vmul.f32 %v2833_v36, %v3865_v60 }
0x1195   : > { %3392 = vmatpush1.bf16.msra.mxu1 %v3391_v19 }
0x1196   : > { %v2830_v28 = vpop.permute.xlu1 %2829 }
0x1197   : > { %v2832_v29 = vsel %vm1346_vm8, %v2826_v1, %v2830_v28  ;;  %v2834_v47 = vsel %vm1346_vm8, %v2830_v28, %v2826_v1 }
0x1198   : > { %v2837_v14 = vmul.f32 %v2832_v29, %v3872_v6  ;;  %v2838_v38 = vmul.f32 %v2834_v47, %v3865_v60  ;;  %v2841_v6 = vld [vmem:[%s4738_s25 + $0x10] sm:$0xff]  ;;  %v2954_v60 = vld [vmem:[%s4808_s12 + $0x60] sm:$0xff] }
0x1199   : > { %v3423_v42 = vpack.c.bf16 %v2955_v22, %v2954_v60 }
0x119a   : > { %v3395_v41 = vpack.c.bf16 %v2837_v14, %v2835_v39  ;;  %v3393_v30 = vpack.c.bf16 %v2838_v38, %v2836_v12 }
0x119b   : > { %3424 = vmatpush3.bf16.msra.mxu0 %v3423_v42 }
0x119c   : > { %3394 = vmatprep.subr.bf16.mxu1 %v3393_v30  ;;  %3426 = vmatprep.subr.bf16.mxu0 %v3425_v33 }
0x119d   : > { %3396 = vmatpush1.bf16.msra.mxu1 %v3395_v41 }
0x119f   : > { %3428 = vmatpush3.bf16.msra.mxu0 %v3427_v16 }
0x11a0   : > { %2926 = vmatmul.mubr.f32.vlgmr.msra.gmra.mrb[24].mxu1 %v2839_v21 }
0x11a1   : > { %3202 = vmatprep.mubr.msk.f32.mxu1 %vm1464_vm10, %v2842_v48 }
0x11a3   : > { %v2848_v43 = vpop.permute.xlu0 %2847 }
0x11a4   : > { %2932 = vmatmul.mubr.f32.gmra.mrb[26].mxu1 %v2841_v6 }
0x11a7   : > { %v2853_v8 = vpop.permute.xlu1 %2852 }
0x1273   : > { %v2927_v25 = vpop.f32.mrb[24].mxu1 }
0x1274   : > { %v2928_v31 = vadd.f32 %v2927_v25, %v2848_v43  ;;  %v2929_v55 = vpop.f32.mrb[25].mxu1 }
0x1275   : > { %v2930_v56 = vadd.f32 %v2929_v55, %v2848_v43 }
0x1276   : > { %v2938_v37 = vadd.f32 %v4140_v50, %v2928_v31 }
0x1277   : > { %v2939_v59 = vadd.f32 %v4136_v45, %v2930_v56  ;;  %v2933_v9 = vpop.f32.mrb[26].mxu1 }
0x1278   : > { %v2934_v52 = vadd.f32 %v2933_v9, %v2853_v8  ;;  %v2935_v53 = vpop.f32.mrb[27].mxu1 }
0x1279   : > { %v2936_v54 = vadd.f32 %v2935_v53, %v2853_v8  ;;  %3038 = vmatprep.mubr.f32.mxu0 %v2939_v59 }
0x127a   : > { %3039 = vmatmul.mubr.f32.vlgmr.msra.gmra.mrb[16].mxu0 %v2938_v37  ;;  %v2940_v24 = vadd.f32 %v4134_v35, %v2934_v52 }
0x127b   : > { %v2941_v23 = vadd.f32 %v4138_v40, %v2936_v54 }
0x127d   : > { %3043 = vmatprep.mubr.f32.mxu0 %v2941_v23 }
0x127e   : > { %3044 = vmatmul.mubr.f32.gmra.mrb[18].mxu0 %v2940_v24 }
0x134d   : > { %v3243_v5 = vpop.f32.mrb[16].mxu0 }
0x134e   : > { %v3244_v45 = vpop.f32.mrb[17].mxu0 }
0x134f   : > { %v3245_v51 = vadd.f32 %v3244_v45, %v3243_v5 }
0x1351   : > { %3050 = vst.msk [vmem:[%s898_s29] sm:$0xff] %vm3049_vm11, %v3245_v51  ;;  %v3246_v50 = vpop.f32.mrb[18].mxu0 }
0x1352   : > { %v3247_v61 = vpop.f32.mrb[19].mxu0 }
0x1353   : > { %v3248_v62 = vadd.f32 %v3247_v61, %v3246_v50 }
0x1355   : > { %3051 = vst.msk [vmem:[%s898_s29 + $0x8] sm:$0xff] %vm3049_vm11, %v3248_v62 }
0x1356 PF: > { %s4810_s6 = sld [smem:[#allocation2_spill]] }
0x135c   : > { %s37_s7 = sadd.s32 1, %s4810_s6  }
0x135d   : > { %p34_p4 = scmp.ge.s32.totalorder %s37_s7, 4  }
0x135f   :  { %36 = sbr.rel (!%p34_p4) target bundleno = 16 (0x10), region = 177 }

</bundles_post_ra>
